<compile_context>
chip_gen: v5e
topology: v5e:2x2
jax: 0.10.0
libtpu: 0.0.40
codegen_flags: <defaults>
</compile_context>

<pallas_src>
import functools

import jax
import jax.numpy as jnp
from jax import lax
from jax.experimental import pallas as pl
from jax.experimental.pallas import tpu as pltpu


# -----------------------------------------------------------------------------
# Phase 1: 2-layer LSTM recurrence (grid: (batch_groups [parallel], T chunks [serial]))
# -----------------------------------------------------------------------------
def lstm_recurrence_kernel(x_ref,                   # (t_blk, Bg, E)
                           wih0_ref, whh0_ref,      # (E, 4H), (H, 4H)
                           b0_ref,                  # (1, 4H)   = b_ih0 + b_hh0
                           wih1_ref, whh1_ref,      # (H, 4H), (H, 4H)
                           b1_ref,                  # (1, 4H)   = b_ih1 + b_hh1
                           h_out_ref,               # (t_blk, Bg, H)
                           state_ref,               # VMEM scratch (4, Bg, H) f32
                           xg0_ref,                 # VMEM scratch (t_blk, Bg, 4H) f32
                           *, unroll):
    t_blk, Bg, E = x_ref.shape
    H = h_out_ref.shape[2]

    # Zero hidden/cell state at the first T chunk of each batch group
    # (DecoderRNN.init_hidden()).
    @pl.when(pl.program_id(1) == 0)
    def _init():
        state_ref[...] = jnp.zeros_like(state_ref)

    # Hoist weight loads / bias broadcast out of the timestep loop
    # (JAX does not CSE broadcast_in_dim inside loops).
    wih0 = wih0_ref[...]
    whh0 = whh0_ref[...]
    wih1 = wih1_ref[...]
    whh1 = whh1_ref[...]
    cdt = whh0.dtype                 # MXU input dtype (bf16 weights -> bf16 inputs)
    bias1 = jnp.broadcast_to(b1_ref[...], (Bg, 4 * H))

    # Hoisted layer-0 input GEMM: one big-M matmul for the whole chunk, bias
    # folded in, parked in VMEM scratch.  The serial loop below only needs
    # small (Bg,H)@(H,4H) dots.
    x2d = x_ref[...].reshape(t_blk * Bg, E).astype(cdt)
    xg0_ref[...] = (
        jnp.dot(x2d, wih0, preferred_element_type=jnp.float32) + b0_ref[...]
    ).reshape(t_blk, Bg, 4 * H)

    def gates_to_state(g, c):
        # PyTorch gate order i, f, g, o.  H is lane-aligned so slices are views.
        i = jax.nn.sigmoid(g[:, 0 * H:1 * H])
        f = jax.nn.sigmoid(g[:, 1 * H:2 * H])
        gg = jnp.tanh(g[:, 2 * H:3 * H])
        o = jax.nn.sigmoid(g[:, 3 * H:4 * H])
        c_new = f * c + i * gg
        return o * jnp.tanh(c_new), c_new

    def body(t, carry):
        h1, c1, h2, c2 = carry
        # Layer 0: precomputed input gates + recurrent dot (no concat copy).
        g0 = xg0_ref[t] + jnp.dot(h1.astype(cdt), whh0,
                                  preferred_element_type=jnp.float32)
        h1, c1 = gates_to_state(g0, c1)
        # Layer 1: two small dots (input = h1 of layer 0), no concat copy.
        g1 = (jnp.dot(h1.astype(cdt), wih1, preferred_element_type=jnp.float32)
              + jnp.dot(h2.astype(cdt), whh1, preferred_element_type=jnp.float32)
              + bias1)
        h2, c2 = gates_to_state(g1, c2)
        h_out_ref[t] = h2.astype(h_out_ref.dtype)      # dense (Bg, H) store
        return (h1, c1, h2, c2)

    carry0 = (state_ref[0], state_ref[1], state_ref[2], state_ref[3])
    # Bounded unroll: LLO overlap without blowing the 64-vreg file at large B*H.
    h1, c1, h2, c2 = lax.fori_loop(0, t_blk, body, carry0,
                                   unroll=min(unroll, t_blk))

    # Persist carry for the next T chunk of this batch group.
    state_ref[0] = h1
    state_ref[1] = c1
    state_ref[2] = h2
    state_ref[3] = c2


# -----------------------------------------------------------------------------
# Phase 2: batched output projection, tiled over (V chunks, T chunks)
# -----------------------------------------------------------------------------
def fc_projection_kernel(h_ref,      # (B, Tf_blk, H)   batch-first hidden states
                         wfc_ref,    # (H, V_blk)
                         bfc_ref,    # (1, V_blk)  f32
                         out_ref):   # (B, Tf_blk, V_blk) f32 (batch_first)
    B, Tf, H = h_ref.shape
    Vb = out_ref.shape[2]

    wfc = wfc_ref[...]
    # Big-M matmul: (B*Tf, H) @ (H, V_blk); rows are already batch-first ordered,
    # so the result is written with a SINGLE fully dense (unmasked) store.
    h2d = h_ref[...].reshape(B * Tf, H).astype(wfc.dtype)
    logits = jnp.dot(h2d, wfc, preferred_element_type=jnp.float32) + bfc_ref[...]
    out_ref[...] = logits.reshape(B, Tf, Vb).astype(out_ref.dtype)


# -----------------------------------------------------------------------------
# Wrapper (glue: embedding gather, vocab padding, BlockSpecs / grids)
# -----------------------------------------------------------------------------
def decoder_rnn_forward(features, captions, params, *,
                        t_blk=None, fc_t_blk=None, v_blk=None,
                        batch_groups=1, unroll=4):
    """features: (B, E) f32; captions: (B, Tcap) int32 -> (B, Tcap, V) f32."""
    emb_table = params["embed"]                                   # (V, E)

    # Embedding gather directly in time-major order: (T-1, B, E).
    tokens_tm = jnp.transpose(captions[:, :-1], (1, 0))           # (T-1, B) tiny
    embeddings = jnp.take(emb_table, tokens_tm, axis=0)           # (T-1, B, E)
    feats = features.astype(jnp.float32)[None]                    # (1, B, E)
    x = jnp.concatenate([feats, embeddings.astype(jnp.float32)], axis=0)  # (T,B,E)

    T, B, E = x.shape
    H = params["whh0_t"].shape[0]
    V = params["wfc_t"].shape[1]
    w_dtype = params["whh0_t"].dtype
    # bf16 weights -> emit the hidden-state intermediate in bf16 too (halves the
    # Phase-1 write / Phase-2 read HBM traffic; Phase-2 accumulation stays f32).
    h_dtype = jnp.bfloat16 if w_dtype == jnp.bfloat16 else jnp.float32

    assert E % 128 == 0 and H % 128 == 0, "embed/hidden size must be 128-aligned"
    assert batch_groups >= 1 and B % batch_groups == 0
    Bg = B // batch_groups
    assert Bg % 8 == 0, "batch rows per group must be a multiple of 8 sublanes"

    if t_blk is None:
        t_blk = T if T <= 16 else (16 if T % 16 == 0 else (8 if T % 8 == 0 else T))
    if fc_t_blk is None:
        fc_t_blk = T
    assert T % t_blk == 0 and T % fc_t_blk == 0

    # Pad vocab up to a lane multiple (real vocab sizes are rarely 128-aligned);
    # padded logits columns are sliced away at the end.
    V_p = ((V + 127) // 128) * 128
    if v_blk is None:
        v_blk = 128
        for cand in (4096, 2048, 1024, 512, 256, 128):
            if V_p % cand == 0:
                v_blk = cand
                break
    assert V_p % v_blk == 0 and v_blk % 128 == 0

    wih0, whh0 = params["wih0_t"], params["whh0_t"]
    wih1, whh1 = params["wih1_t"], params["whh1_t"]
    b0, b1 = params["b0"], params["b1"]
    wfc, bfc = params["wfc_t"], params["bfc"]
    if V_p != V:
        wfc = jnp.pad(wfc, ((0, 0), (0, V_p - V)))
        bfc = jnp.pad(bfc, ((0, 0), (0, V_p - V)))

    nbytes = lambda a: int(a.size) * a.dtype.itemsize
    h_bytes = int(jnp.dtype(h_dtype).itemsize)

    # ---- Phase 1: sequential LSTM recurrence -> hidden states (T, B, H) -----
    cost1 = pl.CostEstimate(
        flops=int(2 * T * B * 4 * H * (E + 3 * H)),
        transcendentals=int(T * B * 10 * H),
        bytes_accessed=int(nbytes(x) + nbytes(wih0) + nbytes(whh0) + nbytes(wih1)
                           + nbytes(whh1) + nbytes(b0) + nbytes(b1)
                           + T * B * H * h_bytes),
    )
    # NOTE(v7x): constant-index weight blocks could additionally use
    # pipeline_mode=pl.Buffered(1) to drop their second VMEM buffer; left off
    # here for portability (unfused + optional bf16 weights already keep the
    # footprint small).
    h_all = pl.pallas_call(
        functools.partial(lstm_recurrence_kernel, unroll=unroll),
        out_shape=jax.ShapeDtypeStruct((T, B, H), h_dtype),
        grid=(batch_groups, T // t_blk),
        in_specs=[
            pl.BlockSpec((t_blk, Bg, E), lambda g, i: (i, g, 0)),   # x chunk
            pl.BlockSpec((E, 4 * H), lambda g, i: (0, 0)),          # W_ih layer 0
            pl.BlockSpec((H, 4 * H), lambda g, i: (0, 0)),          # W_hh layer 0
            pl.BlockSpec((1, 4 * H), lambda g, i: (0, 0)),          # bias layer 0
            pl.BlockSpec((H, 4 * H), lambda g, i: (0, 0)),          # W_ih layer 1
            pl.BlockSpec((H, 4 * H), lambda g, i: (0, 0)),          # W_hh layer 1
            pl.BlockSpec((1, 4 * H), lambda g, i: (0, 0)),          # bias layer 1
        ],
        out_specs=pl.BlockSpec((t_blk, Bg, H), lambda g, i: (i, g, 0)),
        scratch_shapes=[
            pltpu.VMEM((4, Bg, H), jnp.float32),          # h1,c1,h2,c2 carry
            pltpu.VMEM((t_blk, Bg, 4 * H), jnp.float32),  # hoisted layer-0 input gates
        ],
        compiler_params=pltpu.CompilerParams(
            # batch groups are independent ("parallel", megacore on v7x);
            # the T-chunk axis carries the recurrence state ("arbitrary").
            dimension_semantics=("parallel", "arbitrary"),
            vmem_limit_bytes=64 * 1024 * 1024,
        ),
        cost_estimate=cost1,
    )(x, wih0, whh0, b0, wih1, whh1, b1)

    # Batch-first hidden states via one cheap XLA transpose of the SMALL
    # intermediate (T*B*H), so Phase 2 stores its large logits blocks densely.
    h_bf = jnp.transpose(h_all, (1, 0, 2))                         # (B, T, H)

    # ---- Phase 2: hoisted vocab projection, dense batch_first output --------
    cost2 = pl.CostEstimate(
        flops=int(2 * B * T * H * V_p),
        transcendentals=0,
        bytes_accessed=int((V_p // v_blk) * T * B * H * h_bytes
                           + nbytes(wfc) + nbytes(bfc) + B * T * V_p * 4),
    )
    out = pl.pallas_call(
        fc_projection_kernel,
        out_shape=jax.ShapeDtypeStruct((B, T, V_p), jnp.float32),
        # V outer / T inner: each wfc tile is streamed from HBM exactly once.
        grid=(V_p // v_blk, T // fc_t_blk),
        in_specs=[
            pl.BlockSpec((B, fc_t_blk, H), lambda j, i: (0, i, 0)),
            pl.BlockSpec((H, v_blk), lambda j, i: (0, j)),
            pl.BlockSpec((1, v_blk), lambda j, i: (0, j)),
        ],
        out_specs=pl.BlockSpec((B, fc_t_blk, v_blk), lambda j, i: (0, i, j)),
        compiler_params=pltpu.CompilerParams(
            dimension_semantics=("parallel", "parallel"),          # megacore on v7x
            vmem_limit_bytes=64 * 1024 * 1024,
        ),
        cost_estimate=cost2,
    )(h_bf, wfc, bfc)

    if V_p != V:
        out = out[:, :, :V]
    return out                                                     # (B, T, V)


# -----------------------------------------------------------------------------
# Pure-JAX reference (correctness check)
# -----------------------------------------------------------------------------
def decoder_rnn_reference(features, captions, params):
    emb = jnp.take(params["embed"], captions[:, :-1], axis=0)
    inputs = jnp.concatenate([features[:, None, :], emb], axis=1)
    B, T, E = inputs.shape
    H = params["whh0_t"].shape[0]

    def cell(xt, h, c, wih, whh, b):
        g = xt @ wih + h @ whh + b
        i = jax.nn.sigmoid(g[:, :H])
        f = jax.nn.sigmoid(g[:, H:2 * H])
        gg = jnp.tanh(g[:, 2 * H:3 * H])
        o = jax.nn.sigmoid(g[:, 3 * H:])
        c = f * c + i * gg
        return o * jnp.tanh(c), c

    h1 = c1 = h2 = c2 = jnp.zeros((B, H), jnp.float32)
    outs = []
    for t in range(T):
        h1, c1 = cell(inputs[:, t, :], h1, c1,
                      params["wih0_t"], params["whh0_t"], params["b0"])
        h2, c2 = cell(h1, h2, c2,
                      params["wih1_t"], params["whh1_t"], params["b1"])
        outs.append(h2 @ params["wfc_t"] + params["bfc"])
    return jnp.stack(outs, axis=1)


# -----------------------------------------------------------------------------
# Deterministic parameter init (shapes per DecoderRNN.__init__)
# -----------------------------------------------------------------------------
def make_params(key, embed_size, hidden_size, vocab_size, dtype=jnp.float32):
    # dtype=jnp.bfloat16 is recommended for weights on v6e/v7x (kernel casts
    # activations to the weight dtype at the MXU; gate math / accumulation f32,
    # and the hidden-state intermediate is emitted bf16 to halve HBM traffic).
    ks = jax.random.split(key, 8)
    E, H, V = embed_size, hidden_size, vocab_size
    s = 0.1
    return {
        "embed":  (jax.random.normal(ks[0], (V, E), jnp.float32) * s).astype(dtype),
        # LSTM layer 0: W_ih (4H, E), W_hh (4H, H)  -> stored transposed
        "wih0_t": (jax.random.normal(ks[1], (E, 4 * H), jnp.float32) * s).astype(dtype),
        "whh0_t": (jax.random.normal(ks[2], (H, 4 * H), jnp.float32) * s).astype(dtype),
        "b0":     jax.random.normal(ks[3], (1, 4 * H), jnp.float32) * s,   # b_ih+b_hh
        # LSTM layer 1: W_ih (4H, H), W_hh (4H, H)
        "wih1_t": (jax.random.normal(ks[4], (H, 4 * H), jnp.float32) * s).astype(dtype),
        "whh1_t": (jax.random.normal(ks[5], (H, 4 * H), jnp.float32) * s).astype(dtype),
        "b1":     jax.random.normal(ks[6], (1, 4 * H), jnp.float32) * s,
        # fc: Linear(H, V) -> stored transposed
        "wfc_t":  (jax.random.normal(ks[7], (H, V), jnp.float32) * s).astype(dtype),
        "bfc":    jnp.zeros((1, V), jnp.float32),
    }


if __name__ == "__main__":
    # Small, aligned shapes: B multiple of 8*batch_groups; E, H multiples of 128.
    B, E, H, V, T_CAP = 16, 128, 128, 256, 8    # inputs seq len T = T_CAP

    key = jax.random.PRNGKey(0)
    k_feat, k_cap, k_par = jax.random.split(key, 3)

    features = jax.random.normal(k_feat, (B, E), jnp.float32)        # image features
    captions = jax.random.randint(k_cap, (B, T_CAP), 0, V, jnp.int32)
    params = make_params(k_par, E, H, V)                             # f32: exact check

    # Small tiles chosen to exercise both grids (batch groups + T chunks in
    # phase 1, V chunks in phase 2).
    fwd = jax.jit(functools.partial(decoder_rnn_forward,
                                    t_blk=4, fc_t_blk=T_CAP, v_blk=128,
                                    batch_groups=2, unroll=4))
    out = jax.block_until_ready(fwd(features, captions, params))
    assert out.shape == (B, T_CAP, V), out.shape

    ref = decoder_rnn_reference(features, captions, params)
    max_err = float(jnp.max(jnp.abs(out - ref)))
    assert jnp.allclose(out, ref, atol=1e-4, rtol=1e-4), max_err

    print("KERNEL_OK")
</pallas_src>

<mosaic_0001>
module attributes {stable_mosaic.version = 11 : i64} {
  func.func @fc_projection_kernel(%arg0: i32, %arg1: i32, %arg2: memref<16x8x128xf32, #tpu.memory_space<vmem>>, %arg3: memref<128x128xf32, #tpu.memory_space<vmem>>, %arg4: memref<1x128xf32, #tpu.memory_space<vmem>>, %arg5: memref<16x8x128xf32, #tpu.memory_space<vmem>>) attributes {dimension_semantics = [#tpu.dimension_semantics<parallel>, #tpu.dimension_semantics<parallel>], iteration_bounds = array<i64: 2, 1>, scalar_prefetch = 0 : i64, scratch_operands = 0 : i64, tpu.core_type = #tpu.core_type<tc>, window_params = [{transform_indices = @transform_0, window_bounds = array<i64: 16, 8, 128>}, {transform_indices = @transform_1, window_bounds = array<i64: 128, 128>}, {transform_indices = @transform_2, window_bounds = array<i64: 1, 128>}, {transform_indices = @transform_3, window_bounds = array<i64: 16, 8, 128>}]} {
    %c0 = arith.constant 0 : index
    %c0_0 = arith.constant 0 : index
    %0 = vector.load %arg3[%c0, %c0_0] : memref<128x128xf32, #tpu.memory_space<vmem>>, vector<128x128xf32>
    %c0_1 = arith.constant 0 : index
    %c0_2 = arith.constant 0 : index
    %c0_3 = arith.constant 0 : index
    %1 = vector.load %arg2[%c0_1, %c0_2, %c0_3] : memref<16x8x128xf32, #tpu.memory_space<vmem>>, vector<16x8x128xf32>
    %2 = vector.shape_cast %1 : vector<16x8x128xf32> to vector<128x128xf32>
    %cst = arith.constant dense<0.000000e+00> : vector<128x128xf32>
    %3 = tpu.matmul %2, %0, %cst {dimension_numbers = #tpu.dot_dimension_numbers<[1], [0], [0], [1], [0, 0, 1, 1], [], []>} : vector<128x128xf32>, vector<128x128xf32>, vector<128x128xf32> -> vector<128x128xf32>
    %c0_4 = arith.constant 0 : index
    %c0_5 = arith.constant 0 : index
    %4 = vector.load %arg4[%c0_4, %c0_5] : memref<1x128xf32, #tpu.memory_space<vmem>>, vector<1x128xf32>
    %5 = vector.broadcast %4 : vector<1x128xf32> to vector<128x128xf32>
    %6 = arith.addf %3, %5 : vector<128x128xf32>
    %7 = vector.shape_cast %6 : vector<128x128xf32> to vector<16x8x128xf32>
    %c0_6 = arith.constant 0 : index
    %c0_7 = arith.constant 0 : index
    %c0_8 = arith.constant 0 : index
    %8 = vector.load %arg5[%c0_6, %c0_7, %c0_8] : memref<16x8x128xf32, #tpu.memory_space<vmem>>, vector<16x8x128xf32>
    tpu.vector_store %arg5[%c0_6, %c0_7, %c0_8], %7 {strides = array<i32>} : memref<16x8x128xf32, #tpu.memory_space<vmem>>, vector<16x8x128xf32>,
    return
  }
  func.func @transform_0(%arg0: i32, %arg1: i32) -> (i32, i32, i32) {
    %c0_i32 = arith.constant 0 : i32
    %c0_i32_0 = arith.constant 0 : i32
    %c0_i32_1 = arith.constant 0 : i32
    return %c0_i32, %arg1, %c0_i32_0 : i32, i32, i32
  }
  func.func @transform_1(%arg0: i32, %arg1: i32) -> (i32, i32) {
    %c0_i32 = arith.constant 0 : i32
    %c0_i32_0 = arith.constant 0 : i32
    return %c0_i32, %arg0 : i32, i32
  }
  func.func @transform_2(%arg0: i32, %arg1: i32) -> (i32, i32) {
    %c0_i32 = arith.constant 0 : i32
    %c0_i32_0 = arith.constant 0 : i32
    return %c0_i32, %arg0 : i32, i32
  }
  func.func @transform_3(%arg0: i32, %arg1: i32) -> (i32, i32, i32) {
    %c0_i32 = arith.constant 0 : i32
    %c0_i32_0 = arith.constant 0 : i32
    return %c0_i32, %arg1, %arg0 : i32, i32, i32
  }
}

module attributes {stable_mosaic.version = 11 : i64} {
  func.func @lstm_recurrence_kernel(%arg0: i32, %arg1: i32, %arg2: memref<4x8x128xf32, #tpu.memory_space<vmem>>, %arg3: memref<128x512xf32, #tpu.memory_space<vmem>>, %arg4: memref<128x512xf32, #tpu.memory_space<vmem>>, %arg5: memref<1x512xf32, #tpu.memory_space<vmem>>, %arg6: memref<128x512xf32, #tpu.memory_space<vmem>>, %arg7: memref<128x512xf32, #tpu.memory_space<vmem>>, %arg8: memref<1x512xf32, #tpu.memory_space<vmem>>, %arg9: memref<4x8x128xf32, #tpu.memory_space<vmem>>, %arg10: memref<4x8x128xf32, #tpu.memory_space<vmem>>, %arg11: memref<4x8x512xf32, #tpu.memory_space<vmem>>) attributes {dimension_semantics = [#tpu.dimension_semantics<parallel>, #tpu.dimension_semantics<arbitrary>], iteration_bounds = array<i64: 2, 2>, scalar_prefetch = 0 : i64, scratch_operands = 2 : i64, tpu.core_type = #tpu.core_type<tc>, window_params = [{transform_indices = @transform_0, window_bounds = array<i64: 4, 8, 128>}, {pipeline_mode = #tpu.pipeline_mode<synchronous>, transform_indices = @transform_1, window_bounds = array<i64: 128, 512>}, {pipeline_mode = #tpu.pipeline_mode<synchronous>, transform_indices = @transform_2, window_bounds = array<i64: 128, 512>}, {pipeline_mode = #tpu.pipeline_mode<synchronous>, transform_indices = @transform_3, window_bounds = array<i64: 1, 512>}, {pipeline_mode = #tpu.pipeline_mode<synchronous>, transform_indices = @transform_4, window_bounds = array<i64: 128, 512>}, {pipeline_mode = #tpu.pipeline_mode<synchronous>, transform_indices = @transform_5, window_bounds = array<i64: 128, 512>}, {pipeline_mode = #tpu.pipeline_mode<synchronous>, transform_indices = @transform_6, window_bounds = array<i64: 1, 512>}, {transform_indices = @transform_7, window_bounds = array<i64: 4, 8, 128>}]} {
    %c0_i32 = arith.constant 0 : i32
    %0 = arith.cmpi eq, %arg1, %c0_i32 : i32
    %1 = arith.extui %0 : i1 to i32
    %c0_i32_0 = arith.constant 0 : i32
    %2 = arith.cmpi ne, %1, %c0_i32_0 : i32
    scf.if %2 {
      %cst_92 = arith.constant 0.000000e+00 : f32
      %290 = vector.broadcast %cst_92 : f32 to vector<4x8x128xf32>
      %c0_93 = arith.constant 0 : index
      %c0_94 = arith.constant 0 : index
      %c0_95 = arith.constant 0 : index
      %291 = vector.load %arg10[%c0_93, %c0_94, %c0_95] : memref<4x8x128xf32, #tpu.memory_space<vmem>>, vector<4x8x128xf32>
      tpu.vector_store %arg10[%c0_93, %c0_94, %c0_95], %290 {strides = array<i32>} : memref<4x8x128xf32, #tpu.memory_space<vmem>>, vector<4x8x128xf32>,
    } else {
    }
    %c0 = arith.constant 0 : index
    %c0_1 = arith.constant 0 : index
    %3 = vector.load %arg3[%c0, %c0_1] : memref<128x512xf32, #tpu.memory_space<vmem>>, vector<128x512xf32>
    %c0_2 = arith.constant 0 : index
    %c0_3 = arith.constant 0 : index
    %4 = vector.load %arg4[%c0_2, %c0_3] : memref<128x512xf32, #tpu.memory_space<vmem>>, vector<128x512xf32>
    %c0_4 = arith.constant 0 : index
    %c0_5 = arith.constant 0 : index
    %5 = vector.load %arg6[%c0_4, %c0_5] : memref<128x512xf32, #tpu.memory_space<vmem>>, vector<128x512xf32>
    %c0_6 = arith.constant 0 : index
    %c0_7 = arith.constant 0 : index
    %6 = vector.load %arg7[%c0_6, %c0_7] : memref<128x512xf32, #tpu.memory_space<vmem>>, vector<128x512xf32>
    %c0_8 = arith.constant 0 : index
    %c0_9 = arith.constant 0 : index
    %7 = vector.load %arg8[%c0_8, %c0_9] : memref<1x512xf32, #tpu.memory_space<vmem>>, vector<1x512xf32>
    %8 = vector.shape_cast %7 : vector<1x512xf32> to vector<1x512xf32>
    %9 = vector.broadcast %8 : vector<1x512xf32> to vector<8x512xf32>
    %c0_10 = arith.constant 0 : index
    %c0_11 = arith.constant 0 : index
    %c0_12 = arith.constant 0 : index
    %10 = vector.load %arg2[%c0_10, %c0_11, %c0_12] : memref<4x8x128xf32, #tpu.memory_space<vmem>>, vector<4x8x128xf32>
    %11 = vector.shape_cast %10 : vector<4x8x128xf32> to vector<32x128xf32>
    %cst = arith.constant dense<0.000000e+00> : vector<32x512xf32>
    %12 = tpu.matmul %11, %3, %cst {dimension_numbers = #tpu.dot_dimension_numbers<[1], [0], [0], [1], [0, 0, 1, 1], [], []>} : vector<32x128xf32>, vector<128x512xf32>, vector<32x512xf32> -> vector<32x512xf32>
    %c0_13 = arith.constant 0 : index
    %c0_14 = arith.constant 0 : index
    %13 = vector.load %arg5[%c0_13, %c0_14] : memref<1x512xf32, #tpu.memory_space<vmem>>, vector<1x512xf32>
    %14 = vector.broadcast %13 : vector<1x512xf32> to vector<32x512xf32>
    %15 = arith.addf %12, %14 : vector<32x512xf32>
    %16 = vector.shape_cast %15 : vector<32x512xf32> to vector<4x8x512xf32>
    %c0_15 = arith.constant 0 : index
    %c0_16 = arith.constant 0 : index
    %c0_17 = arith.constant 0 : index
    %17 = vector.load %arg11[%c0_15, %c0_16, %c0_17] : memref<4x8x512xf32, #tpu.memory_space<vmem>>, vector<4x8x512xf32>
    tpu.vector_store %arg11[%c0_15, %c0_16, %c0_17], %16 {strides = array<i32>} : memref<4x8x512xf32, #tpu.memory_space<vmem>>, vector<4x8x512xf32>,
    %c0_18 = arith.constant 0 : index
    %c0_19 = arith.constant 0 : index
    %c0_20 = arith.constant 0 : index
    %18 = vector.load %arg10[%c0_18, %c0_19, %c0_20] : memref<4x8x128xf32, #tpu.memory_space<vmem>>, vector<1x8x128xf32>
    %19 = vector.shape_cast %18 : vector<1x8x128xf32> to vector<8x128xf32>
    %c1 = arith.constant 1 : index
    %c0_21 = arith.constant 0 : index
    %c0_22 = arith.constant 0 : index
    %20 = vector.load %arg10[%c1, %c0_21, %c0_22] : memref<4x8x128xf32, #tpu.memory_space<vmem>>, vector<1x8x128xf32>
    %21 = vector.shape_cast %20 : vector<1x8x128xf32> to vector<8x128xf32>
    %c2 = arith.constant 2 : index
    %c0_23 = arith.constant 0 : index
    %c0_24 = arith.constant 0 : index
    %22 = vector.load %arg10[%c2, %c0_23, %c0_24] : memref<4x8x128xf32, #tpu.memory_space<vmem>>, vector<1x8x128xf32>
    %23 = vector.shape_cast %22 : vector<1x8x128xf32> to vector<8x128xf32>
    %c3 = arith.constant 3 : index
    %c0_25 = arith.constant 0 : index
    %c0_26 = arith.constant 0 : index
    %24 = vector.load %arg10[%c3, %c0_25, %c0_26] : memref<4x8x128xf32, #tpu.memory_space<vmem>>, vector<1x8x128xf32>
    %25 = vector.shape_cast %24 : vector<1x8x128xf32> to vector<8x128xf32>
    %c0_i32_27 = arith.constant 0 : i32
    %26 = arith.index_cast %c0_i32_27 : i32 to index
    %c0_28 = arith.constant 0 : index
    %c0_29 = arith.constant 0 : index
    %27 = vector.load %arg11[%26, %c0_28, %c0_29] : memref<4x8x512xf32, #tpu.memory_space<vmem>>, vector<1x8x512xf32>
    %28 = vector.shape_cast %27 : vector<1x8x512xf32> to vector<8x512xf32>
    %cst_30 = arith.constant dense<0.000000e+00> : vector<8x512xf32>
    %29 = tpu.matmul %19, %4, %cst_30 {dimension_numbers = #tpu.dot_dimension_numbers<[1], [0], [0], [1], [0, 0, 1, 1], [], []>} : vector<8x128xf32>, vector<128x512xf32>, vector<8x512xf32> -> vector<8x512xf32>
    %30 = arith.addf %28, %29 : vector<8x512xf32>
    %31 = vector.extract_strided_slice %30 {offsets = [0, 0], sizes = [8, 128], strides = [1, 1]} : vector<8x512xf32> to vector<8x128xf32>
    %32 = arith.negf %31 : vector<8x128xf32>
    %33 = math.exp %32 : vector<8x128xf32>
    %cst_31 = arith.constant 1.000000e+00 : f32
    %34 = vector.broadcast %cst_31 : f32 to vector<8x128xf32>
    %35 = arith.addf %34, %33 : vector<8x128xf32>
    %36 = arith.divf %34, %35 : vector<8x128xf32>
    %37 = vector.extract_strided_slice %30 {offsets = [0, 128], sizes = [8, 128], strides = [1, 1]} : vector<8x512xf32> to vector<8x128xf32>
    %38 = arith.negf %37 : vector<8x128xf32>
    %39 = math.exp %38 : vector<8x128xf32>
    %cst_32 = arith.constant 1.000000e+00 : f32
    %40 = vector.broadcast %cst_32 : f32 to vector<8x128xf32>
    %41 = arith.addf %40, %39 : vector<8x128xf32>
    %42 = arith.divf %40, %41 : vector<8x128xf32>
    %43 = vector.extract_strided_slice %30 {offsets = [0, 256], sizes = [8, 128], strides = [1, 1]} : vector<8x512xf32> to vector<8x128xf32>
    %44 = math.tanh %43 : vector<8x128xf32>
    %45 = vector.extract_strided_slice %30 {offsets = [0, 384], sizes = [8, 128], strides = [1, 1]} : vector<8x512xf32> to vector<8x128xf32>
    %46 = arith.negf %45 : vector<8x128xf32>
    %47 = math.exp %46 : vector<8x128xf32>
    %cst_33 = arith.constant 1.000000e+00 : f32
    %48 = vector.broadcast %cst_33 : f32 to vector<8x128xf32>
    %49 = arith.addf %48, %47 : vector<8x128xf32>
    %50 = arith.divf %48, %49 : vector<8x128xf32>
    %51 = arith.mulf %42, %21 : vector<8x128xf32>
    %52 = arith.mulf %36, %44 : vector<8x128xf32>
    %53 = arith.addf %51, %52 : vector<8x128xf32>
    %54 = math.tanh %53 : vector<8x128xf32>
    %55 = arith.mulf %50, %54 : vector<8x128xf32>
    %cst_34 = arith.constant dense<0.000000e+00> : vector<8x512xf32>
    %56 = tpu.matmul %55, %5, %cst_34 {dimension_numbers = #tpu.dot_dimension_numbers<[1], [0], [0], [1], [0, 0, 1, 1], [], []>} : vector<8x128xf32>, vector<128x512xf32>, vector<8x512xf32> -> vector<8x512xf32>
    %cst_35 = arith.constant dense<0.000000e+00> : vector<8x512xf32>
    %57 = tpu.matmul %23, %6, %cst_35 {dimension_numbers = #tpu.dot_dimension_numbers<[1], [0], [0], [1], [0, 0, 1, 1], [], []>} : vector<8x128xf32>, vector<128x512xf32>, vector<8x512xf32> -> vector<8x512xf32>
    %58 = arith.addf %56, %57 : vector<8x512xf32>
    %59 = arith.addf %58, %9 : vector<8x512xf32>
    %60 = vector.extract_strided_slice %59 {offsets = [0, 0], sizes = [8, 128], strides = [1, 1]} : vector<8x512xf32> to vector<8x128xf32>
    %61 = arith.negf %60 : vector<8x128xf32>
    %62 = math.exp %61 : vector<8x128xf32>
    %cst_36 = arith.constant 1.000000e+00 : f32
    %63 = vector.broadcast %cst_36 : f32 to vector<8x128xf32>
    %64 = arith.addf %63, %62 : vector<8x128xf32>
    %65 = arith.divf %63, %64 : vector<8x128xf32>
    %66 = vector.extract_strided_slice %59 {offsets = [0, 128], sizes = [8, 128], strides = [1, 1]} : vector<8x512xf32> to vector<8x128xf32>
    %67 = arith.negf %66 : vector<8x128xf32>
    %68 = math.exp %67 : vector<8x128xf32>
    %cst_37 = arith.constant 1.000000e+00 : f32
    %69 = vector.broadcast %cst_37 : f32 to vector<8x128xf32>
    %70 = arith.addf %69, %68 : vector<8x128xf32>
    %71 = arith.divf %69, %70 : vector<8x128xf32>
    %72 = vector.extract_strided_slice %59 {offsets = [0, 256], sizes = [8, 128], strides = [1, 1]} : vector<8x512xf32> to vector<8x128xf32>
    %73 = math.tanh %72 : vector<8x128xf32>
    %74 = vector.extract_strided_slice %59 {offsets = [0, 384], sizes = [8, 128], strides = [1, 1]} : vector<8x512xf32> to vector<8x128xf32>
    %75 = arith.negf %74 : vector<8x128xf32>
    %76 = math.exp %75 : vector<8x128xf32>
    %cst_38 = arith.constant 1.000000e+00 : f32
    %77 = vector.broadcast %cst_38 : f32 to vector<8x128xf32>
    %78 = arith.addf %77, %76 : vector<8x128xf32>
    %79 = arith.divf %77, %78 : vector<8x128xf32>
    %80 = arith.mulf %71, %25 : vector<8x128xf32>
    %81 = arith.mulf %65, %73 : vector<8x128xf32>
    %82 = arith.addf %80, %81 : vector<8x128xf32>
    %83 = math.tanh %82 : vector<8x128xf32>
    %84 = arith.mulf %79, %83 : vector<8x128xf32>
    %85 = arith.index_cast %c0_i32_27 : i32 to index
    %c0_39 = arith.constant 0 : index
    %c0_40 = arith.constant 0 : index
    %86 = vector.load %arg9[%85, %c0_39, %c0_40] : memref<4x8x128xf32, #tpu.memory_space<vmem>>, vector<1x8x128xf32>
    %87 = vector.shape_cast %86 : vector<1x8x128xf32> to vector<8x128xf32>
    %88 = vector.shape_cast %84 : vector<8x128xf32> to vector<1x8x128xf32>
    tpu.vector_store %arg9[%85, %c0_39, %c0_40], %88 {strides = array<i32>} : memref<4x8x128xf32, #tpu.memory_space<vmem>>, vector<1x8x128xf32>,
    %c1_i32 = arith.constant 1 : i32
    %89 = arith.index_cast %c1_i32 : i32 to index
    %c0_41 = arith.constant 0 : index
    %c0_42 = arith.constant 0 : index
    %90 = vector.load %arg11[%89, %c0_41, %c0_42] : memref<4x8x512xf32, #tpu.memory_space<vmem>>, vector<1x8x512xf32>
    %91 = vector.shape_cast %90 : vector<1x8x512xf32> to vector<8x512xf32>
    %cst_43 = arith.constant dense<0.000000e+00> : vector<8x512xf32>
    %92 = tpu.matmul %55, %4, %cst_43 {dimension_numbers = #tpu.dot_dimension_numbers<[1], [0], [0], [1], [0, 0, 1, 1], [], []>} : vector<8x128xf32>, vector<128x512xf32>, vector<8x512xf32> -> vector<8x512xf32>
    %93 = arith.addf %91, %92 : vector<8x512xf32>
    %94 = vector.extract_strided_slice %93 {offsets = [0, 0], sizes = [8, 128], strides = [1, 1]} : vector<8x512xf32> to vector<8x128xf32>
    %95 = arith.negf %94 : vector<8x128xf32>
    %96 = math.exp %95 : vector<8x128xf32>
    %cst_44 = arith.constant 1.000000e+00 : f32
    %97 = vector.broadcast %cst_44 : f32 to vector<8x128xf32>
    %98 = arith.addf %97, %96 : vector<8x128xf32>
    %99 = arith.divf %97, %98 : vector<8x128xf32>
    %100 = vector.extract_strided_slice %93 {offsets = [0, 128], sizes = [8, 128], strides = [1, 1]} : vector<8x512xf32> to vector<8x128xf32>
    %101 = arith.negf %100 : vector<8x128xf32>
    %102 = math.exp %101 : vector<8x128xf32>
    %cst_45 = arith.constant 1.000000e+00 : f32
    %103 = vector.broadcast %cst_45 : f32 to vector<8x128xf32>
    %104 = arith.addf %103, %102 : vector<8x128xf32>
    %105 = arith.divf %103, %104 : vector<8x128xf32>
    %106 = vector.extract_strided_slice %93 {offsets = [0, 256], sizes = [8, 128], strides = [1, 1]} : vector<8x512xf32> to vector<8x128xf32>
    %107 = math.tanh %106 : vector<8x128xf32>
    %108 = vector.extract_strided_slice %93 {offsets = [0, 384], sizes = [8, 128], strides = [1, 1]} : vector<8x512xf32> to vector<8x128xf32>
    %109 = arith.negf %108 : vector<8x128xf32>
    %110 = math.exp %109 : vector<8x128xf32>
    %cst_46 = arith.constant 1.000000e+00 : f32
    %111 = vector.broadcast %cst_46 : f32 to vector<8x128xf32>
    %112 = arith.addf %111, %110 : vector<8x128xf32>
    %113 = arith.divf %111, %112 : vector<8x128xf32>
    %114 = arith.mulf %105, %53 : vector<8x128xf32>
    %115 = arith.mulf %99, %107 : vector<8x128xf32>
    %116 = arith.addf %114, %115 : vector<8x128xf32>
    %117 = math.tanh %116 : vector<8x128xf32>
    %118 = arith.mulf %113, %117 : vector<8x128xf32>
    %cst_47 = arith.constant dense<0.000000e+00> : vector<8x512xf32>
    %119 = tpu.matmul %118, %5, %cst_47 {dimension_numbers = #tpu.dot_dimension_numbers<[1], [0], [0], [1], [0, 0, 1, 1], [], []>} : vector<8x128xf32>, vector<128x512xf32>, vector<8x512xf32> -> vector<8x512xf32>
    %cst_48 = arith.constant dense<0.000000e+00> : vector<8x512xf32>
    %120 = tpu.matmul %84, %6, %cst_48 {dimension_numbers = #tpu.dot_dimension_numbers<[1], [0], [0], [1], [0, 0, 1, 1], [], []>} : vector<8x128xf32>, vector<128x512xf32>, vector<8x512xf32> -> vector<8x512xf32>
    %121 = arith.addf %119, %120 : vector<8x512xf32>
    %122 = arith.addf %121, %9 : vector<8x512xf32>
    %123 = vector.extract_strided_slice %122 {offsets = [0, 0], sizes = [8, 128], strides = [1, 1]} : vector<8x512xf32> to vector<8x128xf32>
    %124 = arith.negf %123 : vector<8x128xf32>
    %125 = math.exp %124 : vector<8x128xf32>
    %cst_49 = arith.constant 1.000000e+00 : f32
    %126 = vector.broadcast %cst_49 : f32 to vector<8x128xf32>
    %127 = arith.addf %126, %125 : vector<8x128xf32>
    %128 = arith.divf %126, %127 : vector<8x128xf32>
    %129 = vector.extract_strided_slice %122 {offsets = [0, 128], sizes = [8, 128], strides = [1, 1]} : vector<8x512xf32> to vector<8x128xf32>
    %130 = arith.negf %129 : vector<8x128xf32>
    %131 = math.exp %130 : vector<8x128xf32>
    %cst_50 = arith.constant 1.000000e+00 : f32
    %132 = vector.broadcast %cst_50 : f32 to vector<8x128xf32>
    %133 = arith.addf %132, %131 : vector<8x128xf32>
    %134 = arith.divf %132, %133 : vector<8x128xf32>
    %135 = vector.extract_strided_slice %122 {offsets = [0, 256], sizes = [8, 128], strides = [1, 1]} : vector<8x512xf32> to vector<8x128xf32>
    %136 = math.tanh %135 : vector<8x128xf32>
    %137 = vector.extract_strided_slice %122 {offsets = [0, 384], sizes = [8, 128], strides = [1, 1]} : vector<8x512xf32> to vector<8x128xf32>
    %138 = arith.negf %137 : vector<8x128xf32>
    %139 = math.exp %138 : vector<8x128xf32>
    %cst_51 = arith.constant 1.000000e+00 : f32
    %140 = vector.broadcast %cst_51 : f32 to vector<8x128xf32>
    %141 = arith.addf %140, %139 : vector<8x128xf32>
    %142 = arith.divf %140, %141 : vector<8x128xf32>
    %143 = arith.mulf %134, %82 : vector<8x128xf32>
    %144 = arith.mulf %128, %136 : vector<8x128xf32>
    %145 = arith.addf %143, %144 : vector<8x128xf32>
    %146 = math.tanh %145 : vector<8x128xf32>
    %147 = arith.mulf %142, %146 : vector<8x128xf32>
    %148 = arith.index_cast %c1_i32 : i32 to index
    %c0_52 = arith.constant 0 : index
    %c0_53 = arith.constant 0 : index
    %149 = vector.load %arg9[%148, %c0_52, %c0_53] : memref<4x8x128xf32, #tpu.memory_space<vmem>>, vector<1x8x128xf32>
    %150 = vector.shape_cast %149 : vector<1x8x128xf32> to vector<8x128xf32>
    %151 = vector.shape_cast %147 : vector<8x128xf32> to vector<1x8x128xf32>
    tpu.vector_store %arg9[%148, %c0_52, %c0_53], %151 {strides = array<i32>} : memref<4x8x128xf32, #tpu.memory_space<vmem>>, vector<1x8x128xf32>,
    %c2_i32 = arith.constant 2 : i32
    %152 = arith.index_cast %c2_i32 : i32 to index
    %c0_54 = arith.constant 0 : index
    %c0_55 = arith.constant 0 : index
    %153 = vector.load %arg11[%152, %c0_54, %c0_55] : memref<4x8x512xf32, #tpu.memory_space<vmem>>, vector<1x8x512xf32>
    %154 = vector.shape_cast %153 : vector<1x8x512xf32> to vector<8x512xf32>
    %cst_56 = arith.constant dense<0.000000e+00> : vector<8x512xf32>
    %155 = tpu.matmul %118, %4, %cst_56 {dimension_numbers = #tpu.dot_dimension_numbers<[1], [0], [0], [1], [0, 0, 1, 1], [], []>} : vector<8x128xf32>, vector<128x512xf32>, vector<8x512xf32> -> vector<8x512xf32>
    %156 = arith.addf %154, %155 : vector<8x512xf32>
    %157 = vector.extract_strided_slice %156 {offsets = [0, 0], sizes = [8, 128], strides = [1, 1]} : vector<8x512xf32> to vector<8x128xf32>
    %158 = arith.negf %157 : vector<8x128xf32>
    %159 = math.exp %158 : vector<8x128xf32>
    %cst_57 = arith.constant 1.000000e+00 : f32
    %160 = vector.broadcast %cst_57 : f32 to vector<8x128xf32>
    %161 = arith.addf %160, %159 : vector<8x128xf32>
    %162 = arith.divf %160, %161 : vector<8x128xf32>
    %163 = vector.extract_strided_slice %156 {offsets = [0, 128], sizes = [8, 128], strides = [1, 1]} : vector<8x512xf32> to vector<8x128xf32>
    %164 = arith.negf %163 : vector<8x128xf32>
    %165 = math.exp %164 : vector<8x128xf32>
    %cst_58 = arith.constant 1.000000e+00 : f32
    %166 = vector.broadcast %cst_58 : f32 to vector<8x128xf32>
    %167 = arith.addf %166, %165 : vector<8x128xf32>
    %168 = arith.divf %166, %167 : vector<8x128xf32>
    %169 = vector.extract_strided_slice %156 {offsets = [0, 256], sizes = [8, 128], strides = [1, 1]} : vector<8x512xf32> to vector<8x128xf32>
    %170 = math.tanh %169 : vector<8x128xf32>
    %171 = vector.extract_strided_slice %156 {offsets = [0, 384], sizes = [8, 128], strides = [1, 1]} : vector<8x512xf32> to vector<8x128xf32>
    %172 = arith.negf %171 : vector<8x128xf32>
    %173 = math.exp %172 : vector<8x128xf32>
    %cst_59 = arith.constant 1.000000e+00 : f32
    %174 = vector.broadcast %cst_59 : f32 to vector<8x128xf32>
    %175 = arith.addf %174, %173 : vector<8x128xf32>
    %176 = arith.divf %174, %175 : vector<8x128xf32>
    %177 = arith.mulf %168, %116 : vector<8x128xf32>
    %178 = arith.mulf %162, %170 : vector<8x128xf32>
    %179 = arith.addf %177, %178 : vector<8x128xf32>
    %180 = math.tanh %179 : vector<8x128xf32>
    %181 = arith.mulf %176, %180 : vector<8x128xf32>
    %cst_60 = arith.constant dense<0.000000e+00> : vector<8x512xf32>
    %182 = tpu.matmul %181, %5, %cst_60 {dimension_numbers = #tpu.dot_dimension_numbers<[1], [0], [0], [1], [0, 0, 1, 1], [], []>} : vector<8x128xf32>, vector<128x512xf32>, vector<8x512xf32> -> vector<8x512xf32>
    %cst_61 = arith.constant dense<0.000000e+00> : vector<8x512xf32>
    %183 = tpu.matmul %147, %6, %cst_61 {dimension_numbers = #tpu.dot_dimension_numbers<[1], [0], [0], [1], [0, 0, 1, 1], [], []>} : vector<8x128xf32>, vector<128x512xf32>, vector<8x512xf32> -> vector<8x512xf32>
    %184 = arith.addf %182, %183 : vector<8x512xf32>
    %185 = arith.addf %184, %9 : vector<8x512xf32>
    %186 = vector.extract_strided_slice %185 {offsets = [0, 0], sizes = [8, 128], strides = [1, 1]} : vector<8x512xf32> to vector<8x128xf32>
    %187 = arith.negf %186 : vector<8x128xf32>
    %188 = math.exp %187 : vector<8x128xf32>
    %cst_62 = arith.constant 1.000000e+00 : f32
    %189 = vector.broadcast %cst_62 : f32 to vector<8x128xf32>
    %190 = arith.addf %189, %188 : vector<8x128xf32>
    %191 = arith.divf %189, %190 : vector<8x128xf32>
    %192 = vector.extract_strided_slice %185 {offsets = [0, 128], sizes = [8, 128], strides = [1, 1]} : vector<8x512xf32> to vector<8x128xf32>
    %193 = arith.negf %192 : vector<8x128xf32>
    %194 = math.exp %193 : vector<8x128xf32>
    %cst_63 = arith.constant 1.000000e+00 : f32
    %195 = vector.broadcast %cst_63 : f32 to vector<8x128xf32>
    %196 = arith.addf %195, %194 : vector<8x128xf32>
    %197 = arith.divf %195, %196 : vector<8x128xf32>
    %198 = vector.extract_strided_slice %185 {offsets = [0, 256], sizes = [8, 128], strides = [1, 1]} : vector<8x512xf32> to vector<8x128xf32>
    %199 = math.tanh %198 : vector<8x128xf32>
    %200 = vector.extract_strided_slice %185 {offsets = [0, 384], sizes = [8, 128], strides = [1, 1]} : vector<8x512xf32> to vector<8x128xf32>
    %201 = arith.negf %200 : vector<8x128xf32>
    %202 = math.exp %201 : vector<8x128xf32>
    %cst_64 = arith.constant 1.000000e+00 : f32
    %203 = vector.broadcast %cst_64 : f32 to vector<8x128xf32>
    %204 = arith.addf %203, %202 : vector<8x128xf32>
    %205 = arith.divf %203, %204 : vector<8x128xf32>
    %206 = arith.mulf %197, %145 : vector<8x128xf32>
    %207 = arith.mulf %191, %199 : vector<8x128xf32>
    %208 = arith.addf %206, %207 : vector<8x128xf32>
    %209 = math.tanh %208 : vector<8x128xf32>
    %210 = arith.mulf %205, %209 : vector<8x128xf32>
    %211 = arith.index_cast %c2_i32 : i32 to index
    %c0_65 = arith.constant 0 : index
    %c0_66 = arith.constant 0 : index
    %212 = vector.load %arg9[%211, %c0_65, %c0_66] : memref<4x8x128xf32, #tpu.memory_space<vmem>>, vector<1x8x128xf32>
    %213 = vector.shape_cast %212 : vector<1x8x128xf32> to vector<8x128xf32>
    %214 = vector.shape_cast %210 : vector<8x128xf32> to vector<1x8x128xf32>
    tpu.vector_store %arg9[%211, %c0_65, %c0_66], %214 {strides = array<i32>} : memref<4x8x128xf32, #tpu.memory_space<vmem>>, vector<1x8x128xf32>,
    %c3_i32 = arith.constant 3 : i32
    %215 = arith.index_cast %c3_i32 : i32 to index
    %c0_67 = arith.constant 0 : index
    %c0_68 = arith.constant 0 : index
    %216 = vector.load %arg11[%215, %c0_67, %c0_68] : memref<4x8x512xf32, #tpu.memory_space<vmem>>, vector<1x8x512xf32>
    %217 = vector.shape_cast %216 : vector<1x8x512xf32> to vector<8x512xf32>
    %cst_69 = arith.constant dense<0.000000e+00> : vector<8x512xf32>
    %218 = tpu.matmul %181, %4, %cst_69 {dimension_numbers = #tpu.dot_dimension_numbers<[1], [0], [0], [1], [0, 0, 1, 1], [], []>} : vector<8x128xf32>, vector<128x512xf32>, vector<8x512xf32> -> vector<8x512xf32>
    %219 = arith.addf %217, %218 : vector<8x512xf32>
    %220 = vector.extract_strided_slice %219 {offsets = [0, 0], sizes = [8, 128], strides = [1, 1]} : vector<8x512xf32> to vector<8x128xf32>
    %221 = arith.negf %220 : vector<8x128xf32>
    %222 = math.exp %221 : vector<8x128xf32>
    %cst_70 = arith.constant 1.000000e+00 : f32
    %223 = vector.broadcast %cst_70 : f32 to vector<8x128xf32>
    %224 = arith.addf %223, %222 : vector<8x128xf32>
    %225 = arith.divf %223, %224 : vector<8x128xf32>
    %226 = vector.extract_strided_slice %219 {offsets = [0, 128], sizes = [8, 128], strides = [1, 1]} : vector<8x512xf32> to vector<8x128xf32>
    %227 = arith.negf %226 : vector<8x128xf32>
    %228 = math.exp %227 : vector<8x128xf32>
    %cst_71 = arith.constant 1.000000e+00 : f32
    %229 = vector.broadcast %cst_71 : f32 to vector<8x128xf32>
    %230 = arith.addf %229, %228 : vector<8x128xf32>
    %231 = arith.divf %229, %230 : vector<8x128xf32>
    %232 = vector.extract_strided_slice %219 {offsets = [0, 256], sizes = [8, 128], strides = [1, 1]} : vector<8x512xf32> to vector<8x128xf32>
    %233 = math.tanh %232 : vector<8x128xf32>
    %234 = vector.extract_strided_slice %219 {offsets = [0, 384], sizes = [8, 128], strides = [1, 1]} : vector<8x512xf32> to vector<8x128xf32>
    %235 = arith.negf %234 : vector<8x128xf32>
    %236 = math.exp %235 : vector<8x128xf32>
    %cst_72 = arith.constant 1.000000e+00 : f32
    %237 = vector.broadcast %cst_72 : f32 to vector<8x128xf32>
    %238 = arith.addf %237, %236 : vector<8x128xf32>
    %239 = arith.divf %237, %238 : vector<8x128xf32>
    %240 = arith.mulf %231, %179 : vector<8x128xf32>
    %241 = arith.mulf %225, %233 : vector<8x128xf32>
    %242 = arith.addf %240, %241 : vector<8x128xf32>
    %243 = math.tanh %242 : vector<8x128xf32>
    %244 = arith.mulf %239, %243 : vector<8x128xf32>
    %cst_73 = arith.constant dense<0.000000e+00> : vector<8x512xf32>
    %245 = tpu.matmul %244, %5, %cst_73 {dimension_numbers = #tpu.dot_dimension_numbers<[1], [0], [0], [1], [0, 0, 1, 1], [], []>} : vector<8x128xf32>, vector<128x512xf32>, vector<8x512xf32> -> vector<8x512xf32>
    %cst_74 = arith.constant dense<0.000000e+00> : vector<8x512xf32>
    %246 = tpu.matmul %210, %6, %cst_74 {dimension_numbers = #tpu.dot_dimension_numbers<[1], [0], [0], [1], [0, 0, 1, 1], [], []>} : vector<8x128xf32>, vector<128x512xf32>, vector<8x512xf32> -> vector<8x512xf32>
    %247 = arith.addf %245, %246 : vector<8x512xf32>
    %248 = arith.addf %247, %9 : vector<8x512xf32>
    %249 = vector.extract_strided_slice %248 {offsets = [0, 0], sizes = [8, 128], strides = [1, 1]} : vector<8x512xf32> to vector<8x128xf32>
    %250 = arith.negf %249 : vector<8x128xf32>
    %251 = math.exp %250 : vector<8x128xf32>
    %cst_75 = arith.constant 1.000000e+00 : f32
    %252 = vector.broadcast %cst_75 : f32 to vector<8x128xf32>
    %253 = arith.addf %252, %251 : vector<8x128xf32>
    %254 = arith.divf %252, %253 : vector<8x128xf32>
    %255 = vector.extract_strided_slice %248 {offsets = [0, 128], sizes = [8, 128], strides = [1, 1]} : vector<8x512xf32> to vector<8x128xf32>
    %256 = arith.negf %255 : vector<8x128xf32>
    %257 = math.exp %256 : vector<8x128xf32>
    %cst_76 = arith.constant 1.000000e+00 : f32
    %258 = vector.broadcast %cst_76 : f32 to vector<8x128xf32>
    %259 = arith.addf %258, %257 : vector<8x128xf32>
    %260 = arith.divf %258, %259 : vector<8x128xf32>
    %261 = vector.extract_strided_slice %248 {offsets = [0, 256], sizes = [8, 128], strides = [1, 1]} : vector<8x512xf32> to vector<8x128xf32>
    %262 = math.tanh %261 : vector<8x128xf32>
    %263 = vector.extract_strided_slice %248 {offsets = [0, 384], sizes = [8, 128], strides = [1, 1]} : vector<8x512xf32> to vector<8x128xf32>
    %264 = arith.negf %263 : vector<8x128xf32>
    %265 = math.exp %264 : vector<8x128xf32>
    %cst_77 = arith.constant 1.000000e+00 : f32
    %266 = vector.broadcast %cst_77 : f32 to vector<8x128xf32>
    %267 = arith.addf %266, %265 : vector<8x128xf32>
    %268 = arith.divf %266, %267 : vector<8x128xf32>
    %269 = arith.mulf %260, %208 : vector<8x128xf32>
    %270 = arith.mulf %254, %262 : vector<8x128xf32>
    %271 = arith.addf %269, %270 : vector<8x128xf32>
    %272 = math.tanh %271 : vector<8x128xf32>
    %273 = arith.mulf %268, %272 : vector<8x128xf32>
    %274 = arith.index_cast %c3_i32 : i32 to index
    %c0_78 = arith.constant 0 : index
    %c0_79 = arith.constant 0 : index
    %275 = vector.load %arg9[%274, %c0_78, %c0_79] : memref<4x8x128xf32, #tpu.memory_space<vmem>>, vector<1x8x128xf32>
    %276 = vector.shape_cast %275 : vector<1x8x128xf32> to vector<8x128xf32>
    %277 = vector.shape_cast %273 : vector<8x128xf32> to vector<1x8x128xf32>
    tpu.vector_store %arg9[%274, %c0_78, %c0_79], %277 {strides = array<i32>} : memref<4x8x128xf32, #tpu.memory_space<vmem>>, vector<1x8x128xf32>,
    %c4_i32 = arith.constant 4 : i32
    %c0_80 = arith.constant 0 : index
    %c0_81 = arith.constant 0 : index
    %c0_82 = arith.constant 0 : index
    %278 = vector.load %arg10[%c0_80, %c0_81, %c0_82] : memref<4x8x128xf32, #tpu.memory_space<vmem>>, vector<1x8x128xf32>
    %279 = vector.shape_cast %278 : vector<1x8x128xf32> to vector<8x128xf32>
    %280 = vector.shape_cast %244 : vector<8x128xf32> to vector<1x8x128xf32>
    tpu.vector_store %arg10[%c0_80, %c0_81, %c0_82], %280 {strides = array<i32>} : memref<4x8x128xf32, #tpu.memory_space<vmem>>, vector<1x8x128xf32>,
    %c1_83 = arith.constant 1 : index
    %c0_84 = arith.constant 0 : index
    %c0_85 = arith.constant 0 : index
    %281 = vector.load %arg10[%c1_83, %c0_84, %c0_85] : memref<4x8x128xf32, #tpu.memory_space<vmem>>, vector<1x8x128xf32>
    %282 = vector.shape_cast %281 : vector<1x8x128xf32> to vector<8x128xf32>
    %283 = vector.shape_cast %242 : vector<8x128xf32> to vector<1x8x128xf32>
    tpu.vector_store %arg10[%c1_83, %c0_84, %c0_85], %283 {strides = array<i32>} : memref<4x8x128xf32, #tpu.memory_space<vmem>>, vector<1x8x128xf32>,
    %c2_86 = arith.constant 2 : index
    %c0_87 = arith.constant 0 : index
    %c0_88 = arith.constant 0 : index
    %284 = vector.load %arg10[%c2_86, %c0_87, %c0_88] : memref<4x8x128xf32, #tpu.memory_space<vmem>>, vector<1x8x128xf32>
    %285 = vector.shape_cast %284 : vector<1x8x128xf32> to vector<8x128xf32>
    %286 = vector.shape_cast %273 : vector<8x128xf32> to vector<1x8x128xf32>
    tpu.vector_store %arg10[%c2_86, %c0_87, %c0_88], %286 {strides = array<i32>} : memref<4x8x128xf32, #tpu.memory_space<vmem>>, vector<1x8x128xf32>,
    %c3_89 = arith.constant 3 : index
    %c0_90 = arith.constant 0 : index
    %c0_91 = arith.constant 0 : index
    %287 = vector.load %arg10[%c3_89, %c0_90, %c0_91] : memref<4x8x128xf32, #tpu.memory_space<vmem>>, vector<1x8x128xf32>
    %288 = vector.shape_cast %287 : vector<1x8x128xf32> to vector<8x128xf32>
    %289 = vector.shape_cast %271 : vector<8x128xf32> to vector<1x8x128xf32>
    tpu.vector_store %arg10[%c3_89, %c0_90, %c0_91], %289 {strides = array<i32>} : memref<4x8x128xf32, #tpu.memory_space<vmem>>, vector<1x8x128xf32>,
    return
  }
  func.func @transform_0(%arg0: i32, %arg1: i32) -> (i32, i32, i32) {
    %c0_i32 = arith.constant 0 : i32
    %c0_i32_0 = arith.constant 0 : i32
    return %arg1, %arg0, %c0_i32 : i32, i32, i32
  }
  func.func @transform_1(%arg0: i32, %arg1: i32) -> (i32, i32) {
    %c0_i32 = arith.constant 0 : i32
    %c0_i32_0 = arith.constant 0 : i32
    %c0_i32_1 = arith.constant 0 : i32
    return %c0_i32, %c0_i32_0 : i32, i32
  }
  func.func @transform_2(%arg0: i32, %arg1: i32) -> (i32, i32) {
    %c0_i32 = arith.constant 0 : i32
    %c0_i32_0 = arith.constant 0 : i32
    %c0_i32_1 = arith.constant 0 : i32
    return %c0_i32, %c0_i32_0 : i32, i32
  }
  func.func @transform_3(%arg0: i32, %arg1: i32) -> (i32, i32) {
    %c0_i32 = arith.constant 0 : i32
    %c0_i32_0 = arith.constant 0 : i32
    %c0_i32_1 = arith.constant 0 : i32
    return %c0_i32, %c0_i32_0 : i32, i32
  }
  func.func @transform_4(%arg0: i32, %arg1: i32) -> (i32, i32) {
    %c0_i32 = arith.constant 0 : i32
    %c0_i32_0 = arith.constant 0 : i32
    %c0_i32_1 = arith.constant 0 : i32
    return %c0_i32, %c0_i32_0 : i32, i32
  }
  func.func @transform_5(%arg0: i32, %arg1: i32) -> (i32, i32) {
    %c0_i32 = arith.constant 0 : i32
    %c0_i32_0 = arith.constant 0 : i32
    %c0_i32_1 = arith.constant 0 : i32
    return %c0_i32, %c0_i32_0 : i32, i32
  }
  func.func @transform_6(%arg0: i32, %arg1: i32) -> (i32, i32) {
    %c0_i32 = arith.constant 0 : i32
    %c0_i32_0 = arith.constant 0 : i32
    %c0_i32_1 = arith.constant 0 : i32
    return %c0_i32, %c0_i32_0 : i32, i32
  }
  func.func @transform_7(%arg0: i32, %arg1: i32) -> (i32, i32, i32) {
    %c0_i32 = arith.constant 0 : i32
    %c0_i32_0 = arith.constant 0 : i32
    return %arg1, %arg0, %c0_i32 : i32, i32, i32
  }
}

</mosaic_0001>

<bundles_post_ra>
// kernel: decoder_rnn_forward.3
= control target key start
LH: loop header
LB: loop body
LE: loop exit
PB: predicated region body
PF: predicated region fallthrough
CT: control target
= control target key end

     0   :  { %8 = vsyncpa [#allocation4], 0  ;;  %s995_s0 = inlined_call_operand.vmem [shape: f32[16,8,128], index: 0, kind: input, shape index: {}]   ;;  %s996_s1 = inlined_call_operand.vmem [shape: f32[128,256], index: 1, kind: input, shape index: {}]   ;;  %s997_s2 = inlined_call_operand.vmem [shape: f32[1,256], index: 2, kind: input, shape index: {}]   ;;  %s998_s3 = inlined_call_operand.hbm [shape: f32[16,8,256], index: 3, kind: output, shape index: {}]  }
   0x1   :  { %10 = vsyncpa [#allocation4 + $0x1], 0  ;;  %s769_s12 = smov 0   ;;  %s771_s13 = smov 0  }
   0x2   :  { %s773_s14 = smov 0   ;;  %s775_s15 = smov 0  }
   0x3   :  { %s777_s16 = smov 0   ;;  %s779_s17 = smov 0  }
   0x4 LB: > { %s545_s18 = sadd.s32 4294967295, %s744_s17   ;;  %s546_s19 = sadd.s32 4294967294, %s744_s17   ;;  %s744_s17 = sphi %s779_s17, %s16_s17   ;;  %s740_s16 = sphi %s777_s16, %s1005_s16   ;;  %s736_s15 = sphi %s775_s15, %s1004_s15   ;;  %s732_s14 = sphi %s773_s14, %s1003_s14   ;;  %s728_s13 = sphi %s771_s13, %s1002_s13   ;;  %s724_s12 = sphi %s769_s12, %s1001_s12  }
   0x5   : > { %s28_s20 = sadd.s32 1, %s740_s16  ;;  %s61_s21 = sadd.s32 1, %s732_s14 }
   0x6   : > { %p30_p0 = scmp.ge.s32.totalorder %s28_s20, 2  ;;  %p68_p1 = scmp.ne.s32.totalorder %s732_s14, %s728_s13 }
   0x7   : > { %p69_p2 = scmp.eq.s32.totalorder %s744_s17, 0  ;;  %p126_p3 = scmp.eq.s32.totalorder %s545_s18, 1 }
   0x8   : > { %s1007_s20 = smov (%p30_p0, %s28_s20), 0  ;;  %p131_p6 = scmp.ne.s32.totalorder %s728_s13, %s724_s12 }
   0x9   : > { %p70_p4 = por %p69_p2, %p68_p1  ;;  %p808_p5 = por %p126_p3, %p68_p1 }
   0xa   : > { %s58_s23 = ssub.s32 %s740_s16, %s1007_s20  ;;  %p132_p8 = scmp.eq.s32.totalorder %s546_s19, 1 }
   0xb   : > { %p59_p7 = scmp.eq.s32.totalorder %s58_s23, 0  ;;  %p549_p10 = scmp.ge.s32.totalorder %s744_s17, 2 }
   0xc   : > { %p819_p9 = por %p132_p8, %p131_p6 }
   0xd   : > { %s817_s24 = scalar_select %p59_p7, %s732_s14, %s61_s21  }
   0xe   : > { %155 = sbr.rel (%p549_p10) target bundleno = 39 (0x27), region = 20 }
  0x13   : > { %158 = sbr.rel (!%p70_p4) target bundleno = 39 (0x27), region = 24  ;;  %s160_s26 = sand.u32 (%p70_p4), 1, %s732_s14  }
  0x14   : > { %s551_s27 = sshll.u32 (%p70_p4), %s740_s16, 3  ;;  %s550_s28 = sshll.u32 (%p70_p4), %s160_s26, 7 }
  0x15   : > { %s831_s4 = scalar_lea.vmem (%p70_p4), %s996_s1, %s551_s27  ;;  %s162_s5 = scalar_lea.vmem (%p70_p4), [#allocation2], %s550_s28 }
  0x16   : > { %v223_v0 = vld [vmem:[%s831_s4] sm:$0xff] (%p70_p4)  ;;  %v225_v1 = vld [vmem:[%s831_s4 + $0x10] sm:$0xff] (%p70_p4) }
  0x17   : > { %v227_v2 = vld [vmem:[%s831_s4 + $0x20] sm:$0xff] (%p70_p4)  ;;  %224 = vst [vmem:[%s162_s5] sm:$0xff] (%p70_p4), %v223_v0  ;;  %v229_v3 = vld [vmem:[%s831_s4 + $0x30] sm:$0xff] (%p70_p4) }
  0x18   : > { %226 = vst [vmem:[%s162_s5 + $0x8] sm:$0xff] %v225_v1  ;;  %v231_v4 = vld [vmem:[%s831_s4 + $0x40] sm:$0xff]  ;;  %v233_v5 = vld [vmem:[%s831_s4 + $0x50] sm:$0xff] }
  0x19   : > { %228 = vst [vmem:[%s162_s5 + $0x10] sm:$0xff] %v227_v2  ;;  %v235_v6 = vld [vmem:[%s831_s4 + $0x60] sm:$0xff]  ;;  %v237_v7 = vld [vmem:[%s831_s4 + $0x70] sm:$0xff] }
  0x1a   : > { %230 = vst [vmem:[%s162_s5 + $0x18] sm:$0xff] %v229_v3  ;;  %v239_v8 = vld [vmem:[%s831_s4 + $0x80] sm:$0xff]  ;;  %v241_v9 = vld [vmem:[%s831_s4 + $0x90] sm:$0xff] }
  0x1b   : > { %232 = vst [vmem:[%s162_s5 + $0x20] sm:$0xff] %v231_v4  ;;  %v243_v10 = vld [vmem:[%s831_s4 + $0xa0] sm:$0xff]  ;;  %v245_v11 = vld [vmem:[%s831_s4 + $0xb0] sm:$0xff] }
  0x1c   : > { %234 = vst [vmem:[%s162_s5 + $0x28] sm:$0xff] %v233_v5  ;;  %v247_v12 = vld [vmem:[%s831_s4 + $0xc0] sm:$0xff]  ;;  %v249_v13 = vld [vmem:[%s831_s4 + $0xd0] sm:$0xff] }
  0x1d   : > { %236 = vst [vmem:[%s162_s5 + $0x30] sm:$0xff] %v235_v6  ;;  %v251_v14 = vld [vmem:[%s831_s4 + $0xe0] sm:$0xff]  ;;  %v253_v15 = vld [vmem:[%s831_s4 + $0xf0] sm:$0xff] }
  0x1e   : > { %238 = vst [vmem:[%s162_s5 + $0x38] sm:$0xff] %v237_v7 }
  0x1f   : > { %240 = vst [vmem:[%s162_s5 + $0x40] sm:$0xff] %v239_v8 }
  0x20   : > { %242 = vst [vmem:[%s162_s5 + $0x48] sm:$0xff] %v241_v9 }
  0x21   : > { %244 = vst [vmem:[%s162_s5 + $0x50] sm:$0xff] %v243_v10 }
  0x22   : > { %246 = vst [vmem:[%s162_s5 + $0x58] sm:$0xff] %v245_v11 }
  0x23   : > { %248 = vst [vmem:[%s162_s5 + $0x60] sm:$0xff] %v247_v12 }
  0x24   : > { %250 = vst [vmem:[%s162_s5 + $0x68] sm:$0xff] %v249_v13 }
  0x25   : > { %252 = vst [vmem:[%s162_s5 + $0x70] sm:$0xff] %v251_v14 }
  0x26   : > { %254 = vst [vmem:[%s162_s5 + $0x78] sm:$0xff] %v253_v15 }
  0x27 PF: > { %p552_p11 = scmp.ge.s32.totalorder %s744_s17, 1  ;;  %p265_p12 = scmp.lt.s32.totalorder %s744_s17, 3 }
  0x29   : > { %p266_p13 = pnand %p552_p11, %p265_p12 }
  0x2a   : > { %s272_s6 = sand.u32 (!%p266_p13), 1, %s728_s13   ;;  %p306_p0 = scmp.lt.s32.totalorder (!%p266_p13), %s736_s15, 1 }
  0x2b   : > { %269 = sbr.rel (%p266_p13) target bundleno = 244 (0xf4), region = 66  ;;  %s855_s7 = sshll.u32 (!%p266_p13), %s272_s6, 7 }
  0x2c   : > { %s858_s8 = scalar_lea.vmem (!%p266_p13), [#allocation2], %s855_s7  ;;  %s937_s4 = scalar_lea.vmem (!%p266_p13), [#allocation3], %s855_s7 }
  0x2d   : > { %s556_s7 = sshll.u32 (!%p266_p13), %s736_s15, 3  ;;  %s686_s26 = scalar_lea.hbm (!%p266_p13), %s998_s3, 256 }
  0x2e   : > { %s439_s5 = scalar_lea.hbm (!%p266_p13), %s998_s3, %s556_s7 }
  0x2f   : > { %s442_s10 = sshll.u32 (!%p266_p13), %s439_s5, 4  ;;  %s443_s10 = int_to_ptr.hbm [resolvable:$true] %s442_s10 }
  0x30   : > { %v324_v16 = vld [vmem:[%s858_s8 + $0x78] sm:$0xff]  ;;  %v323_v17 = vld [vmem:[%s858_s8 + $0x70] sm:$0xff]  ;;  %s863_s9 = scalar_select %p306_p0, %s736_s15, 1  ;;  %v322_v18 = vld [vmem:[%s858_s8 + $0x68] sm:$0xff] }
  0x31   : > { %560 = vmatpush.msra.mxu2 %v324_v16  ;;  %561 = vmatpush.msra.mxu3 %v324_v16  ;;  %v321_v19 = vld [vmem:[%s858_s8 + $0x60] sm:$0xff]  ;;  %v320_v20 = vld [vmem:[%s858_s8 + $0x58] sm:$0xff]  ;;  %v319_v21 = vld [vmem:[%s858_s8 + $0x50] sm:$0xff]  ;;  %s427_s15 = scalar_lea.sflag [#allocation4], %s272_s6  ;;  %s680_s11 = sshra.s32 %s443_s10, 4  ;;  %s681_s11 = int_to_ptr.hbm [resolvable:$true] %s680_s11 }
  0x32   : > { %345 = vmatpush.msra.mxu0 %v324_v16  ;;  %559 = vmatpush.msra.mxu1 %v324_v16  ;;  %s308_s18 = scalar_lea.vmem %s997_s2, %s863_s9  ;;  %v318_v22 = vld [vmem:[%s858_s8 + $0x48] sm:$0xff]  ;;  %v317_v23 = vld [vmem:[%s858_s8 + $0x40] sm:$0xff]  ;;  %v316_v24 = vld [vmem:[%s858_s8 + $0x38] sm:$0xff]  ;;  %s682_s19 = scalar_lea.hbm %s681_s11, 128 }
  0x33   : > { %563 = vmatpush.msra.mxu2 %v323_v17  ;;  %564 = vmatpush.msra.mxu3 %v323_v17  ;;  %v315_v25 = vld [vmem:[%s858_s8 + $0x30] sm:$0xff]  ;;  %v314_v26 = vld [vmem:[%s858_s8 + $0x28] sm:$0xff]  ;;  %v313_v27 = vld [vmem:[%s858_s8 + $0x20] sm:$0xff]  ;;  %p683_p1 = scmp.ne.s32.totalorder %s681_s11, %s682_s19  ;;  %p687_p4 = scmp.lt.s32.totalorder %s681_s11, %s998_s3 }
  0x34   : > { %346 = vmatpush.msra.mxu0 %v323_v17  ;;  %562 = vmatpush.msra.mxu1 %v323_v17  ;;  %v312_v28 = vld [vmem:[%s858_s8 + $0x18] sm:$0xff]  ;;  %v311_v29 = vld [vmem:[%s858_s8 + $0x10] sm:$0xff]  ;;  %v310_v30 = vld [vmem:[%s858_s8 + $0x8] sm:$0xff]  ;;  %p688_p6 = scmp.lt.s32.totalorder %s686_s26, %s682_s19 }
  0x35   : > { %566 = vmatpush.msra.mxu2 %v322_v18  ;;  %567 = vmatpush.msra.mxu3 %v322_v18  ;;  %v309_v31 = vld [vmem:[%s858_s8] sm:$0xff]  ;;  %v334_v36 = vld [vmem:[%s995_s0 + $0x48] sm:$0xff]  ;;  %v335_v40 = vld [vmem:[%s995_s0 + $0x50] sm:$0xff]  ;;  %s440_s8 = sshll.u32 %s937_s4, 4  ;;  %p684_p2 = pnand %p683_p1, %p808_p5  ;;  %s441_s8 = int_to_ptr.vmem [resolvable:$true] %s440_s8 }
  0x36   : > { %347 = vmatpush.msra.mxu0 %v322_v18  ;;  %565 = vmatpush.msra.mxu1 %v322_v18  ;;  %v333_v32 = vld [vmem:[%s995_s0 + $0x40] sm:$0xff]  ;;  %v338_v37 = vld [vmem:[%s995_s0 + $0x68] sm:$0xff]  ;;  %v339_v41 = vld [vmem:[%s995_s0 + $0x70] sm:$0xff]  ;;  %p689_p7 = por %p688_p6, %p687_p4 }
  0x37   : > { %569 = vmatpush.msra.mxu2 %v321_v19  ;;  %570 = vmatpush.msra.mxu3 %v321_v19  ;;  %v337_v33 = vld [vmem:[%s995_s0 + $0x60] sm:$0xff]  ;;  %v326_v38 = vld [vmem:[%s995_s0 + $0x8] sm:$0xff]  ;;  %v327_v42 = vld [vmem:[%s995_s0 + $0x10] sm:$0xff]  ;;  %p685_p3 = pneg %p684_p2 }
  0x38   : > { %348 = vmatpush.msra.mxu0 %v321_v19  ;;  %568 = vmatpush.msra.mxu1 %v321_v19  ;;  %v325_v34 = vld [vmem:[%s995_s0] sm:$0xff]  ;;  %v330_v39 = vld [vmem:[%s995_s0 + $0x28] sm:$0xff]  ;;  %v331_v43 = vld [vmem:[%s995_s0 + $0x30] sm:$0xff] }
  0x39   : > { %572 = vmatpush.msra.mxu2 %v320_v20  ;;  %573 = vmatpush.msra.mxu3 %v320_v20  ;;  %v329_v35 = vld [vmem:[%s995_s0 + $0x20] sm:$0xff]  ;;  %v336_v44 = vld [vmem:[%s995_s0 + $0x58] sm:$0xff]  ;;  %p690_p8 = pnand %p689_p7, %p685_p3 }
  0x3a   : > { %349 = vmatpush.msra.mxu0 %v320_v20  ;;  %571 = vmatpush.msra.mxu1 %v320_v20  ;;  %v340_v45 = vld [vmem:[%s995_s0 + $0x78] sm:$0xff]  ;;  %v665_v48 = vld [vmem:[%s308_s18] ss:$0 sm:$0xff] }
  0x3b   : > { %575 = vmatpush.msra.mxu2 %v319_v21  ;;  %576 = vmatpush.msra.mxu3 %v319_v21  ;;  %v328_v46 = vld [vmem:[%s995_s0 + $0x18] sm:$0xff] }
  0x3c   : > { %350 = vmatpush.msra.mxu0 %v319_v21  ;;  %574 = vmatpush.msra.mxu1 %v319_v21  ;;  %v332_v47 = vld [vmem:[%s995_s0 + $0x38] sm:$0xff] }
  0x3d   : > { %578 = vmatpush.msra.mxu2 %v318_v22  ;;  %579 = vmatpush.msra.mxu3 %v318_v22 }
  0x3e   : > { %351 = vmatpush.msra.mxu0 %v318_v22  ;;  %577 = vmatpush.msra.mxu1 %v318_v22 }
  0x3f   : > { %581 = vmatpush.msra.mxu2 %v317_v23  ;;  %582 = vmatpush.msra.mxu3 %v317_v23 }
  0x40   : > { %352 = vmatpush.msra.mxu0 %v317_v23  ;;  %580 = vmatpush.msra.mxu1 %v317_v23 }
  0x41   : > { %584 = vmatpush.msra.mxu2 %v316_v24  ;;  %585 = vmatpush.msra.mxu3 %v316_v24 }
  0x42   : > { %353 = vmatpush.msra.mxu0 %v316_v24  ;;  %583 = vmatpush.msra.mxu1 %v316_v24 }
  0x43   : > { %587 = vmatpush.msra.mxu2 %v315_v25  ;;  %588 = vmatpush.msra.mxu3 %v315_v25 }
  0x44   : > { %354 = vmatpush.msra.mxu0 %v315_v25  ;;  %586 = vmatpush.msra.mxu1 %v315_v25 }
  0x45   : > { %590 = vmatpush.msra.mxu2 %v314_v26  ;;  %591 = vmatpush.msra.mxu3 %v314_v26 }
  0x46   : > { %355 = vmatpush.msra.mxu0 %v314_v26  ;;  %589 = vmatpush.msra.mxu1 %v314_v26 }
  0x47   : > { %593 = vmatpush.msra.mxu2 %v313_v27  ;;  %594 = vmatpush.msra.mxu3 %v313_v27 }
  0x48   : > { %356 = vmatpush.msra.mxu0 %v313_v27  ;;  %592 = vmatpush.msra.mxu1 %v313_v27 }
  0x49   : > { %596 = vmatpush.msra.mxu2 %v312_v28  ;;  %597 = vmatpush.msra.mxu3 %v312_v28 }
  0x4a   : > { %357 = vmatpush.msra.mxu0 %v312_v28  ;;  %595 = vmatpush.msra.mxu1 %v312_v28 }
  0x4b   : > { %599 = vmatpush.msra.mxu2 %v311_v29  ;;  %600 = vmatpush.msra.mxu3 %v311_v29 }
  0x4c   : > { %358 = vmatpush.msra.mxu0 %v311_v29  ;;  %598 = vmatpush.msra.mxu1 %v311_v29 }
  0x4d   : > { %602 = vmatpush.msra.mxu2 %v310_v30  ;;  %603 = vmatpush.msra.mxu3 %v310_v30 }
  0x4e   : > { %359 = vmatpush.msra.mxu0 %v310_v30  ;;  %601 = vmatpush.msra.mxu1 %v310_v30 }
  0x4f   : > { %605 = vmatpush.msra.mxu2 %v309_v31  ;;  %606 = vmatpush.msra.mxu3 %v309_v31 }
  0x50   : > { %385 = vmatmul.f32.vlgmr.msra.gmra.mxu2 %v333_v32  ;;  %397 = vmatmul.f32.vlgmr.msra.gmra.mxu3 %v337_v33 }
  0x51   : > { %360 = vmatpush.msra.mxu0 %v309_v31  ;;  %604 = vmatpush.msra.mxu1 %v309_v31 }
  0x52   : > { %361 = vmatmul.f32.vlgmr.msra.gmra.mxu0 %v325_v34  ;;  %373 = vmatmul.f32.vlgmr.msra.gmra.mxu1 %v329_v35 }
  0x58   : > { %388 = vmatmul.f32.gmra.mxu2 %v334_v36  ;;  %400 = vmatmul.f32.gmra.mxu3 %v338_v37 }
  0x5a   : > { %364 = vmatmul.f32.gmra.mxu0 %v326_v38  ;;  %376 = vmatmul.f32.gmra.mxu1 %v330_v39 }
  0x60   : > { %391 = vmatmul.f32.gmra.mxu2 %v335_v40  ;;  %403 = vmatmul.f32.gmra.mxu3 %v339_v41 }
  0x62   : > { %367 = vmatmul.f32.gmra.mxu0 %v327_v42  ;;  %379 = vmatmul.f32.gmra.mxu1 %v331_v43 }
  0x68   : > { %394 = vmatmul.f32.gmra.mxu2 %v336_v44  ;;  %406 = vmatmul.f32.gmra.mxu3 %v340_v45 }
  0x6a   : > { %370 = vmatmul.f32.gmra.mxu0 %v328_v46  ;;  %382 = vmatmul.f32.gmra.mxu1 %v332_v47 }
  0xcf   : > { %v362_v49 = vpop.f32.mrf.mxu0  ;;  %v374_v50 = vpop.f32.mrf.mxu1 }
  0xd0   : > { %v363_v51 = vadd.f32 %v665_v48, %v362_v49  ;;  %v375_v52 = vadd.f32 %v665_v48, %v374_v50 }
  0xd2   : > { %410 = vst [vmem:[%s937_s4] sm:$0xff] %v363_v51 }
  0xd3   : > { %414 = vst [vmem:[%s937_s4 + $0x20] sm:$0xff] %v375_v52  ;;  %v386_v53 = vpop.f32.mrf.mxu2  ;;  %v398_v54 = vpop.f32.mrf.mxu3 }
  0xd4   : > { %v387_v55 = vadd.f32 %v665_v48, %v386_v53  ;;  %v399_v56 = vadd.f32 %v665_v48, %v398_v54 }
  0xd6   : > { %418 = vst [vmem:[%s937_s4 + $0x40] sm:$0xff] %v387_v55 }
  0xd7   : > { %422 = vst [vmem:[%s937_s4 + $0x60] sm:$0xff] %v399_v56  ;;  %v365_v57 = vpop.f32.mrf.mxu0  ;;  %v377_v58 = vpop.f32.mrf.mxu1 }
  0xd8   : > { %v366_v59 = vadd.f32 %v665_v48, %v365_v57  ;;  %v378_v60 = vadd.f32 %v665_v48, %v377_v58 }
  0xda   : > { %411 = vst [vmem:[%s937_s4 + $0x8] sm:$0xff] %v366_v59 }
  0xdb   : > { %415 = vst [vmem:[%s937_s4 + $0x28] sm:$0xff] %v378_v60  ;;  %v389_v61 = vpop.f32.mrf.mxu2  ;;  %v401_v62 = vpop.f32.mrf.mxu3 }
  0xdc   : > { %v390_v63 = vadd.f32 %v665_v48, %v389_v61  ;;  %v402_v0 = vadd.f32 %v665_v48, %v401_v62 }
  0xde   : > { %419 = vst [vmem:[%s937_s4 + $0x48] sm:$0xff] %v390_v63 }
  0xdf   : > { %423 = vst [vmem:[%s937_s4 + $0x68] sm:$0xff] %v402_v0  ;;  %v368_v1 = vpop.f32.mrf.mxu0  ;;  %v380_v2 = vpop.f32.mrf.mxu1 }
  0xe0   : > { %v369_v3 = vadd.f32 %v665_v48, %v368_v1  ;;  %v381_v4 = vadd.f32 %v665_v48, %v380_v2 }
  0xe2   : > { %412 = vst [vmem:[%s937_s4 + $0x10] sm:$0xff] %v369_v3 }
  0xe3   : > { %416 = vst [vmem:[%s937_s4 + $0x30] sm:$0xff] %v381_v4  ;;  %v392_v5 = vpop.f32.mrf.mxu2  ;;  %v404_v6 = vpop.f32.mrf.mxu3 }
  0xe4   : > { %v393_v7 = vadd.f32 %v665_v48, %v392_v5  ;;  %v405_v8 = vadd.f32 %v665_v48, %v404_v6 }
  0xe6   : > { %420 = vst [vmem:[%s937_s4 + $0x50] sm:$0xff] %v393_v7 }
  0xe7   : > { %424 = vst [vmem:[%s937_s4 + $0x70] sm:$0xff] %v405_v8  ;;  %v371_v9 = vpop.f32.mrf.mxu0  ;;  %v383_v10 = vpop.f32.mrf.mxu1 }
  0xe8   : > { %v372_v11 = vadd.f32 %v665_v48, %v371_v9  ;;  %v384_v12 = vadd.f32 %v665_v48, %v383_v10 }
  0xea   : > { %413 = vst [vmem:[%s937_s4 + $0x18] sm:$0xff] %v372_v11 }
  0xeb   : > { %417 = vst [vmem:[%s937_s4 + $0x38] sm:$0xff] %v384_v12  ;;  %v395_v13 = vpop.f32.mrf.mxu2  ;;  %v407_v14 = vpop.f32.mrf.mxu3 }
  0xec   : > { %v396_v15 = vadd.f32 %v665_v48, %v395_v13  ;;  %v408_v16 = vadd.f32 %v665_v48, %v407_v14 }
  0xee   : > { %421 = vst [vmem:[%s937_s4 + $0x58] sm:$0xff] %v396_v15 }
  0xef   : > { %425 = vst [vmem:[%s937_s4 + $0x78] sm:$0xff] %v408_v16 }
  0xf0   : > { %693 = shalt.err (!%p690_p8)
}
  0xf1   : > { %s746_s6 = smov 128   ;;  %s747_s29 = smov 256  }
  0xf2   : > { %s748_s30 = smov 8  }
  0xf3   : > { %607 = dma.vmem_to_hbm [thread:$0]  (%p808_p5), %s441_s8, 2048, %s443_s10, %s427_s15, %s746_s6, %s747_s29, %s748_s30  }
  0xf4 PF: > { %s457_s4 = sand.u32 1, %s724_s12   ;;  %p610_p11 = pnand %p549_p10, %p819_p9 }
  0xf5   : > { %s458_s7 = scalar_lea.sflag [#allocation4], %s457_s4 }
  0xf6   : > { %p611_p12 = pneg %p610_p11 }
  0xf8   : > { %719 = dma.done.wait (%p611_p12), %s458_s7, 2048  }
  0xf9   : > { %721 = vsyncadd (%p611_p12), %s458_s7, 4294965248  ;;  %s16_s17 = sadd.s32 1, %s744_s17   ;;  %s1001_s12 = smov %s728_s13 }
  0xfa   : > { %p13_p13 = scmp.ge.s32.totalorder %s16_s17, 4   ;;  %s1002_s13 = smov %s732_s14 }
  0xfb   : > { %s1003_s14 = smov %s817_s24  ;;  %s1004_s15 = smov %s740_s16 }
  0xfc   : > { %s1005_s16 = smov %s1007_s20  ;;  %15 = sbr.rel (!%p13_p13) target bundleno = 4 (0x4), region = 116 }
 0x101   :  { %464 = vsyncpa [#allocation4], 1 }
 0x102   :  { %466 = vsyncpa [#allocation4 + $0x1], 1 }

// kernel: decoder_rnn_forward.2
= control target key start
LH: loop header
LB: loop body
LE: loop exit
PB: predicated region body
PF: predicated region fallthrough
CT: control target
= control target key end

     0   :  { %s5948_s0 = inlined_call_operand.vmem [shape: f32[8,16,128], index: 0, kind: input, shape index: {}]   ;;  %s5949_s1 = inlined_call_operand.vmem [shape: f32[128,512], index: 1, kind: input, shape index: {}]   ;;  %s5950_s2 = inlined_call_operand.vmem [shape: f32[128,512], index: 2, kind: input, shape index: {}]   ;;  %s5951_s3 = inlined_call_operand.vmem [shape: f32[1,512], index: 3, kind: input, shape index: {}]   ;;  %s5952_s4 = inlined_call_operand.vmem [shape: f32[128,512], index: 4, kind: input, shape index: {}]   ;;  %s5953_s5 = inlined_call_operand.hbm [shape: f32[128,512], index: 5, kind: input, shape index: {}]   ;;  %s5954_s6 = inlined_call_operand.vmem [shape: f32[1,512], index: 6, kind: input, shape index: {}]   ;;  %s5955_s7 = inlined_call_operand.vmem [shape: f32[8,16,128], index: 7, kind: output, shape index: {}]  }
   0x1   :  { %6264 = sst [smem:[#allocation181_spill]] %s5953_s5 }
   0x2   :  { %12 = vsyncpa [#allocation6], 0  ;;  %s3025_s24 = smov 0   ;;  %s3027_s25 = smov 0  }
   0x3   :  { %s3029_s26 = smov 0   ;;  %s3031_s27 = smov 0  }
   0x4   :  { %s3033_s28 = smov 0   ;;  %s3035_s29 = smov 0  }
   0x5   :  { %s3037_s30 = smov 0  }
   0x6 LB: > { %s2452_s8 = sadd.s32 4294967295, %s2979_s30   ;;  %s27_s9 = sadd.s32 1, %s2971_s28  ;;  %s2979_s30 = sphi %s3037_s30, %s18_s30   ;;  %s2975_s29 = sphi %s3035_s29, %s6917_s29   ;;  %s2971_s28 = sphi %s3033_s28, %s6916_s28   ;;  %s2967_s27 = sphi %s3031_s27, %s6915_s27   ;;  %s2963_s26 = sphi %s3029_s26, %s6914_s26   ;;  %s2959_s25 = sphi %s3027_s25, %s6913_s25   ;;  %s2955_s24 = sphi %s3025_s24, %s6912_s24  }
   0x7   : > { %p28_p0 = scmp.ge.s32.totalorder %s27_s9, 2  ;;  %s30_s10 = sadd.s32 1, %s2975_s29 }
   0x8   : > { %s39_s11 = sadd.s32 1, %s2959_s25  ;;  %p46_p1 = scmp.ne.s32.totalorder %s2959_s25, %s2955_s24 }
   0x9   : > { %s6919_s9 = smov (%p28_p0, %s27_s9), 0  ;;  %s6921_s10 = smov (!%p28_p0, %s30_s10), %s2975_s29 }
   0xa   : > { %6265 = sst [smem:[#allocation9_spill]] %s6919_s9  ;;  %s34_s12 = ssub.s32 %s2971_s28, %s6919_s9 }
   0xb   : > { %p47_p2 = scmp.eq.s32.totalorder %s2979_s30, 0  ;;  %p32_p3 = scmp.ge.s32.totalorder %s6921_s10, 2 }
   0xc   : > { %p204_p4 = scmp.eq.s32.totalorder %s2452_s8, 3  ;;  %p2454_p6 = scmp.ge.s32.totalorder %s2979_s30, 1 }
   0xd   : > { %p3072_p5 = por %p47_p2, %p46_p1  ;;  %s6923_s10 = smov (%p32_p3, %s6921_s10), 0 }
   0xe   : > { %6267 = sst [smem:[#allocation10_spill]] %s6923_s10  ;;  %p3079_p7 = por %p204_p4, %p46_p1 }
   0xf   : > { %p217_p8 = scmp.lt.s32.totalorder %s2979_s30, 5  ;;  %s35_s15 = ssub.s32 %s2975_s29, %s6923_s10 }
  0x10   : > { %s36_s16 = sor.u32 %s35_s15, %s34_s12  ;;  %p3090_p11 = scmp.eq.s32.totalorder %s2452_s8, 0 }
  0x11   : > { %p3086_p9 = pnand %p2454_p6, %p217_p8  ;;  %p37_p10 = scmp.eq.s32.totalorder %s36_s16, 0 }
  0x12   : > { %s6271_s5 = sld [smem:[#allocation181_spill]]  ;;  %s2981_s23 = smov [#allocation5]  }
  0x13   : > { %p2505_p12 = pneg %p3086_p9  ;;  %s242_s12 = sshll.u32 %s2981_s23, 4  ;;  %s243_s12 = int_to_ptr.vmem [resolvable:$true] %s242_s12 }
  0x14   : > { %s3100_s22 = scalar_select %p37_p10, %s2959_s25, %s39_s11  }
  0x15   : > { %p2506_p13 = pnand %p3090_p11, %p2505_p12  ;;  %s2982_s15 = smov 512  }
  0x16   : > { %s2983_s8 = smov 32   ;;  %p2456_p0 = scmp.ge.s32.totalorder %s2979_s30, 4 }
  0x18   : > { %s240_s21 = sshll.u32 %s6271_s5, 4  ;;  %255 = sbr.rel (%p2456_p0) target bundleno = 39 (0x27), region = 40  ;;  %s241_s21 = int_to_ptr.hbm [resolvable:$true] %s240_s21 }
  0x19   : > { %2508 = dma.hbm_to_vmem [thread:$0]  (!%p2506_p13), %s241_s21, 8192, %s243_s12, [#allocation6], %s2982_s15, %s2982_s15, %s2983_s8  }
  0x1d   : > { %258 = sbr.rel (!%p3072_p5) target bundleno = 39 (0x27), region = 44  ;;  %s260_s11 = sand.u32 (%p3072_p5), 1, %s2959_s25  }
  0x1e   : > { %s2499_s16 = sshll.u32 (%p3072_p5), %s2971_s28, 3  ;;  %s2457_s19 = sshll.u32 (%p3072_p5), %s260_s11, 5 }
  0x1f   : > { %s265_s20 = sadd.s32 (%p3072_p5), %s2975_s29, %s2499_s16  ;;  %s262_s21 = scalar_lea.vmem (%p3072_p5), [#allocation4], %s2457_s19 }
  0x20   : > { %s2460_s23 = sshll.u32 (%p3072_p5), %s265_s20, 3 }
  0x21   : > { %s267_s9 = scalar_lea.vmem (%p3072_p5), %s5948_s0, %s2460_s23 }
  0x22   : > { %v302_v0 = vld [vmem:[%s267_s9] sm:$0xff]  ;;  %v304_v1 = vld [vmem:[%s267_s9 + $0x10] sm:$0xff] }
  0x23   : > { %v306_v2 = vld [vmem:[%s267_s9 + $0x20] sm:$0xff]  ;;  %303 = vst [vmem:[%s262_s21] sm:$0xff] %v302_v0  ;;  %v308_v3 = vld [vmem:[%s267_s9 + $0x30] sm:$0xff] }
  0x24   : > { %305 = vst [vmem:[%s262_s21 + $0x8] sm:$0xff] %v304_v1 }
  0x25   : > { %307 = vst [vmem:[%s262_s21 + $0x10] sm:$0xff] %v306_v2 }
  0x26   : > { %309 = vst [vmem:[%s262_s21 + $0x18] sm:$0xff] %v308_v3 }
  0x27 PF: > { %318 = sbr.rel (%p3086_p9) target bundleno = 1097 (0x449), region = 82 }
  0x2c   : > { %s321_s13 = sand.u32 1, %s2955_s24  }
  0x2d   : > { %s2462_s12 = sshll.u32 %s321_s13, 5 }
  0x2e   : > { %s3116_s5 = scalar_lea.vmem [#allocation4], %s2462_s12 }
  0x2f   : > { %2950 = dma.done.wait (%p3090_p11), [#allocation6], 8192  }
  0x30   : > { %2952 = vsyncadd (%p3090_p11), [#allocation6], 4294959104  ;;  %s3122_s9 = scalar_lea.vmem [#allocation7], %s2462_s12  ;;  %p2465_p1 = scmp.ne.s32.totalorder %s2963_s26, 0 }
  0x32   : > { %361 = sbr.rel (%p2465_p1) target bundleno = 60 (0x3c), region = 94 }
  0x37   : > { %v2984_v4 = vmov 0.0  }
  0x38   : > { %362 = vst [vmem:[#allocation2 + $0x10] sm:$0xff] %v2984_v4 }
  0x39   : > { %363 = vst [vmem:[#allocation2] sm:$0xff] %v2984_v4 }
  0x3a   : > { %364 = vst [vmem:[#allocation2 + $0x18] sm:$0xff] %v2984_v4 }
  0x3b   : > { %365 = vst [vmem:[#allocation2 + $0x8] sm:$0xff] %v2984_v4 }
  0x3c PF: > { %v426_v5 = vld [vmem:[%s5949_s1 + $0x1e0] sm:$0xff]  ;;  %v427_v6 = vld [vmem:[%s5949_s1 + $0x1e8] sm:$0xff]  ;;  %v428_v7 = vld [vmem:[%s5949_s1 + $0x1f0] sm:$0xff]  ;;  %s2500_s24 = sshll.u32 (%p3079_p7), %s2963_s26, 3 }
  0x3d   : > { %646 = vmatpush.msra.mxu0 %v426_v5  ;;  %675 = vmatpush.msra.mxu1 %v427_v6  ;;  %v429_v8 = vld [vmem:[%s5949_s1 + $0x1f8] sm:$0xff]  ;;  %v422_v9 = vld [vmem:[%s5949_s1 + $0x1c0] sm:$0xff]  ;;  %v423_v10 = vld [vmem:[%s5949_s1 + $0x1c8] sm:$0xff]  ;;  %s2320_s10 = sadd.s32 (%p3079_p7), %s2967_s27, %s2500_s24 }
  0x3e   : > { %704 = vmatpush.msra.mxu2 %v428_v7  ;;  %733 = vmatpush.msra.mxu3 %v429_v8  ;;  %v424_v11 = vld [vmem:[%s5949_s1 + $0x1d0] sm:$0xff]  ;;  %v425_v12 = vld [vmem:[%s5949_s1 + $0x1d8] sm:$0xff]  ;;  %v418_v13 = vld [vmem:[%s5949_s1 + $0x1a0] sm:$0xff]  ;;  %s2496_s17 = sshll.u32 (%p3079_p7), %s2320_s10, 3 }
  0x3f   : > { %647 = vmatpush.msra.mxu0 %v422_v9  ;;  %676 = vmatpush.msra.mxu1 %v423_v10  ;;  %v419_v14 = vld [vmem:[%s5949_s1 + $0x1a8] sm:$0xff]  ;;  %v420_v15 = vld [vmem:[%s5949_s1 + $0x1b0] sm:$0xff]  ;;  %v421_v16 = vld [vmem:[%s5949_s1 + $0x1b8] sm:$0xff]  ;;  %s2322_s18 = scalar_lea.vmem (%p3079_p7), %s5955_s7, %s2496_s17 }
  0x40   : > { %705 = vmatpush.msra.mxu2 %v424_v11  ;;  %734 = vmatpush.msra.mxu3 %v425_v12  ;;  %v414_v17 = vld [vmem:[%s5949_s1 + $0x180] sm:$0xff]  ;;  %v415_v18 = vld [vmem:[%s5949_s1 + $0x188] sm:$0xff]  ;;  %v416_v19 = vld [vmem:[%s5949_s1 + $0x190] sm:$0xff] }
  0x41   : > { %648 = vmatpush.msra.mxu0 %v418_v13  ;;  %677 = vmatpush.msra.mxu1 %v419_v14  ;;  %v417_v20 = vld [vmem:[%s5949_s1 + $0x198] sm:$0xff]  ;;  %v410_v21 = vld [vmem:[%s5949_s1 + $0x160] sm:$0xff]  ;;  %v411_v22 = vld [vmem:[%s5949_s1 + $0x168] sm:$0xff] }
  0x42   : > { %706 = vmatpush.msra.mxu2 %v420_v15  ;;  %735 = vmatpush.msra.mxu3 %v421_v16  ;;  %v412_v23 = vld [vmem:[%s5949_s1 + $0x170] sm:$0xff]  ;;  %v413_v24 = vld [vmem:[%s5949_s1 + $0x178] sm:$0xff]  ;;  %v406_v25 = vld [vmem:[%s5949_s1 + $0x140] sm:$0xff] }
  0x43   : > { %649 = vmatpush.msra.mxu0 %v414_v17  ;;  %678 = vmatpush.msra.mxu1 %v415_v18  ;;  %v407_v26 = vld [vmem:[%s5949_s1 + $0x148] sm:$0xff]  ;;  %v408_v27 = vld [vmem:[%s5949_s1 + $0x150] sm:$0xff]  ;;  %v409_v28 = vld [vmem:[%s5949_s1 + $0x158] sm:$0xff] }
  0x44   : > { %707 = vmatpush.msra.mxu2 %v416_v19  ;;  %736 = vmatpush.msra.mxu3 %v417_v20  ;;  %v402_v29 = vld [vmem:[%s5949_s1 + $0x120] sm:$0xff]  ;;  %v403_v30 = vld [vmem:[%s5949_s1 + $0x128] sm:$0xff]  ;;  %v404_v31 = vld [vmem:[%s5949_s1 + $0x130] sm:$0xff] }
  0x45   : > { %650 = vmatpush.msra.mxu0 %v410_v21  ;;  %679 = vmatpush.msra.mxu1 %v411_v22  ;;  %v405_v32 = vld [vmem:[%s5949_s1 + $0x138] sm:$0xff]  ;;  %v398_v33 = vld [vmem:[%s5949_s1 + $0x100] sm:$0xff]  ;;  %v399_v34 = vld [vmem:[%s5949_s1 + $0x108] sm:$0xff] }
  0x46   : > { %708 = vmatpush.msra.mxu2 %v412_v23  ;;  %737 = vmatpush.msra.mxu3 %v413_v24  ;;  %v400_v35 = vld [vmem:[%s5949_s1 + $0x110] sm:$0xff]  ;;  %v401_v36 = vld [vmem:[%s5949_s1 + $0x118] sm:$0xff]  ;;  %v394_v37 = vld [vmem:[%s5949_s1 + $0xe0] sm:$0xff] }
  0x47   : > { %651 = vmatpush.msra.mxu0 %v406_v25  ;;  %680 = vmatpush.msra.mxu1 %v407_v26  ;;  %v395_v38 = vld [vmem:[%s5949_s1 + $0xe8] sm:$0xff]  ;;  %v396_v39 = vld [vmem:[%s5949_s1 + $0xf0] sm:$0xff]  ;;  %v397_v40 = vld [vmem:[%s5949_s1 + $0xf8] sm:$0xff] }
  0x48   : > { %709 = vmatpush.msra.mxu2 %v408_v27  ;;  %738 = vmatpush.msra.mxu3 %v409_v28  ;;  %v390_v41 = vld [vmem:[%s5949_s1 + $0xc0] sm:$0xff]  ;;  %v391_v42 = vld [vmem:[%s5949_s1 + $0xc8] sm:$0xff]  ;;  %v392_v43 = vld [vmem:[%s5949_s1 + $0xd0] sm:$0xff] }
  0x49   : > { %652 = vmatpush.msra.mxu0 %v402_v29  ;;  %681 = vmatpush.msra.mxu1 %v403_v30  ;;  %v393_v44 = vld [vmem:[%s5949_s1 + $0xd8] sm:$0xff]  ;;  %v386_v45 = vld [vmem:[%s5949_s1 + $0xa0] sm:$0xff]  ;;  %v387_v46 = vld [vmem:[%s5949_s1 + $0xa8] sm:$0xff] }
  0x4a   : > { %710 = vmatpush.msra.mxu2 %v404_v31  ;;  %739 = vmatpush.msra.mxu3 %v405_v32  ;;  %v388_v47 = vld [vmem:[%s5949_s1 + $0xb0] sm:$0xff]  ;;  %v389_v48 = vld [vmem:[%s5949_s1 + $0xb8] sm:$0xff]  ;;  %v382_v49 = vld [vmem:[%s5949_s1 + $0x80] sm:$0xff] }
  0x4b   : > { %653 = vmatpush.msra.mxu0 %v398_v33  ;;  %682 = vmatpush.msra.mxu1 %v399_v34  ;;  %v383_v50 = vld [vmem:[%s5949_s1 + $0x88] sm:$0xff]  ;;  %v384_v51 = vld [vmem:[%s5949_s1 + $0x90] sm:$0xff]  ;;  %v385_v52 = vld [vmem:[%s5949_s1 + $0x98] sm:$0xff] }
  0x4c   : > { %711 = vmatpush.msra.mxu2 %v400_v35  ;;  %740 = vmatpush.msra.mxu3 %v401_v36  ;;  %v378_v53 = vld [vmem:[%s5949_s1 + $0x60] sm:$0xff]  ;;  %v379_v54 = vld [vmem:[%s5949_s1 + $0x68] sm:$0xff]  ;;  %v380_v55 = vld [vmem:[%s5949_s1 + $0x70] sm:$0xff] }
  0x4d   : > { %654 = vmatpush.msra.mxu0 %v394_v37  ;;  %683 = vmatpush.msra.mxu1 %v395_v38  ;;  %v381_v56 = vld [vmem:[%s5949_s1 + $0x78] sm:$0xff]  ;;  %v374_v57 = vld [vmem:[%s5949_s1 + $0x40] sm:$0xff]  ;;  %v375_v58 = vld [vmem:[%s5949_s1 + $0x48] sm:$0xff] }
  0x4e   : > { %712 = vmatpush.msra.mxu2 %v396_v39  ;;  %741 = vmatpush.msra.mxu3 %v397_v40  ;;  %v376_v59 = vld [vmem:[%s5949_s1 + $0x50] sm:$0xff]  ;;  %v377_v60 = vld [vmem:[%s5949_s1 + $0x58] sm:$0xff]  ;;  %v370_v61 = vld [vmem:[%s5949_s1 + $0x20] sm:$0xff] }
  0x4f   : > { %655 = vmatpush.msra.mxu0 %v390_v41  ;;  %684 = vmatpush.msra.mxu1 %v391_v42  ;;  %v371_v62 = vld [vmem:[%s5949_s1 + $0x28] sm:$0xff]  ;;  %v372_v63 = vld [vmem:[%s5949_s1 + $0x30] sm:$0xff]  ;;  %v373_v0 = vld [vmem:[%s5949_s1 + $0x38] sm:$0xff] }
  0x50   : > { %713 = vmatpush.msra.mxu2 %v392_v43  ;;  %742 = vmatpush.msra.mxu3 %v393_v44  ;;  %v366_v1 = vld [vmem:[%s5949_s1] sm:$0xff]  ;;  %v367_v2 = vld [vmem:[%s5949_s1 + $0x8] sm:$0xff]  ;;  %v368_v3 = vld [vmem:[%s5949_s1 + $0x10] sm:$0xff] }
  0x51   : > { %656 = vmatpush.msra.mxu0 %v386_v45  ;;  %685 = vmatpush.msra.mxu1 %v387_v46  ;;  %v369_v4 = vld [vmem:[%s5949_s1 + $0x18] sm:$0xff]  ;;  %v632_v5 = vld [vmem:[%s3116_s5] sm:$0xff]  ;;  %v3326_v7 = vld [vmem:[%s5950_s2 + $0x1e8] sm:$0xff] }
  0x52   : > { %714 = vmatpush.msra.mxu2 %v388_v47  ;;  %743 = vmatpush.msra.mxu3 %v389_v48  ;;  %v3321_v6 = vld [vmem:[%s5950_s2 + $0x1e0] sm:$0xff]  ;;  %v3331_v8 = vld [vmem:[%s5950_s2 + $0x1f0] sm:$0xff]  ;;  %v3336_v9 = vld [vmem:[%s5950_s2 + $0x1f8] sm:$0xff] }
  0x53   : > { %657 = vmatpush.msra.mxu0 %v382_v49  ;;  %686 = vmatpush.msra.mxu1 %v383_v50  ;;  %v3341_v10 = vld [vmem:[%s5950_s2 + $0x1c0] sm:$0xff]  ;;  %v3346_v11 = vld [vmem:[%s5950_s2 + $0x1c8] sm:$0xff]  ;;  %v3353_v12 = vld [vmem:[%s5950_s2 + $0x1d0] sm:$0xff] }
  0x54   : > { %715 = vmatpush.msra.mxu2 %v384_v51  ;;  %744 = vmatpush.msra.mxu3 %v385_v52  ;;  %v3358_v13 = vld [vmem:[%s5950_s2 + $0x1d8] sm:$0xff]  ;;  %v3365_v14 = vld [vmem:[%s5950_s2 + $0x1a0] sm:$0xff]  ;;  %v3370_v15 = vld [vmem:[%s5950_s2 + $0x1a8] sm:$0xff] }
  0x55   : > { %658 = vmatpush.msra.mxu0 %v378_v53  ;;  %687 = vmatpush.msra.mxu1 %v379_v54  ;;  %v3377_v16 = vld [vmem:[%s5950_s2 + $0x1b0] sm:$0xff]  ;;  %v3382_v17 = vld [vmem:[%s5950_s2 + $0x1b8] sm:$0xff]  ;;  %v3389_v18 = vld [vmem:[%s5950_s2 + $0x180] sm:$0xff] }
  0x56   : > { %716 = vmatpush.msra.mxu2 %v380_v55  ;;  %745 = vmatpush.msra.mxu3 %v381_v56  ;;  %v3394_v19 = vld [vmem:[%s5950_s2 + $0x188] sm:$0xff]  ;;  %v3401_v20 = vld [vmem:[%s5950_s2 + $0x190] sm:$0xff]  ;;  %v3406_v21 = vld [vmem:[%s5950_s2 + $0x198] sm:$0xff] }
  0x57   : > { %659 = vmatpush.msra.mxu0 %v374_v57  ;;  %688 = vmatpush.msra.mxu1 %v375_v58  ;;  %v633_v22 = vld [vmem:[%s3116_s5 + $0x8] sm:$0xff]  ;;  %v3418_v23 = vld [vmem:[%s5950_s2 + $0x160] sm:$0xff]  ;;  %v3428_v25 = vld [vmem:[%s5950_s2 + $0x170] sm:$0xff] }
  0x58   : > { %717 = vmatpush.msra.mxu2 %v376_v59  ;;  %746 = vmatpush.msra.mxu3 %v377_v60  ;;  %v3423_v24 = vld [vmem:[%s5950_s2 + $0x168] sm:$0xff]  ;;  %v3433_v26 = vld [vmem:[%s5950_s2 + $0x178] sm:$0xff]  ;;  %v3438_v27 = vld [vmem:[%s5950_s2 + $0x140] sm:$0xff] }
  0x59   : > { %660 = vmatpush.msra.mxu0 %v370_v61  ;;  %689 = vmatpush.msra.mxu1 %v371_v62  ;;  %v3443_v28 = vld [vmem:[%s5950_s2 + $0x148] sm:$0xff]  ;;  %v3450_v29 = vld [vmem:[%s5950_s2 + $0x150] sm:$0xff]  ;;  %v3455_v30 = vld [vmem:[%s5950_s2 + $0x158] sm:$0xff] }
  0x5a   : > { %718 = vmatpush.msra.mxu2 %v372_v63  ;;  %747 = vmatpush.msra.mxu3 %v373_v0  ;;  %v3462_v31 = vld [vmem:[%s5950_s2 + $0x120] sm:$0xff]  ;;  %v3467_v32 = vld [vmem:[%s5950_s2 + $0x128] sm:$0xff]  ;;  %v3474_v33 = vld [vmem:[%s5950_s2 + $0x130] sm:$0xff] }
  0x5b   : > { %661 = vmatpush.msra.mxu0 %v366_v1  ;;  %690 = vmatpush.msra.mxu1 %v367_v2  ;;  %v3479_v34 = vld [vmem:[%s5950_s2 + $0x138] sm:$0xff]  ;;  %v3486_v35 = vld [vmem:[%s5950_s2 + $0x100] sm:$0xff]  ;;  %v3491_v36 = vld [vmem:[%s5950_s2 + $0x108] sm:$0xff] }
  0x5c   : > { %719 = vmatpush.msra.mxu2 %v368_v3  ;;  %748 = vmatpush.msra.mxu3 %v369_v4  ;;  %v3498_v37 = vld [vmem:[%s5950_s2 + $0x110] sm:$0xff]  ;;  %v3503_v38 = vld [vmem:[%s5950_s2 + $0x118] sm:$0xff]  ;;  %v3515_v40 = vld [vmem:[%s5950_s2 + $0xe0] sm:$0xff] }
  0x5d   : > { %662 = vmatmul.f32.vlgmr.msra.gmra.mxu0 %v632_v5  ;;  %691 = vmatmul.f32.vlgmr.msra.gmra.mxu1 %v632_v5  ;;  %v634_v39 = vld [vmem:[%s3116_s5 + $0x10] sm:$0xff]  ;;  %v3520_v41 = vld [vmem:[%s5950_s2 + $0xe8] sm:$0xff]  ;;  %v3530_v43 = vld [vmem:[%s5950_s2 + $0xf8] sm:$0xff] }
  0x5e   : > { %720 = vmatmul.f32.vlgmr.msra.gmra.mxu2 %v632_v5  ;;  %749 = vmatmul.f32.vlgmr.msra.gmra.mxu3 %v632_v5  ;;  %v3525_v42 = vld [vmem:[%s5950_s2 + $0xf0] sm:$0xff]  ;;  %v3535_v44 = vld [vmem:[%s5950_s2 + $0xc0] sm:$0xff]  ;;  %v3540_v45 = vld [vmem:[%s5950_s2 + $0xc8] sm:$0xff] }
  0x5f   : > { %789 = vmatpush.msrb.mxu0 %v3321_v6  ;;  %809 = vmatpush.msrb.mxu1 %v3326_v7  ;;  %v3547_v46 = vld [vmem:[%s5950_s2 + $0xd0] sm:$0xff]  ;;  %v3552_v47 = vld [vmem:[%s5950_s2 + $0xd8] sm:$0xff]  ;;  %v3559_v48 = vld [vmem:[%s5950_s2 + $0xa0] sm:$0xff] }
  0x60   : > { %829 = vmatpush.msrb.mxu2 %v3331_v8  ;;  %849 = vmatpush.msrb.mxu3 %v3336_v9  ;;  %v3564_v49 = vld [vmem:[%s5950_s2 + $0xa8] sm:$0xff]  ;;  %v3571_v50 = vld [vmem:[%s5950_s2 + $0xb0] sm:$0xff]  ;;  %v3576_v51 = vld [vmem:[%s5950_s2 + $0xb8] sm:$0xff] }
  0x61   : > { %790 = vmatpush.msrb.mxu0 %v3341_v10  ;;  %810 = vmatpush.msrb.mxu1 %v3346_v11  ;;  %v3583_v52 = vld [vmem:[%s5950_s2 + $0x80] sm:$0xff]  ;;  %v3588_v53 = vld [vmem:[%s5950_s2 + $0x88] sm:$0xff]  ;;  %v3595_v54 = vld [vmem:[%s5950_s2 + $0x90] sm:$0xff] }
  0x62   : > { %830 = vmatpush.msrb.mxu2 %v3353_v12  ;;  %850 = vmatpush.msrb.mxu3 %v3358_v13  ;;  %v3600_v55 = vld [vmem:[%s5950_s2 + $0x98] sm:$0xff]  ;;  %v3612_v57 = vld [vmem:[%s5950_s2 + $0x60] sm:$0xff]  ;;  %v3617_v58 = vld [vmem:[%s5950_s2 + $0x68] sm:$0xff] }
  0x63   : > { %791 = vmatpush.msrb.mxu0 %v3365_v14  ;;  %811 = vmatpush.msrb.mxu1 %v3370_v15  ;;  %v635_v56 = vld [vmem:[%s3116_s5 + $0x18] sm:$0xff]  ;;  %6272 = vst [vmem:[#allocation11_spill] sm:$0xff] %v3612_v57  ;;  %v3622_v59 = vld [vmem:[%s5950_s2 + $0x70] sm:$0xff]  ;;  %v3632_v61 = vld [vmem:[%s5950_s2 + $0x40] sm:$0xff] }
  0x64   : > { %831 = vmatpush.msrb.mxu2 %v3377_v16  ;;  %851 = vmatpush.msrb.mxu3 %v3382_v17  ;;  %6273 = vst [vmem:[#allocation12_spill] sm:$0xff] %v3617_v58  ;;  %v3627_v60 = vld [vmem:[%s5950_s2 + $0x78] sm:$0xff]  ;;  %v3637_v62 = vld [vmem:[%s5950_s2 + $0x48] sm:$0xff]  ;;  %v3644_v63 = vld [vmem:[%s5950_s2 + $0x50] sm:$0xff] }
  0x65   : > { %792 = vmatpush.msrb.mxu0 %v3389_v18  ;;  %812 = vmatpush.msrb.mxu1 %v3394_v19  ;;  %6274 = vst [vmem:[#allocation13_spill] sm:$0xff] %v3622_v59  ;;  %v3649_v0 = vld [vmem:[%s5950_s2 + $0x58] sm:$0xff]  ;;  %v3656_v1 = vld [vmem:[%s5950_s2 + $0x20] sm:$0xff]  ;;  %v3661_v2 = vld [vmem:[%s5950_s2 + $0x28] sm:$0xff] }
  0x66   : > { %832 = vmatpush.msrb.mxu2 %v3401_v20  ;;  %852 = vmatpush.msrb.mxu3 %v3406_v21  ;;  %6275 = vst [vmem:[#allocation14_spill] sm:$0xff] %v3627_v60  ;;  %v3668_v3 = vld [vmem:[%s5950_s2 + $0x30] sm:$0xff]  ;;  %v3673_v4 = vld [vmem:[%s5950_s2 + $0x38] sm:$0xff]  ;;  %v3680_v5 = vld [vmem:[%s5950_s2] sm:$0xff] }
  0x67   : > { %665 = vmatmul.f32.gmra.mxu0 %v633_v22  ;;  %694 = vmatmul.f32.gmra.mxu1 %v633_v22  ;;  %6276 = vst [vmem:[#allocation15_spill] sm:$0xff] %v3632_v61 }
  0x68   : > { %723 = vmatmul.f32.gmra.mxu2 %v633_v22  ;;  %752 = vmatmul.f32.gmra.mxu3 %v633_v22  ;;  %6277 = vst [vmem:[#allocation16_spill] sm:$0xff] %v3637_v62  ;;  %v3685_v22 = vld [vmem:[%s5950_s2 + $0x8] sm:$0xff] }
  0x69   : > { %793 = vmatpush.msrb.mxu0 %v3418_v23  ;;  %813 = vmatpush.msrb.mxu1 %v3423_v24  ;;  %6278 = vst [vmem:[#allocation17_spill] sm:$0xff] %v3644_v63 }
  0x6a   : > { %833 = vmatpush.msrb.mxu2 %v3428_v25  ;;  %853 = vmatpush.msrb.mxu3 %v3433_v26  ;;  %6279 = vst [vmem:[#allocation18_spill] sm:$0xff] %v3649_v0 }
  0x6b   : > { %794 = vmatpush.msrb.mxu0 %v3438_v27  ;;  %814 = vmatpush.msrb.mxu1 %v3443_v28  ;;  %6280 = vst [vmem:[#allocation19_spill] sm:$0xff] %v3656_v1 }
  0x6c   : > { %834 = vmatpush.msrb.mxu2 %v3450_v29  ;;  %854 = vmatpush.msrb.mxu3 %v3455_v30  ;;  %6281 = vst [vmem:[#allocation20_spill] sm:$0xff] %v3661_v2 }
  0x6d   : > { %795 = vmatpush.msrb.mxu0 %v3462_v31  ;;  %815 = vmatpush.msrb.mxu1 %v3467_v32  ;;  %6282 = vst [vmem:[#allocation21_spill] sm:$0xff] %v3668_v3 }
  0x6e   : > { %835 = vmatpush.msrb.mxu2 %v3474_v33  ;;  %855 = vmatpush.msrb.mxu3 %v3479_v34  ;;  %6283 = vst [vmem:[#allocation22_spill] sm:$0xff] %v3673_v4 }
  0x6f   : > { %796 = vmatpush.msrb.mxu0 %v3486_v35  ;;  %816 = vmatpush.msrb.mxu1 %v3491_v36  ;;  %6284 = vst [vmem:[#allocation23_spill] sm:$0xff] %v3680_v5 }
  0x70   : > { %836 = vmatpush.msrb.mxu2 %v3498_v37  ;;  %856 = vmatpush.msrb.mxu3 %v3503_v38  ;;  %6285 = vst [vmem:[#allocation24_spill] sm:$0xff] %v3685_v22 }
  0x71   : > { %668 = vmatmul.f32.gmra.mxu0 %v634_v39  ;;  %697 = vmatmul.f32.gmra.mxu1 %v634_v39 }
  0x72   : > { %726 = vmatmul.f32.gmra.mxu2 %v634_v39  ;;  %755 = vmatmul.f32.gmra.mxu3 %v634_v39  ;;  %v3692_v39 = vld [vmem:[%s5950_s2 + $0x10] sm:$0xff] }
  0x73   : > { %797 = vmatpush.msrb.mxu0 %v3515_v40  ;;  %817 = vmatpush.msrb.mxu1 %v3520_v41  ;;  %6286 = vst [vmem:[#allocation25_spill] sm:$0xff] %v3692_v39 }
  0x74   : > { %837 = vmatpush.msrb.mxu2 %v3525_v42  ;;  %857 = vmatpush.msrb.mxu3 %v3530_v43 }
  0x75   : > { %798 = vmatpush.msrb.mxu0 %v3535_v44  ;;  %818 = vmatpush.msrb.mxu1 %v3540_v45 }
  0x76   : > { %838 = vmatpush.msrb.mxu2 %v3547_v46  ;;  %858 = vmatpush.msrb.mxu3 %v3552_v47 }
  0x77   : > { %799 = vmatpush.msrb.mxu0 %v3559_v48  ;;  %819 = vmatpush.msrb.mxu1 %v3564_v49 }
  0x78   : > { %839 = vmatpush.msrb.mxu2 %v3571_v50  ;;  %859 = vmatpush.msrb.mxu3 %v3576_v51 }
  0x79   : > { %800 = vmatpush.msrb.mxu0 %v3583_v52  ;;  %820 = vmatpush.msrb.mxu1 %v3588_v53 }
  0x7a   : > { %840 = vmatpush.msrb.mxu2 %v3595_v54  ;;  %860 = vmatpush.msrb.mxu3 %v3600_v55 }
  0x7b   : > { %671 = vmatmul.f32.gmra.mxu0 %v635_v56  ;;  %700 = vmatmul.f32.gmra.mxu1 %v635_v56 }
  0x7c   : > { %729 = vmatmul.f32.gmra.mxu2 %v635_v56  ;;  %758 = vmatmul.f32.gmra.mxu3 %v635_v56  ;;  %v3697_v56 = vld [vmem:[%s5950_s2 + $0x18] sm:$0xff] }
  0x7d   : > { %801 = vmatpush.msrb.mxu0 %v3612_v57  ;;  %821 = vmatpush.msrb.mxu1 %v3617_v58  ;;  %6287 = vst [vmem:[#allocation26_spill] sm:$0xff] %v3697_v56 }
  0x7e   : > { %841 = vmatpush.msrb.mxu2 %v3622_v59  ;;  %861 = vmatpush.msrb.mxu3 %v3627_v60  ;;  %v4059_v59 = vld [vmem:[%s5952_s4 + $0x120] sm:$0xff] }
  0x7f   : > { %802 = vmatpush.msrb.mxu0 %v3632_v61  ;;  %822 = vmatpush.msrb.mxu1 %v3637_v62  ;;  %v3727_v62 = vld [vmem:[#allocation5 + $0x1a8] sm:$0xff]  ;;  %6377 = vst [vmem:[#allocation116_spill] sm:$0xff] %v4059_v59 }
  0x80   : > { %842 = vmatpush.msrb.mxu2 %v3644_v63  ;;  %862 = vmatpush.msrb.mxu3 %v3649_v0  ;;  %v778_v0 = vld [vmem:[#allocation2 + $0x10] sm:$0xff]  ;;  %6297 = vst [vmem:[#allocation36_spill] sm:$0xff] %v3727_v62 }
  0x81   : > { %803 = vmatpush.msrb.mxu0 %v3656_v1  ;;  %823 = vmatpush.msrb.mxu1 %v3661_v2  ;;  %v3705_v2 = vld [vmem:[#allocation5 + $0x1e0] sm:$0xff]  ;;  %v3707_v1 = vld [vmem:[#allocation5 + $0x1e8] sm:$0xff]  ;;  %v3709_v63 = vld [vmem:[#allocation5 + $0x1f0] sm:$0xff] }
  0x82   : > { %843 = vmatpush.msrb.mxu2 %v3668_v3  ;;  %863 = vmatpush.msrb.mxu3 %v3673_v4  ;;  %6288 = vst [vmem:[#allocation27_spill] sm:$0xff] %v3705_v2  ;;  %v3711_v3 = vld [vmem:[#allocation5 + $0x1f8] sm:$0xff]  ;;  %v3713_v4 = vld [vmem:[#allocation5 + $0x1c0] sm:$0xff] }
  0x83   : > { %804 = vmatpush.msrb.mxu0 %v3680_v5  ;;  %824 = vmatpush.msrb.mxu1 %v3685_v22  ;;  %6289 = vst [vmem:[#allocation28_spill] sm:$0xff] %v3707_v1  ;;  %v3715_v5 = vld [vmem:[#allocation5 + $0x1c8] sm:$0xff]  ;;  %v3725_v22 = vld [vmem:[#allocation5 + $0x1a0] sm:$0xff] }
  0x84   : > { %844 = vmatpush.msrb.mxu2 %v3692_v39  ;;  %864 = vmatpush.msrb.mxu3 %v3697_v56  ;;  %6290 = vst [vmem:[#allocation29_spill] sm:$0xff] %v3709_v63  ;;  %v3719_v56 = vld [vmem:[#allocation5 + $0x1d0] sm:$0xff]  ;;  %v3721_v39 = vld [vmem:[#allocation5 + $0x1d8] sm:$0xff] }
  0x85   : > { %805 = vmatmul.f32.vlgmr.msrb.gmra.mxu0 %v778_v0  ;;  %825 = vmatmul.f32.vlgmr.msrb.gmra.mxu1 %v778_v0  ;;  %6291 = vst [vmem:[#allocation30_spill] sm:$0xff] %v3711_v3 }
  0x86   : > { %845 = vmatmul.f32.vlgmr.msrb.gmra.mxu2 %v778_v0  ;;  %865 = vmatmul.f32.vlgmr.msrb.gmra.mxu3 %v778_v0  ;;  %6292 = vst [vmem:[#allocation31_spill] sm:$0xff] %v3713_v4  ;;  %v3731_v0 = vld [vmem:[#allocation5 + $0x1b0] sm:$0xff] }
  0x87   : > { %6293 = vst [vmem:[#allocation32_spill] sm:$0xff] %v3715_v5  ;;  %936 = vmatpush.msra.mxu0 %v3705_v2  ;;  %956 = vmatpush.msra.mxu1 %v3707_v1  ;;  %v3733_v2 = vld [vmem:[#allocation5 + $0x1b8] sm:$0xff]  ;;  %v3737_v1 = vld [vmem:[#allocation5 + $0x180] sm:$0xff] }
  0x88   : > { %6294 = vst [vmem:[#allocation33_spill] sm:$0xff] %v3719_v56  ;;  %976 = vmatpush.msra.mxu2 %v3709_v63  ;;  %996 = vmatpush.msra.mxu3 %v3711_v3  ;;  %v3739_v63 = vld [vmem:[#allocation5 + $0x188] sm:$0xff]  ;;  %v3743_v3 = vld [vmem:[#allocation5 + $0x190] sm:$0xff] }
  0x89   : > { %6295 = vst [vmem:[#allocation34_spill] sm:$0xff] %v3721_v39  ;;  %937 = vmatpush.msra.mxu0 %v3713_v4  ;;  %957 = vmatpush.msra.mxu1 %v3715_v5  ;;  %v3745_v4 = vld [vmem:[#allocation5 + $0x198] sm:$0xff]  ;;  %v3749_v5 = vld [vmem:[#allocation5 + $0x160] sm:$0xff] }
  0x8a   : > { %6296 = vst [vmem:[#allocation35_spill] sm:$0xff] %v3725_v22  ;;  %977 = vmatpush.msra.mxu2 %v3719_v56  ;;  %997 = vmatpush.msra.mxu3 %v3721_v39  ;;  %v3751_v56 = vld [vmem:[#allocation5 + $0x168] sm:$0xff]  ;;  %v3755_v39 = vld [vmem:[#allocation5 + $0x170] sm:$0xff] }
  0x8b   : > { %6298 = vst [vmem:[#allocation37_spill] sm:$0xff] %v3731_v0  ;;  %938 = vmatpush.msra.mxu0 %v3725_v22  ;;  %958 = vmatpush.msra.mxu1 %v3727_v62  ;;  %v3757_v22 = vld [vmem:[#allocation5 + $0x178] sm:$0xff] }
  0x8c   : > { %6299 = vst [vmem:[#allocation38_spill] sm:$0xff] %v3733_v2  ;;  %978 = vmatpush.msra.mxu2 %v3731_v0  ;;  %998 = vmatpush.msra.mxu3 %v3733_v2  ;;  %v3765_v2 = vld [vmem:[#allocation5 + $0x140] sm:$0xff]  ;;  %v3793_v0 = vld [vmem:[#allocation5 + $0x118] sm:$0xff] }
  0x8d   : > { %6300 = vst [vmem:[#allocation39_spill] sm:$0xff] %v3737_v1  ;;  %939 = vmatpush.msra.mxu0 %v3737_v1  ;;  %959 = vmatpush.msra.mxu1 %v3739_v63  ;;  %v3767_v1 = vld [vmem:[#allocation5 + $0x148] sm:$0xff] }
  0x8e   : > { %6301 = vst [vmem:[#allocation40_spill] sm:$0xff] %v3739_v63  ;;  %979 = vmatpush.msra.mxu2 %v3743_v3  ;;  %999 = vmatpush.msra.mxu3 %v3745_v4  ;;  %v3769_v63 = vld [vmem:[#allocation5 + $0x150] sm:$0xff] }
  0x8f   : > { %6302 = vst [vmem:[#allocation41_spill] sm:$0xff] %v3743_v3  ;;  %940 = vmatpush.msra.mxu0 %v3749_v5  ;;  %960 = vmatpush.msra.mxu1 %v3751_v56  ;;  %v3773_v3 = vld [vmem:[#allocation5 + $0x158] sm:$0xff] }
  0x90   : > { %6303 = vst [vmem:[#allocation42_spill] sm:$0xff] %v3745_v4  ;;  %980 = vmatpush.msra.mxu2 %v3755_v39  ;;  %1000 = vmatpush.msra.mxu3 %v3757_v22  ;;  %v3775_v4 = vld [vmem:[#allocation5 + $0x120] sm:$0xff] }
  0x91   : > { %6304 = vst [vmem:[#allocation43_spill] sm:$0xff] %v3749_v5  ;;  %941 = vmatpush.msra.mxu0 %v3765_v2  ;;  %961 = vmatpush.msra.mxu1 %v3767_v1  ;;  %v3777_v5 = vld [vmem:[#allocation5 + $0x128] sm:$0xff] }
  0x92   : > { %6305 = vst [vmem:[#allocation44_spill] sm:$0xff] %v3751_v56  ;;  %981 = vmatpush.msra.mxu2 %v3769_v63  ;;  %1001 = vmatpush.msra.mxu3 %v3773_v3  ;;  %v3785_v56 = vld [vmem:[#allocation5 + $0x100] sm:$0xff] }
  0x93   : > { %6306 = vst [vmem:[#allocation45_spill] sm:$0xff] %v3755_v39  ;;  %v3783_v39 = vld [vmem:[#allocation5 + $0x138] sm:$0xff]  ;;  %942 = vmatpush.msra.mxu0 %v3775_v4  ;;  %962 = vmatpush.msra.mxu1 %v3777_v5 }
  0x94   : > { %6307 = vst [vmem:[#allocation46_spill] sm:$0xff] %v3757_v22  ;;  %v3781_v22 = vld [vmem:[#allocation5 + $0x130] sm:$0xff]  ;;  %1002 = vmatpush.msra.mxu3 %v3783_v39 }
  0x95   : > { %6308 = vst [vmem:[#allocation47_spill] sm:$0xff] %v3765_v2  ;;  %v3791_v2 = vld [vmem:[#allocation5 + $0x110] sm:$0xff]  ;;  %982 = vmatpush.msra.mxu2 %v3781_v22  ;;  %943 = vmatpush.msra.mxu0 %v3785_v56 }
  0x96   : > { %6309 = vst [vmem:[#allocation48_spill] sm:$0xff] %v3767_v1  ;;  %v3789_v1 = vld [vmem:[#allocation5 + $0x108] sm:$0xff]  ;;  %1003 = vmatpush.msra.mxu3 %v3793_v0 }
  0x97   : > { %6310 = vst [vmem:[#allocation49_spill] sm:$0xff] %v3769_v63  ;;  %963 = vmatpush.msra.mxu1 %v3789_v1  ;;  %983 = vmatpush.msra.mxu2 %v3791_v2  ;;  %v3841_v63 = vld [vmem:[#allocation5 + $0x98] sm:$0xff] }
  0x98   : > { %6311 = vst [vmem:[#allocation50_spill] sm:$0xff] %v3773_v3  ;;  %v3805_v3 = vld [vmem:[#allocation5 + $0xf0] sm:$0xff] }
  0x99   : > { %6312 = vst [vmem:[#allocation51_spill] sm:$0xff] %v3775_v4  ;;  %v3801_v4 = vld [vmem:[#allocation5 + $0xe0] sm:$0xff]  ;;  %984 = vmatpush.msra.mxu2 %v3805_v3 }
  0x9a   : > { %6313 = vst [vmem:[#allocation52_spill] sm:$0xff] %v3777_v5  ;;  %v3803_v5 = vld [vmem:[#allocation5 + $0xe8] sm:$0xff]  ;;  %944 = vmatpush.msra.mxu0 %v3801_v4 }
  0x9b   : > { %6314 = vst [vmem:[#allocation53_spill] sm:$0xff] %v3781_v22  ;;  %964 = vmatpush.msra.mxu1 %v3803_v5  ;;  %v3809_v22 = vld [vmem:[#allocation5 + $0xf8] sm:$0xff] }
  0x9c   : > { %6315 = vst [vmem:[#allocation54_spill] sm:$0xff] %v3783_v39  ;;  %1004 = vmatpush.msra.mxu3 %v3809_v22  ;;  %v3833_v39 = vld [vmem:[#allocation5 + $0x80] sm:$0xff] }
  0x9d   : > { %6316 = vst [vmem:[#allocation55_spill] sm:$0xff] %v3785_v56  ;;  %v3821_v56 = vld [vmem:[#allocation5 + $0xd8] sm:$0xff] }
  0x9e   : > { %6317 = vst [vmem:[#allocation56_spill] sm:$0xff] %v3789_v1  ;;  %v3813_v1 = vld [vmem:[#allocation5 + $0xc0] sm:$0xff]  ;;  %1005 = vmatpush.msra.mxu3 %v3821_v56 }
  0x9f   : > { %6318 = vst [vmem:[#allocation57_spill] sm:$0xff] %v3791_v2  ;;  %v3815_v2 = vld [vmem:[#allocation5 + $0xc8] sm:$0xff]  ;;  %945 = vmatpush.msra.mxu0 %v3813_v1 }
  0xa0   : > { %6319 = vst [vmem:[#allocation58_spill] sm:$0xff] %v3793_v0  ;;  %v3817_v0 = vld [vmem:[#allocation5 + $0xd0] sm:$0xff]  ;;  %965 = vmatpush.msra.mxu1 %v3815_v2 }
  0xa1   : > { %6320 = vst [vmem:[#allocation59_spill] sm:$0xff] %v3801_v4  ;;  %v3823_v4 = vld [vmem:[#allocation5 + $0xa0] sm:$0xff]  ;;  %985 = vmatpush.msra.mxu2 %v3817_v0 }
  0xa2   : > { %6321 = vst [vmem:[#allocation60_spill] sm:$0xff] %v3803_v5  ;;  %v3825_v5 = vld [vmem:[#allocation5 + $0xa8] sm:$0xff]  ;;  %946 = vmatpush.msra.mxu0 %v3823_v4 }
  0xa3   : > { %6322 = vst [vmem:[#allocation61_spill] sm:$0xff] %v3805_v3  ;;  %v3831_v3 = vld [vmem:[#allocation5 + $0xb8] sm:$0xff]  ;;  %966 = vmatpush.msra.mxu1 %v3825_v5 }
  0xa4   : > { %6323 = vst [vmem:[#allocation62_spill] sm:$0xff] %v3809_v22  ;;  %v3829_v22 = vld [vmem:[#allocation5 + $0xb0] sm:$0xff]  ;;  %1006 = vmatpush.msra.mxu3 %v3831_v3  ;;  %947 = vmatpush.msra.mxu0 %v3833_v39 }
  0xa5   : > { %6324 = vst [vmem:[#allocation63_spill] sm:$0xff] %v3813_v1  ;;  %v3839_v1 = vld [vmem:[#allocation5 + $0x90] sm:$0xff]  ;;  %986 = vmatpush.msra.mxu2 %v3829_v22 }
  0xa6   : > { %6325 = vst [vmem:[#allocation64_spill] sm:$0xff] %v3815_v2  ;;  %v3837_v2 = vld [vmem:[#allocation5 + $0x88] sm:$0xff]  ;;  %1007 = vmatpush.msra.mxu3 %v3841_v63 }
  0xa7   : > { %6326 = vst [vmem:[#allocation65_spill] sm:$0xff] %v3817_v0  ;;  %967 = vmatpush.msra.mxu1 %v3837_v2  ;;  %987 = vmatpush.msra.mxu2 %v3839_v1  ;;  %v3889_v0 = vld [vmem:[#allocation5 + $0x18] sm:$0xff] }
  0xa8   : > { %6327 = vst [vmem:[#allocation66_spill] sm:$0xff] %v3821_v56  ;;  %v3853_v56 = vld [vmem:[#allocation5 + $0x70] sm:$0xff] }
  0xa9   : > { %6328 = vst [vmem:[#allocation67_spill] sm:$0xff] %v3823_v4  ;;  %v3849_v4 = vld [vmem:[#allocation5 + $0x60] sm:$0xff]  ;;  %988 = vmatpush.msra.mxu2 %v3853_v56 }
  0xaa   : > { %6329 = vst [vmem:[#allocation68_spill] sm:$0xff] %v3825_v5  ;;  %v3851_v5 = vld [vmem:[#allocation5 + $0x68] sm:$0xff]  ;;  %948 = vmatpush.msra.mxu0 %v3849_v4 }
  0xab   : > { %6330 = vst [vmem:[#allocation69_spill] sm:$0xff] %v3829_v22  ;;  %968 = vmatpush.msra.mxu1 %v3851_v5  ;;  %v3857_v22 = vld [vmem:[#allocation5 + $0x78] sm:$0xff] }
  0xac   : > { %6331 = vst [vmem:[#allocation70_spill] sm:$0xff] %v3831_v3  ;;  %1008 = vmatpush.msra.mxu3 %v3857_v22  ;;  %v3881_v3 = vld [vmem:[#allocation5] sm:$0xff] }
  0xad   : > { %6332 = vst [vmem:[#allocation71_spill] sm:$0xff] %v3833_v39  ;;  %v3869_v39 = vld [vmem:[#allocation5 + $0x58] sm:$0xff] }
  0xae   : > { %6333 = vst [vmem:[#allocation72_spill] sm:$0xff] %v3837_v2  ;;  %v3861_v2 = vld [vmem:[#allocation5 + $0x40] sm:$0xff]  ;;  %1009 = vmatpush.msra.mxu3 %v3869_v39 }
  0xaf   : > { %6334 = vst [vmem:[#allocation73_spill] sm:$0xff] %v3839_v1  ;;  %v3863_v1 = vld [vmem:[#allocation5 + $0x48] sm:$0xff]  ;;  %949 = vmatpush.msra.mxu0 %v3861_v2 }
  0xb0   : > { %6335 = vst [vmem:[#allocation74_spill] sm:$0xff] %v3841_v63  ;;  %v3865_v63 = vld [vmem:[#allocation5 + $0x50] sm:$0xff]  ;;  %969 = vmatpush.msra.mxu1 %v3863_v1 }
  0xb1   : > { %6336 = vst [vmem:[#allocation75_spill] sm:$0xff] %v3849_v4  ;;  %v3871_v4 = vld [vmem:[#allocation5 + $0x20] sm:$0xff]  ;;  %989 = vmatpush.msra.mxu2 %v3865_v63 }
  0xb2   : > { %6337 = vst [vmem:[#allocation76_spill] sm:$0xff] %v3851_v5  ;;  %v3873_v5 = vld [vmem:[#allocation5 + $0x28] sm:$0xff]  ;;  %950 = vmatpush.msra.mxu0 %v3871_v4 }
  0xb3   : > { %6338 = vst [vmem:[#allocation77_spill] sm:$0xff] %v3853_v56  ;;  %v3879_v56 = vld [vmem:[#allocation5 + $0x38] sm:$0xff]  ;;  %970 = vmatpush.msra.mxu1 %v3873_v5 }
  0xb4   : > { %6339 = vst [vmem:[#allocation78_spill] sm:$0xff] %v3857_v22  ;;  %v3877_v22 = vld [vmem:[#allocation5 + $0x30] sm:$0xff]  ;;  %1010 = vmatpush.msra.mxu3 %v3879_v56  ;;  %951 = vmatpush.msra.mxu0 %v3881_v3 }
  0xb5   : > { %6340 = vst [vmem:[#allocation79_spill] sm:$0xff] %v3861_v2  ;;  %v3887_v2 = vld [vmem:[#allocation5 + $0x10] sm:$0xff]  ;;  %990 = vmatpush.msra.mxu2 %v3877_v22 }
  0xb6   : > { %6341 = vst [vmem:[#allocation80_spill] sm:$0xff] %v3863_v1  ;;  %v3885_v1 = vld [vmem:[#allocation5 + $0x8] sm:$0xff]  ;;  %1011 = vmatpush.msra.mxu3 %v3889_v0 }
  0xb7   : > { %6342 = vst [vmem:[#allocation81_spill] sm:$0xff] %v3865_v63  ;;  %971 = vmatpush.msra.mxu1 %v3885_v1  ;;  %991 = vmatpush.msra.mxu2 %v3887_v2  ;;  %v3989_v63 = vld [vmem:[%s5952_s4 + $0x198] sm:$0xff] }
  0xb8   : > { %6343 = vst [vmem:[#allocation82_spill] sm:$0xff] %v3869_v39  ;;  %v3972_v39 = vld [vmem:[%s5952_s4 + $0x180] sm:$0xff] }
  0xb9   : > { %6344 = vst [vmem:[#allocation83_spill] sm:$0xff] %v3871_v4  ;;  %v3905_v4 = vld [vmem:[%s5952_s4 + $0x1e8] sm:$0xff] }
  0xba   : > { %6345 = vst [vmem:[#allocation84_spill] sm:$0xff] %v3873_v5  ;;  %v3900_v5 = vld [vmem:[%s5952_s4 + $0x1e0] sm:$0xff]  ;;  %1036 = vmatpush.msrb.mxu1 %v3905_v4 }
  0xbb   : > { %6346 = vst [vmem:[#allocation85_spill] sm:$0xff] %v3877_v22  ;;  %1016 = vmatpush.msrb.mxu0 %v3900_v5  ;;  %v3955_v22 = vld [vmem:[%s5952_s4 + $0x1a8] sm:$0xff] }
  0xbc   : > { %6347 = vst [vmem:[#allocation86_spill] sm:$0xff] %v3879_v56  ;;  %v3950_v56 = vld [vmem:[%s5952_s4 + $0x1a0] sm:$0xff] }
  0xbd   : > { %6348 = vst [vmem:[#allocation87_spill] sm:$0xff] %v3881_v3  ;;  %v3910_v3 = vld [vmem:[%s5952_s4 + $0x1f0] sm:$0xff] }
  0xbe   : > { %6349 = vst [vmem:[#allocation88_spill] sm:$0xff] %v3885_v1  ;;  %1056 = vmatpush.msrb.mxu2 %v3910_v3 }
  0xbf   : > { %6350 = vst [vmem:[#allocation89_spill] sm:$0xff] %v3887_v2  ;;  %v3924_v2 = vld [vmem:[%s5952_s4 + $0x1c0] sm:$0xff] }
  0xc0   : > { %6351 = vst [vmem:[#allocation90_spill] sm:$0xff] %v3889_v0  ;;  %v3917_v0 = vld [vmem:[%s5952_s4 + $0x1f8] sm:$0xff]  ;;  %1017 = vmatpush.msrb.mxu0 %v3924_v2 }
  0xc1   : > { %6352 = vst [vmem:[#allocation91_spill] sm:$0xff] %v3900_v5  ;;  %1076 = vmatpush.msrb.mxu3 %v3917_v0  ;;  %v3929_v5 = vld [vmem:[%s5952_s4 + $0x1c8] sm:$0xff] }
  0xc2   : > { %6353 = vst [vmem:[#allocation92_spill] sm:$0xff] %v3905_v4  ;;  %v3934_v4 = vld [vmem:[%s5952_s4 + $0x1d0] sm:$0xff]  ;;  %1037 = vmatpush.msrb.mxu1 %v3929_v5  ;;  %1018 = vmatpush.msrb.mxu0 %v3950_v56 }
  0xc3   : > { %6354 = vst [vmem:[#allocation93_spill] sm:$0xff] %v3910_v3  ;;  %1057 = vmatpush.msrb.mxu2 %v3934_v4 }
  0xc4   : > { %6355 = vst [vmem:[#allocation94_spill] sm:$0xff] %v3917_v0  ;;  %v3945_v0 = vld [vmem:[%s5952_s4 + $0x1d8] sm:$0xff]  ;;  %1038 = vmatpush.msrb.mxu1 %v3955_v22  ;;  %1019 = vmatpush.msrb.mxu0 %v3972_v39 }
  0xc5   : > { %6356 = vst [vmem:[#allocation95_spill] sm:$0xff] %v3924_v2  ;;  %1077 = vmatpush.msrb.mxu3 %v3945_v0  ;;  %v3967_v2 = vld [vmem:[%s5952_s4 + $0x1b8] sm:$0xff] }
  0xc6   : > { %6357 = vst [vmem:[#allocation96_spill] sm:$0xff] %v3929_v5  ;;  %v3962_v5 = vld [vmem:[%s5952_s4 + $0x1b0] sm:$0xff] }
  0xc7   : > { %6358 = vst [vmem:[#allocation97_spill] sm:$0xff] %v3934_v4  ;;  %v3984_v4 = vld [vmem:[%s5952_s4 + $0x190] sm:$0xff]  ;;  %1058 = vmatpush.msrb.mxu2 %v3962_v5  ;;  %1078 = vmatpush.msrb.mxu3 %v3967_v2 }
  0xc8   : > { %6359 = vst [vmem:[#allocation98_spill] sm:$0xff] %v3945_v0  ;;  %v3979_v0 = vld [vmem:[%s5952_s4 + $0x188] sm:$0xff] }
  0xc9   : > { %6360 = vst [vmem:[#allocation99_spill] sm:$0xff] %v3950_v56  ;;  %1039 = vmatpush.msrb.mxu1 %v3979_v0  ;;  %1059 = vmatpush.msrb.mxu2 %v3984_v4  ;;  %v4003_v56 = vld [vmem:[%s5952_s4 + $0x160] sm:$0xff] }
  0xca   : > { %6361 = vst [vmem:[#allocation100_spill] sm:$0xff] %v3955_v22  ;;  %v636_v22 = vld [vmem:[%s5951_s3] sm:$0xf]  ;;  %1079 = vmatpush.msrb.mxu3 %v3989_v63  ;;  %1020 = vmatpush.msrb.mxu0 %v4003_v56 }
  0xcb   : > { %6362 = vst [vmem:[#allocation101_spill] sm:$0xff] %v3962_v5  ;;  %v4031_v5 = vld [vmem:[%s5952_s4 + $0x140] sm:$0xff]  ;;  %v4043_v62 = vperm.slane %v636_v22, 0 }
  0xcc   : > { %6363 = vst [vmem:[#allocation102_spill] sm:$0xff] %v3967_v2  ;;  %v4008_v2 = vld [vmem:[%s5952_s4 + $0x168] sm:$0xff]  ;;  %1021 = vmatpush.msrb.mxu0 %v4031_v5 }
  0xcd   : > { %6364 = vst [vmem:[#allocation103_spill] sm:$0xff] %v3972_v39  ;;  %1040 = vmatpush.msrb.mxu1 %v4008_v2 }
  0xce   : > { %6365 = vst [vmem:[#allocation104_spill] sm:$0xff] %v3979_v0  ;;  %v4013_v0 = vld [vmem:[%s5952_s4 + $0x170] sm:$0xff]  ;;  %1022 = vmatpush.msrb.mxu0 %v4059_v59 }
  0xcf   : > { %6366 = vst [vmem:[#allocation105_spill] sm:$0xff] %v3984_v4  ;;  %1060 = vmatpush.msrb.mxu2 %v4013_v0 }
  0xd0   : > { %6367 = vst [vmem:[#allocation106_spill] sm:$0xff] %v3989_v63  ;;  %v4024_v63 = vld [vmem:[%s5952_s4 + $0x178] sm:$0xff] }
  0xd1   : > { %6368 = vst [vmem:[#allocation107_spill] sm:$0xff] %v4003_v56  ;;  %1080 = vmatpush.msrb.mxu3 %v4024_v63  ;;  %v4036_v56 = vld [vmem:[%s5952_s4 + $0x148] sm:$0xff] }
  0xd2   : > { %6369 = vst [vmem:[#allocation108_spill] sm:$0xff] %v4008_v2  ;;  %v4041_v2 = vld [vmem:[%s5952_s4 + $0x150] sm:$0xff]  ;;  %1041 = vmatpush.msrb.mxu1 %v4036_v56 }
  0xd3   : > { %6370 = vst [vmem:[#allocation109_spill] sm:$0xff] %v4013_v0  ;;  %v4045_v0 = vperm.slane %v636_v22, 1  ;;  %1061 = vmatpush.msrb.mxu2 %v4041_v2 }
  0xd4   : > { %6372 = vst [vmem:[#allocation111_spill] sm:$0xff] %v4024_v63  ;;  %v4052_v63 = vld [vmem:[%s5952_s4 + $0x158] sm:$0xff] }
  0xd5   : > { %6373 = vst [vmem:[#allocation112_spill] sm:$0xff] %v4031_v5  ;;  %1081 = vmatpush.msrb.mxu3 %v4052_v63  ;;  %v4069_v5 = vld [vmem:[%s5952_s4 + $0x130] sm:$0xff] }
  0xd6   : > { %6374 = vst [vmem:[#allocation113_spill] sm:$0xff] %v4036_v56  ;;  %v4064_v56 = vld [vmem:[%s5952_s4 + $0x128] sm:$0xff]  ;;  %1062 = vmatpush.msrb.mxu2 %v4069_v5 }
  0xd7   : > { %6375 = vst [vmem:[#allocation114_spill] sm:$0xff] %v4041_v2  ;;  %1042 = vmatpush.msrb.mxu1 %v4064_v56  ;;  %v4082_v2 = vld [vmem:[%s5952_s4 + $0x138] sm:$0xff] }
  0xd8   : > { %6376 = vst [vmem:[#allocation115_spill] sm:$0xff] %v4052_v63  ;;  %1082 = vmatpush.msrb.mxu3 %v4082_v2 }
  0xd9   : > { %6378 = vst [vmem:[#allocation117_spill] sm:$0xff] %v4064_v56 }
  0xda   : > { %v3936_v1 = vpop.f32.mrf.mxu0  ;;  %v3938_v3 = vpop.f32.mrf.mxu1  ;;  %6379 = vst [vmem:[#allocation118_spill] sm:$0xff] %v4069_v5  ;;  %v4125_v5 = vperm.slane %v636_v22, 2 }
  0xdb   : > { %6382 = vst [vmem:[#allocation121_spill] sm:$0xff] %v4082_v2  ;;  %v4113_v2 = vld [vmem:[%s5952_s4 + $0xe0] sm:$0xff] }
  0xdc   : > { %6387 = vst [vmem:[#allocation126_spill] sm:$0xff] %v4113_v2 }
  0xe1   : > { %v4015_v39 = vpop.f32.mrf.mxu2  ;;  %v4017_v4 = vpop.f32.mrf.mxu3 }
  0xe2   : > { %6371 = vst [vmem:[#allocation110_spill] sm:$0xff] %v4015_v39 }
  0xe4   : > { %v666_v61 = vpop.f32.mrf.mxu0  ;;  %v695_v60 = vpop.f32.mrf.mxu1 }
  0xe5   : > { %v4072_v58 = vadd.f32 %v666_v61, %v4043_v62  ;;  %v4075_v63 = vadd.f32 %v695_v60, %v4045_v0  ;;  %v4089_v61 = vld [vmem:[%s5952_s4 + $0x100] sm:$0xff]  ;;  %v4094_v60 = vld [vmem:[%s5952_s4 + $0x108] sm:$0xff] }
  0xe6   : > { %6383 = vst [vmem:[#allocation122_spill] sm:$0xff] %v4089_v61  ;;  %1023 = vmatpush.msrb.mxu0 %v4089_v61  ;;  %1043 = vmatpush.msrb.mxu1 %v4094_v60  ;;  %v4118_v61 = vld [vmem:[%s5952_s4 + $0xe8] sm:$0xff] }
  0xe7   : > { %6380 = vst [vmem:[#allocation119_spill] sm:$0xff] %v4072_v58  ;;  %v4106_v58 = vld [vmem:[%s5952_s4 + $0x118] sm:$0xff] }
  0xe8   : > { %6381 = vst [vmem:[#allocation120_spill] sm:$0xff] %v4075_v63  ;;  %v4099_v63 = vld [vmem:[%s5952_s4 + $0x110] sm:$0xff]  ;;  %1083 = vmatpush.msrb.mxu3 %v4106_v58  ;;  %1024 = vmatpush.msrb.mxu0 %v4113_v2 }
  0xe9   : > { %6384 = vst [vmem:[#allocation123_spill] sm:$0xff] %v4094_v60  ;;  %1063 = vmatpush.msrb.mxu2 %v4099_v63  ;;  %v4123_v60 = vld [vmem:[%s5952_s4 + $0xf0] sm:$0xff]  ;;  %1044 = vmatpush.msrb.mxu1 %v4118_v61 }
  0xea   : > { %6385 = vst [vmem:[#allocation124_spill] sm:$0xff] %v4099_v63  ;;  %v4127_v63 = vperm.slane %v636_v22, 3  ;;  %v4141_v22 = vld [vmem:[%s5952_s4 + $0xc0] sm:$0xff]  ;;  %v4151_v2 = vld [vmem:[%s5952_s4 + $0xd0] sm:$0xff] }
  0xeb   : > { %6386 = vst [vmem:[#allocation125_spill] sm:$0xff] %v4106_v58  ;;  %v4134_v58 = vld [vmem:[%s5952_s4 + $0xf8] sm:$0xff]  ;;  %v724_v56 = vpop.f32.mrf.mxu2  ;;  %v753_v59 = vpop.f32.mrf.mxu3  ;;  %1064 = vmatpush.msrb.mxu2 %v4123_v60  ;;  %1025 = vmatpush.msrb.mxu0 %v4141_v22 }
  0xec   : > { %6388 = vst [vmem:[#allocation127_spill] sm:$0xff] %v4118_v61  ;;  %1084 = vmatpush.msrb.mxu3 %v4134_v58  ;;  %v4146_v61 = vld [vmem:[%s5952_s4 + $0xc8] sm:$0xff]  ;;  %v4154_v57 = vadd.f32 %v724_v56, %v4125_v5  ;;  %v4171_v56 = vld [vmem:[%s5952_s4 + $0xa0] sm:$0xff] }
  0xed   : > { %6389 = vst [vmem:[#allocation128_spill] sm:$0xff] %v4123_v60  ;;  %1045 = vmatpush.msrb.mxu1 %v4146_v61  ;;  %v4164_v60 = vld [vmem:[%s5952_s4 + $0xd8] sm:$0xff]  ;;  %1065 = vmatpush.msrb.mxu2 %v4151_v2 }
  0xee   : > { %6390 = vst [vmem:[#allocation129_spill] sm:$0xff] %v4134_v58  ;;  %v4157_v58 = vadd.f32 %v753_v59, %v4127_v63  ;;  %1085 = vmatpush.msrb.mxu3 %v4164_v60  ;;  %v4176_v59 = vld [vmem:[%s5952_s4 + $0xa8] sm:$0xff]  ;;  %1026 = vmatpush.msrb.mxu0 %v4171_v56 }
  0xef   : > { %6391 = vst [vmem:[#allocation130_spill] sm:$0xff] %v4141_v22  ;;  %1046 = vmatpush.msrb.mxu1 %v4176_v59 }
  0xf0   : > { %6392 = vst [vmem:[#allocation131_spill] sm:$0xff] %v4146_v61  ;;  %v698_v61 = vpop.f32.mrf.mxu1 }
  0xf1   : > { %6393 = vst [vmem:[#allocation132_spill] sm:$0xff] %v4151_v2  ;;  %v4194_v22 = vadd.f32 %v698_v61, %v4045_v0  ;;  %v4218_v61 = vld [vmem:[%s5952_s4 + $0x98] sm:$0xff] }
  0xf2   : > { %6394 = vst [vmem:[#allocation133_spill] sm:$0xff] %v4154_v57  ;;  %v4181_v57 = vld [vmem:[%s5952_s4 + $0xb0] sm:$0xff] }
  0xf3   : > { %6395 = vst [vmem:[#allocation134_spill] sm:$0xff] %v4157_v58  ;;  %v669_v58 = vpop.f32.mrf.mxu0  ;;  %1066 = vmatpush.msrb.mxu2 %v4181_v57 }
  0xf4   : > { %6396 = vst [vmem:[#allocation135_spill] sm:$0xff] %v4164_v60  ;;  %v4188_v60 = vld [vmem:[%s5952_s4 + $0xb8] sm:$0xff]  ;;  %v4191_v2 = vadd.f32 %v669_v58, %v4043_v62  ;;  %v4211_v58 = vld [vmem:[%s5952_s4 + $0x90] sm:$0xff] }
  0xf5   : > { %6397 = vst [vmem:[#allocation136_spill] sm:$0xff] %v4171_v56  ;;  %1086 = vmatpush.msrb.mxu3 %v4188_v60  ;;  %v4201_v56 = vld [vmem:[%s5952_s4 + $0x80] sm:$0xff]  ;;  %1067 = vmatpush.msrb.mxu2 %v4211_v58 }
  0xf6   : > { %6398 = vst [vmem:[#allocation137_spill] sm:$0xff] %v4176_v59  ;;  %v4206_v59 = vld [vmem:[%s5952_s4 + $0x88] sm:$0xff]  ;;  %1027 = vmatpush.msrb.mxu0 %v4201_v56 }
  0xf7   : > { %6399 = vst [vmem:[#allocation138_spill] sm:$0xff] %v4181_v57  ;;  %1047 = vmatpush.msrb.mxu1 %v4206_v59  ;;  %1087 = vmatpush.msrb.mxu3 %v4218_v61 }
  0xf8   : > { %6400 = vst [vmem:[#allocation139_spill] sm:$0xff] %v4188_v60  ;;  %v4273_v60 = vld [vmem:[%s5952_s4 + $0x20] sm:$0xff] }
  0xf9   : > { %6401 = vst [vmem:[#allocation140_spill] sm:$0xff] %v4191_v2  ;;  %v4230_v2 = vld [vmem:[%s5952_s4 + $0x68] sm:$0xff] }
  0xfa   : > { %6402 = vst [vmem:[#allocation141_spill] sm:$0xff] %v4194_v22  ;;  %v4225_v22 = vld [vmem:[%s5952_s4 + $0x60] sm:$0xff]  ;;  %1048 = vmatpush.msrb.mxu1 %v4230_v2 }
  0xfb   : > { %6403 = vst [vmem:[#allocation142_spill] sm:$0xff] %v4201_v56  ;;  %1028 = vmatpush.msrb.mxu0 %v4225_v22  ;;  %v756_v56 = vpop.f32.mrf.mxu3 }
  0xfc   : > { %6404 = vst [vmem:[#allocation143_spill] sm:$0xff] %v4206_v59  ;;  %v4235_v59 = vld [vmem:[%s5952_s4 + $0x70] sm:$0xff] }
  0xfd   : > { %6405 = vst [vmem:[#allocation144_spill] sm:$0xff] %v4211_v58  ;;  %1068 = vmatpush.msrb.mxu2 %v4235_v59  ;;  %v4249_v58 = vld [vmem:[%s5952_s4 + $0x40] sm:$0xff] }
  0xfe   : > { %6406 = vst [vmem:[#allocation145_spill] sm:$0xff] %v4218_v61  ;;  %v4242_v61 = vld [vmem:[%s5952_s4 + $0x78] sm:$0xff]  ;;  %1029 = vmatpush.msrb.mxu0 %v4249_v58 }
  0xff   : > { %6407 = vst [vmem:[#allocation146_spill] sm:$0xff] %v4225_v22  ;;  %1088 = vmatpush.msrb.mxu3 %v4242_v61  ;;  %v4254_v22 = vld [vmem:[%s5952_s4 + $0x48] sm:$0xff] }
 0x100   : > { %6408 = vst [vmem:[#allocation147_spill] sm:$0xff] %v4230_v2  ;;  %v4259_v2 = vld [vmem:[%s5952_s4 + $0x50] sm:$0xff]  ;;  %1049 = vmatpush.msrb.mxu1 %v4254_v22  ;;  %1030 = vmatpush.msrb.mxu0 %v4273_v60 }
 0x101   : > { %6409 = vst [vmem:[#allocation148_spill] sm:$0xff] %v4235_v59  ;;  %v727_v59 = vpop.f32.mrf.mxu2  ;;  %1069 = vmatpush.msrb.mxu2 %v4259_v2 }
 0x102   : > { %6410 = vst [vmem:[#allocation149_spill] sm:$0xff] %v4242_v61  ;;  %v4266_v61 = vld [vmem:[%s5952_s4 + $0x58] sm:$0xff]  ;;  %v4286_v57 = vadd.f32 %v727_v59, %v4125_v5  ;;  %v4303_v59 = vld [vmem:[%s5952_s4] sm:$0xff] }
 0x103   : > { %6411 = vst [vmem:[#allocation150_spill] sm:$0xff] %v4249_v58  ;;  %1089 = vmatpush.msrb.mxu3 %v4266_v61  ;;  %v4283_v58 = vld [vmem:[%s5952_s4 + $0x30] sm:$0xff]  ;;  %1031 = vmatpush.msrb.mxu0 %v4303_v59 }
 0x104   : > { %6412 = vst [vmem:[#allocation151_spill] sm:$0xff] %v4254_v22  ;;  %v4278_v22 = vld [vmem:[%s5952_s4 + $0x28] sm:$0xff]  ;;  %1070 = vmatpush.msrb.mxu2 %v4283_v58 }
 0x105   : > { %6413 = vst [vmem:[#allocation152_spill] sm:$0xff] %v4259_v2  ;;  %1050 = vmatpush.msrb.mxu1 %v4278_v22  ;;  %v4296_v2 = vld [vmem:[%s5952_s4 + $0x38] sm:$0xff] }
 0x106   : > { %6414 = vst [vmem:[#allocation153_spill] sm:$0xff] %v4266_v61  ;;  %v4289_v61 = vadd.f32 %v756_v56, %v4127_v63  ;;  %1090 = vmatpush.msrb.mxu3 %v4296_v2  ;;  %v4308_v56 = vld [vmem:[%s5952_s4 + $0x8] sm:$0xff] }
 0x107   : > { %6415 = vst [vmem:[#allocation154_spill] sm:$0xff] %v4273_v60  ;;  %1051 = vmatpush.msrb.mxu1 %v4308_v56 }
 0x108   : > { %6416 = vst [vmem:[#allocation155_spill] sm:$0xff] %v4278_v22  ;;  %v701_v22 = vpop.f32.mrf.mxu1 }
 0x109   : > { %6417 = vst [vmem:[#allocation156_spill] sm:$0xff] %v4283_v58  ;;  %v782_v58 = vld [vmem:[#allocation2 + $0x18] sm:$0xff]  ;;  %v4326_v39 = vadd.f32 %v701_v22, %v4045_v0  ;;  %v730_v22 = vpop.f32.mrf.mxu2 }
 0x10a   : > { %6418 = vst [vmem:[#allocation157_spill] sm:$0xff] %v4286_v57  ;;  %v4313_v57 = vld [vmem:[%s5952_s4 + $0x10] sm:$0xff]  ;;  %952 = vmatmul.f32.vlgmr.msra.gmra.mxu0 %v782_v58  ;;  %972 = vmatmul.f32.vlgmr.msra.gmra.mxu1 %v782_v58 }
 0x10b   : > { %6419 = vst [vmem:[#allocation158_spill] sm:$0xff] %v4289_v61  ;;  %v672_v61 = vpop.f32.mrf.mxu0  ;;  %1071 = vmatpush.msrb.mxu2 %v4313_v57  ;;  %1012 = vmatmul.f32.vlgmr.msra.gmra.mxu3 %v782_v58 }
 0x10c   : > { %6420 = vst [vmem:[#allocation159_spill] sm:$0xff] %v4296_v2  ;;  %v4320_v2 = vld [vmem:[%s5952_s4 + $0x18] sm:$0xff]  ;;  %v4323_v60 = vadd.f32 %v672_v61, %v4043_v62  ;;  %992 = vmatmul.f32.vlgmr.msra.gmra.mxu2 %v782_v58  ;;  %1169 = vmatpush.msra.mxu0 %v3321_v6  ;;  %v759_v61 = vpop.f32.mrf.mxu3  ;;  %v4339_v58 = vadd.f32 %v730_v22, %v4125_v5 }
 0x10d   : > { %6422 = vst [vmem:[#allocation161_spill] sm:$0xff] %v4326_v39  ;;  %1091 = vmatpush.msrb.mxu3 %v4320_v2  ;;  %1189 = vmatpush.msra.mxu1 %v3326_v7  ;;  %v4342_v6 = vadd.f32 %v759_v61, %v4127_v63  ;;  %v664_v7 = vadd.f32 %v3936_v1, %v4043_v62  ;;  %v6441_v62 = vld [vmem:[#allocation26_spill] sm:$0xff] }
 0x10e   : > { %6421 = vst [vmem:[#allocation160_spill] sm:$0xff] %v4323_v60  ;;  %1209 = vmatpush.msra.mxu2 %v3331_v8  ;;  %1170 = vmatpush.msra.mxu0 %v3341_v10  ;;  %v693_v8 = vadd.f32 %v3938_v3, %v4045_v0  ;;  %v4989_v39 = vld [vmem:[%s5950_s2 + $0x58] sm:$0xff]  ;;  %v4995_v60 = vld [vmem:[%s5950_s2 + $0x20] sm:$0xff] }
 0x10f   : > { %1229 = vmatpush.msra.mxu3 %v3336_v9  ;;  %1190 = vmatpush.msra.mxu1 %v3346_v11  ;;  %6423 = vst [vmem:[#allocation162_spill] sm:$0xff] %v4339_v58  ;;  %v4977_v58 = vld [vmem:[%s5950_s2 + $0x48] sm:$0xff] }
 0x110   : > { %1210 = vmatpush.msra.mxu2 %v3353_v12  ;;  %6424 = vst [vmem:[#allocation163_spill] sm:$0xff] %v4342_v6  ;;  %1171 = vmatpush.msra.mxu0 %v3365_v14  ;;  %v826_v10 = vpop.f32.mrf.mxu1  ;;  %v4983_v6 = vld [vmem:[%s5950_s2 + $0x50] sm:$0xff] }
 0x111   : > { %1230 = vmatpush.msra.mxu3 %v3358_v13  ;;  %1191 = vmatpush.msra.mxu1 %v3370_v15  ;;  %v870_v12 = vadd.f32 %v826_v10, %v693_v8  ;;  %v751_v15 = vadd.f32 %v4017_v4, %v4127_v63 }
 0x112   : > { %1211 = vmatpush.msra.mxu2 %v3377_v16  ;;  %1172 = vmatpush.msra.mxu0 %v3389_v18 }
 0x113   : > { %1231 = vmatpush.msra.mxu3 %v3382_v17  ;;  %v806_v9 = vpop.f32.mrf.mxu0  ;;  %1192 = vmatpush.msra.mxu1 %v3394_v19  ;;  %v2467_v14 = vmul.f32 -1.442695, %v870_v12 }
 0x114   : > { %v869_v11 = vadd.f32 %v806_v9, %v664_v7  ;;  %1212 = vmatpush.msra.mxu2 %v3401_v20  ;;  %1173 = vmatpush.msra.mxu0 %v3418_v23  ;;  %v866_v16 = vpop.f32.mrf.mxu3  ;;  %v780_v7 = vld [vmem:[#allocation2] sm:$0xff] }
 0x115   : > { %1232 = vmatpush.msra.mxu3 %v3406_v21  ;;  %1193 = vmatpush.msra.mxu1 %v3423_v24  ;;  %v872_v17 = vadd.f32 %v866_v16, %v751_v15  ;;  %v846_v24 = vpop.f32.mrf.mxu2 }
 0x116   : > { %v2466_v13 = vmul.f32 -1.442695, %v869_v11  ;;  %1213 = vmatpush.msra.mxu2 %v3428_v25  ;;  %1174 = vmatpush.msra.mxu0 %v3438_v27 }
 0x117   : > { %1233 = vmatpush.msra.mxu3 %v3433_v26  ;;  %1194 = vmatpush.msra.mxu1 %v3443_v28  ;;  %v2468_v18 = vmul.f32 -1.442695, %v872_v17  ;;  %v6425_v26 = vld [vmem:[#allocation110_spill] sm:$0xff]  ;;  %v6426_v28 = vld [vmem:[#allocation11_spill] sm:$0xff] }
 0x118   : > { %2571 = vpow2.f32 %v2466_v13  ;;  %1214 = vmatpush.msra.mxu2 %v3450_v29  ;;  %1175 = vmatpush.msra.mxu0 %v3462_v31  ;;  %v722_v27 = vadd.f32 %v6425_v26, %v4125_v5  ;;  %v6427_v29 = vld [vmem:[#allocation12_spill] sm:$0xff]  ;;  %v6428_v31 = vld [vmem:[#allocation13_spill] sm:$0xff] }
 0x119   : > { %1234 = vmatpush.msra.mxu3 %v3455_v30  ;;  %2573 = vpow2.f32 %v2467_v14  ;;  %1195 = vmatpush.msra.mxu1 %v3467_v32  ;;  %v6429_v32 = vld [vmem:[#allocation14_spill] sm:$0xff] }
 0x11a   : > { %1215 = vmatpush.msra.mxu2 %v3474_v33  ;;  %1176 = vmatpush.msra.mxu0 %v3486_v35  ;;  %2575 = vpow2.f32 %v2468_v18  ;;  %v6430_v35 = vld [vmem:[#allocation15_spill] sm:$0xff] }
 0x11b   : > { %1235 = vmatpush.msra.mxu3 %v3479_v34  ;;  %1196 = vmatpush.msra.mxu1 %v3491_v36  ;;  %v871_v34 = vadd.f32 %v846_v24, %v722_v27  ;;  %v6431_v36 = vld [vmem:[#allocation16_spill] sm:$0xff]  ;;  %v6442_v27 = vld [vmem:[#allocation27_spill] sm:$0xff] }
 0x11c   : > { %1216 = vmatpush.msra.mxu2 %v3498_v37  ;;  %1177 = vmatpush.msra.mxu0 %v3515_v40  ;;  %v6432_v40 = vld [vmem:[#allocation17_spill] sm:$0xff] }
 0x11d   : > { %1236 = vmatpush.msra.mxu3 %v3503_v38  ;;  %1197 = vmatpush.msra.mxu1 %v3520_v41  ;;  %v6433_v41 = vld [vmem:[#allocation18_spill] sm:$0xff] }
 0x11e   : > { %v2572_v19 = vpop.eup %2571  ;;  %1217 = vmatpush.msra.mxu2 %v3525_v42  ;;  %1178 = vmatpush.msra.mxu0 %v3535_v44  ;;  %v6435_v44 = vld [vmem:[#allocation20_spill] sm:$0xff] }
 0x11f   : > { %1237 = vmatpush.msra.mxu3 %v3530_v43  ;;  %v2574_v20 = vpop.eup %2573  ;;  %v4378_v21 = vadd.f32 1.0, %v2572_v19  ;;  %1198 = vmatpush.msra.mxu1 %v3540_v45  ;;  %v6434_v43 = vld [vmem:[#allocation19_spill] sm:$0xff] }
 0x120   : > { %v4382_v23 = vadd.f32 1.0, %v2574_v20  ;;  %1218 = vmatpush.msra.mxu2 %v3547_v46  ;;  %1179 = vmatpush.msra.mxu0 %v3559_v48  ;;  %v2576_v25 = vpop.eup %2575  ;;  %v6436_v46 = vld [vmem:[#allocation21_spill] sm:$0xff] }
 0x121   : > { %1238 = vmatpush.msra.mxu3 %v3552_v47  ;;  %2577 = vrcp.f32 %v4378_v21  ;;  %1199 = vmatpush.msra.mxu1 %v3564_v49  ;;  %v4400_v30 = vadd.f32 1.0, %v2576_v25  ;;  %v6437_v47 = vld [vmem:[#allocation22_spill] sm:$0xff]  ;;  %v888_v49 = vand.u32 2147483648, %v4378_v21  ;;  %vm882_vm2 = vweird.f32 %v4378_v21 }
 0x122   : > { %2579 = vrcp.f32 %v4382_v23  ;;  %1219 = vmatpush.msra.mxu2 %v3571_v50  ;;  %1180 = vmatpush.msra.mxu0 %v3583_v52  ;;  %v6438_v50 = vld [vmem:[#allocation23_spill] sm:$0xff]  ;;  %v907_v52 = vand.u32 2147483648, %v4382_v23  ;;  %v905_v1 = vand.u32 2147483647, %v4382_v23  ;;  %vm901_vm3 = vweird.f32 %v4382_v23 }
 0x123   : > { %1239 = vmatpush.msra.mxu3 %v3576_v51  ;;  %1200 = vmatpush.msra.mxu1 %v3588_v53  ;;  %2581 = vrcp.f32 %v4400_v30  ;;  %v6439_v51 = vld [vmem:[#allocation24_spill] sm:$0xff]  ;;  %v889_v5 = vor.u32 1.1754944e-38, %v888_v49  ;;  %v927_v19 = vand.u32 2147483648, %v4400_v30  ;;  %vm921_vm9 = vweird.f32 %v4400_v30 }
 0x124   : > { %1220 = vmatpush.msra.mxu2 %v3595_v54  ;;  %1181 = vmatpush.msra.mxu0 %v6426_v28  ;;  %2583 = vtanh.f32 %v871_v34  ;;  %v886_v54 = vand.u32 2147483647, %v4378_v21  ;;  %v908_v61 = vor.u32 1.1754944e-38, %v907_v52  ;;  %vm906_vm7 = vcmp.eq.f32.partialorder %v905_v1, 8.507059e+37  ;;  %v6443_v28 = vld [vmem:[#allocation28_spill] sm:$0xff]  ;;  %v6449_v34 = vld [vmem:[#allocation34_spill] sm:$0xff] }
 0x125   : > { %1240 = vmatpush.msra.mxu3 %v3600_v55  ;;  %1201 = vmatpush.msra.mxu1 %v6427_v29  ;;  %v6440_v55 = vld [vmem:[#allocation25_spill] sm:$0xff]  ;;  %v925_v20 = vand.u32 2147483647, %v4400_v30  ;;  %v6463_v49 = vld [vmem:[#allocation48_spill] sm:$0xff]  ;;  %v6466_v52 = vld [vmem:[#allocation51_spill] sm:$0xff]  ;;  %6600 = vst [vmem:[#allocation34_spill] sm:$0xff] %v4983_v6 }
 0x126   : > { %1221 = vmatpush.msra.mxu2 %v6428_v31  ;;  %1182 = vmatpush.msra.mxu0 %v6430_v35  ;;  %vm887_vm6 = vcmp.eq.f32.partialorder %v886_v54, 8.507059e+37  ;;  %v6444_v29 = vld [vmem:[#allocation29_spill] sm:$0xff]  ;;  %v6445_v31 = vld [vmem:[#allocation30_spill] sm:$0xff]  ;;  %v6450_v35 = vld [vmem:[#allocation35_spill] sm:$0xff] }
 0x127   : > { %1241 = vmatpush.msra.mxu3 %v6429_v32  ;;  %v2578_v33 = vpop.eup %2577  ;;  %1202 = vmatpush.msra.mxu1 %v6431_v36  ;;  %vm926_vm11 = vcmp.eq.f32.partialorder %v925_v20, 8.507059e+37  ;;  %v6447_v32 = vld [vmem:[#allocation32_spill] sm:$0xff]  ;;  %v6468_v54 = vld [vmem:[#allocation53_spill] sm:$0xff]  ;;  %6601 = vst [vmem:[#allocation35_spill] sm:$0xff] %v4989_v39 }
 0x128   : > { %v2580_v37 = vpop.eup %2579  ;;  %v878_v38 = vmul.f32 %v2578_v33, %v4378_v21  ;;  %1222 = vmatpush.msra.mxu2 %v6432_v40  ;;  %1183 = vmatpush.msra.mxu0 %v6434_v43  ;;  %vm883_vm0 = vweird.f32 %v2578_v33  ;;  %v6451_v36 = vld [vmem:[#allocation36_spill] sm:$0xff]  ;;  %v6454_v40 = vld [vmem:[#allocation39_spill] sm:$0xff]  ;;  %v6457_v43 = vld [vmem:[#allocation42_spill] sm:$0xff] }
 0x129   : > { %1242 = vmatpush.msra.mxu3 %v6433_v41  ;;  %v897_v42 = vmul.f32 %v2580_v37, %v4382_v23  ;;  %1203 = vmatpush.msra.mxu1 %v6435_v44  ;;  %vm902_vm1 = vweird.f32 %v2580_v37  ;;  %v2582_v3 = vpop.eup %2581  ;;  %vm884_vm4 = vmor %vm882_vm2, %vm883_vm0  ;;  %v928_v23 = vor.u32 1.1754944e-38, %v927_v19  ;;  %v6455_v41 = vld [vmem:[#allocation40_spill] sm:$0xff]  ;;  %v6458_v44 = vld [vmem:[#allocation43_spill] sm:$0xff]  ;;  %6602 = vst [vmem:[#allocation36_spill] sm:$0xff] %v4995_v60 }
 0x12a   : > { %v879_v45 = vsub.f32 1.0, %v878_v38  ;;  %1223 = vmatpush.msra.mxu2 %v6436_v46  ;;  %1184 = vmatpush.msra.mxu0 %v6438_v50  ;;  %v917_v22 = vmul.f32 %v2582_v3, %v4400_v30  ;;  %vm903_vm5 = vmor %vm901_vm3, %vm902_vm1  ;;  %v2584_v9 = vpop.eup %2583  ;;  %vm922_vm8 = vweird.f32 %v2582_v3  ;;  %v6446_v30 = vld [vmem:[#allocation31_spill] sm:$0xff]  ;;  %v6453_v38 = vld [vmem:[#allocation38_spill] sm:$0xff] }
 0x12b   : > { %1243 = vmatpush.msra.mxu3 %v6437_v47  ;;  %v898_v48 = vsub.f32 1.0, %v897_v42  ;;  %1204 = vmatpush.msra.mxu1 %v6439_v51  ;;  %vm923_vm10 = vmor %vm921_vm9, %vm922_vm8  ;;  %v6456_v42 = vld [vmem:[#allocation41_spill] sm:$0xff]  ;;  %v6461_v47 = vld [vmem:[#allocation46_spill] sm:$0xff] }
 0x12c   : > { %v880_v53 = vmul.f32 %v2578_v33, %v879_v45  ;;  %1224 = vmatpush.msra.mxu2 %v6440_v55  ;;  %v918_v12 = vsub.f32 1.0, %v917_v22  ;;  %v6459_v45 = vld [vmem:[#allocation44_spill] sm:$0xff]  ;;  %v6460_v46 = vld [vmem:[#allocation45_spill] sm:$0xff]  ;;  %v6465_v51 = vld [vmem:[#allocation50_spill] sm:$0xff] }
 0x12d   : > { %1244 = vmatpush.msra.mxu3 %v6441_v62  ;;  %v899_v63 = vmul.f32 %v2580_v37, %v898_v48  ;;  %v6462_v48 = vld [vmem:[#allocation47_spill] sm:$0xff]  ;;  %v6464_v50 = vld [vmem:[#allocation49_spill] sm:$0xff]  ;;  %v6469_v55 = vld [vmem:[#allocation54_spill] sm:$0xff] }
 0x12e   : > { %v881_v4 = vadd.f32 %v2578_v33, %v880_v53  ;;  %v919_v16 = vmul.f32 %v2582_v3, %v918_v12  ;;  %v6467_v53 = vld [vmem:[#allocation52_spill] sm:$0xff]  ;;  %v6470_v62 = vld [vmem:[#allocation55_spill] sm:$0xff]  ;;  %v6472_v1 = vld [vmem:[#allocation57_spill] sm:$0xff] }
 0x12f   : > { %v900_v0 = vadd.f32 %v2580_v37, %v899_v63  ;;  %v6471_v63 = vld [vmem:[#allocation56_spill] sm:$0xff]  ;;  %v6477_v22 = vld [vmem:[#allocation62_spill] sm:$0xff]  ;;  %v6484_v12 = vld [vmem:[#allocation69_spill] sm:$0xff] }
 0x130   : > { %v885_v8 = vsel %vm884_vm4, %v2578_v33, %v881_v4  ;;  %v920_v18 = vadd.f32 %v2582_v3, %v919_v16  ;;  %v6448_v33 = vld [vmem:[#allocation33_spill] sm:$0xff]  ;;  %v6474_v4 = vld [vmem:[#allocation59_spill] sm:$0xff]  ;;  %v6491_v20 = vld [vmem:[#allocation76_spill] sm:$0xff] }
 0x131   : > { %v890_v10 = vsel %vm887_vm6, %v889_v5, %v885_v8  ;;  %v904_v11 = vsel %vm903_vm5, %v2580_v37, %v900_v0  ;;  %v6452_v37 = vld [vmem:[#allocation37_spill] sm:$0xff]  ;;  %v6475_v5 = vld [vmem:[#allocation60_spill] sm:$0xff]  ;;  %v6490_v19 = vld [vmem:[#allocation75_spill] sm:$0xff]  ;;  %6599 = vst [vmem:[#allocation33_spill] sm:$0xff] %v4977_v58 }
 0x132   : > { %v909_v13 = vsel %vm906_vm7, %v908_v61, %v904_v11  ;;  %v932_v14 = vmul.f32 %v2584_v9, %v890_v10  ;;  %v924_v21 = vsel %vm923_vm10, %v2582_v3, %v920_v18  ;;  %v6473_v3 = vld [vmem:[#allocation58_spill] sm:$0xff]  ;;  %v6476_v0 = vld [vmem:[#allocation61_spill] sm:$0xff]  ;;  %v6478_v61 = vld [vmem:[#allocation63_spill] sm:$0xff] }
 0x133   : > { %v931_v15 = vmul.f32 %v909_v13, %v780_v7  ;;  %v929_v25 = vsel %vm926_vm11, %v928_v23, %v924_v21  ;;  %v6479_v7 = vld [vmem:[#allocation64_spill] sm:$0xff]  ;;  %v6480_v8 = vld [vmem:[#allocation65_spill] sm:$0xff]  ;;  %v6481_v9 = vld [vmem:[#allocation66_spill] sm:$0xff] }
 0x134   : > { %v6482_v10 = vld [vmem:[#allocation67_spill] sm:$0xff]  ;;  %v6483_v11 = vld [vmem:[#allocation68_spill] sm:$0xff]  ;;  %v6485_v13 = vld [vmem:[#allocation70_spill] sm:$0xff] }
 0x135   : > { %v4426_v17 = vadd.f32 %v932_v14, %v931_v15  ;;  %v6486_v14 = vld [vmem:[#allocation71_spill] sm:$0xff]  ;;  %v6487_v15 = vld [vmem:[#allocation72_spill] sm:$0xff]  ;;  %v6488_v16 = vld [vmem:[#allocation73_spill] sm:$0xff] }
 0x136   : > { %v6489_v18 = vld [vmem:[#allocation74_spill] sm:$0xff]  ;;  %v6492_v21 = vld [vmem:[#allocation77_spill] sm:$0xff] }
 0x137   : > { %2585 = vtanh.f32 %v4426_v17  ;;  %v6493_v23 = vld [vmem:[#allocation78_spill] sm:$0xff] }
 0x13d   : > { %v2586_v24 = vpop.eup %2585 }
 0x13e   : > { %v935_v26 = vmul.f32 %v2586_v24, %v929_v25  ;;  %v6494_v24 = vld [vmem:[#allocation79_spill] sm:$0xff]  ;;  %v6495_v25 = vld [vmem:[#allocation80_spill] sm:$0xff] }
 0x140   : > { %1032 = vmatmul.f32.vlgmr.msrb.gmra.mxu0 %v935_v26  ;;  %1052 = vmatmul.f32.vlgmr.msrb.gmra.mxu1 %v935_v26 }
 0x141   : > { %1072 = vmatmul.f32.vlgmr.msrb.gmra.mxu2 %v935_v26  ;;  %1092 = vmatmul.f32.vlgmr.msrb.gmra.mxu3 %v935_v26 }
 0x142   : > { %1316 = vmatpush.msrb.mxu0 %v6442_v27  ;;  %1336 = vmatpush.msrb.mxu1 %v6443_v28  ;;  %v6497_v27 = vld [vmem:[#allocation82_spill] sm:$0xff]  ;;  %v6498_v28 = vld [vmem:[#allocation83_spill] sm:$0xff] }
 0x143   : > { %1356 = vmatpush.msrb.mxu2 %v6444_v29  ;;  %1376 = vmatpush.msrb.mxu3 %v6445_v31  ;;  %v6499_v29 = vld [vmem:[#allocation84_spill] sm:$0xff]  ;;  %v6500_v31 = vld [vmem:[#allocation85_spill] sm:$0xff] }
 0x144   : > { %1317 = vmatpush.msrb.mxu0 %v6446_v30  ;;  %1337 = vmatpush.msrb.mxu1 %v6447_v32  ;;  %v6501_v30 = vld [vmem:[#allocation86_spill] sm:$0xff]  ;;  %v6502_v32 = vld [vmem:[#allocation87_spill] sm:$0xff] }
 0x145   : > { %1357 = vmatpush.msrb.mxu2 %v6448_v33  ;;  %1377 = vmatpush.msrb.mxu3 %v6449_v34  ;;  %v6503_v33 = vld [vmem:[#allocation88_spill] sm:$0xff]  ;;  %v6504_v34 = vld [vmem:[#allocation89_spill] sm:$0xff] }
 0x146   : > { %1318 = vmatpush.msrb.mxu0 %v6450_v35  ;;  %1338 = vmatpush.msrb.mxu1 %v6451_v36  ;;  %v6505_v35 = vld [vmem:[#allocation90_spill] sm:$0xff]  ;;  %v6506_v36 = vld [vmem:[#allocation91_spill] sm:$0xff] }
 0x147   : > { %1358 = vmatpush.msrb.mxu2 %v6452_v37  ;;  %1378 = vmatpush.msrb.mxu3 %v6453_v38  ;;  %v6507_v37 = vld [vmem:[#allocation92_spill] sm:$0xff]  ;;  %v6508_v38 = vld [vmem:[#allocation93_spill] sm:$0xff] }
 0x148   : > { %1185 = vmatmul.f32.vlgmr.msra.gmra.mxu0 %v935_v26  ;;  %1205 = vmatmul.f32.vlgmr.msra.gmra.mxu1 %v935_v26 }
 0x149   : > { %1225 = vmatmul.f32.vlgmr.msra.gmra.mxu2 %v935_v26  ;;  %1245 = vmatmul.f32.vlgmr.msra.gmra.mxu3 %v935_v26  ;;  %v6496_v26 = vld [vmem:[#allocation81_spill] sm:$0xff] }
 0x14a   : > { %1319 = vmatpush.msrb.mxu0 %v6454_v40  ;;  %1339 = vmatpush.msrb.mxu1 %v6455_v41  ;;  %v6509_v40 = vld [vmem:[#allocation94_spill] sm:$0xff]  ;;  %v6510_v41 = vld [vmem:[#allocation95_spill] sm:$0xff] }
 0x14b   : > { %1359 = vmatpush.msrb.mxu2 %v6456_v42  ;;  %1379 = vmatpush.msrb.mxu3 %v6457_v43  ;;  %v6511_v42 = vld [vmem:[#allocation96_spill] sm:$0xff]  ;;  %v6512_v43 = vld [vmem:[#allocation97_spill] sm:$0xff] }
 0x14c   : > { %1320 = vmatpush.msrb.mxu0 %v6458_v44  ;;  %1340 = vmatpush.msrb.mxu1 %v6459_v45  ;;  %v6513_v44 = vld [vmem:[#allocation98_spill] sm:$0xff]  ;;  %v6514_v45 = vld [vmem:[#allocation99_spill] sm:$0xff] }
 0x14d   : > { %1360 = vmatpush.msrb.mxu2 %v6460_v46  ;;  %1380 = vmatpush.msrb.mxu3 %v6461_v47  ;;  %v6515_v46 = vld [vmem:[#allocation100_spill] sm:$0xff]  ;;  %v6516_v47 = vld [vmem:[#allocation101_spill] sm:$0xff] }
 0x14e   : > { %1321 = vmatpush.msrb.mxu0 %v6462_v48  ;;  %1341 = vmatpush.msrb.mxu1 %v6463_v49  ;;  %v6517_v48 = vld [vmem:[#allocation102_spill] sm:$0xff]  ;;  %v6518_v49 = vld [vmem:[#allocation103_spill] sm:$0xff] }
 0x14f   : > { %1361 = vmatpush.msrb.mxu2 %v6464_v50  ;;  %1381 = vmatpush.msrb.mxu3 %v6465_v51  ;;  %v6519_v50 = vld [vmem:[#allocation104_spill] sm:$0xff]  ;;  %v6520_v51 = vld [vmem:[#allocation105_spill] sm:$0xff] }
 0x150   : > { %1322 = vmatpush.msrb.mxu0 %v6466_v52  ;;  %1342 = vmatpush.msrb.mxu1 %v6467_v53  ;;  %v6521_v52 = vld [vmem:[#allocation106_spill] sm:$0xff]  ;;  %v6522_v53 = vld [vmem:[#allocation107_spill] sm:$0xff] }
 0x151   : > { %1362 = vmatpush.msrb.mxu2 %v6468_v54  ;;  %1382 = vmatpush.msrb.mxu3 %v6469_v55  ;;  %v6523_v54 = vld [vmem:[#allocation108_spill] sm:$0xff]  ;;  %v6524_v55 = vld [vmem:[#allocation109_spill] sm:$0xff] }
 0x152   : > { %1323 = vmatpush.msrb.mxu0 %v6470_v62  ;;  %1343 = vmatpush.msrb.mxu1 %v6471_v63  ;;  %v6525_v62 = vld [vmem:[#allocation111_spill] sm:$0xff]  ;;  %v6526_v63 = vld [vmem:[#allocation112_spill] sm:$0xff] }
 0x153   : > { %1363 = vmatpush.msrb.mxu2 %v6472_v1  ;;  %1383 = vmatpush.msrb.mxu3 %v6473_v3  ;;  %v6527_v1 = vld [vmem:[#allocation113_spill] sm:$0xff]  ;;  %v6528_v3 = vld [vmem:[#allocation114_spill] sm:$0xff] }
 0x154   : > { %1324 = vmatpush.msrb.mxu0 %v6474_v4  ;;  %1344 = vmatpush.msrb.mxu1 %v6475_v5  ;;  %v6529_v4 = vld [vmem:[#allocation115_spill] sm:$0xff]  ;;  %v6530_v5 = vld [vmem:[#allocation116_spill] sm:$0xff] }
 0x155   : > { %1364 = vmatpush.msrb.mxu2 %v6476_v0  ;;  %1384 = vmatpush.msrb.mxu3 %v6477_v22  ;;  %v6531_v0 = vld [vmem:[#allocation117_spill] sm:$0xff]  ;;  %v6532_v22 = vld [vmem:[#allocation118_spill] sm:$0xff] }
 0x156   : > { %1325 = vmatpush.msrb.mxu0 %v6478_v61  ;;  %1345 = vmatpush.msrb.mxu1 %v6479_v7  ;;  %v6533_v61 = vld [vmem:[#allocation121_spill] sm:$0xff]  ;;  %v6534_v7 = vld [vmem:[#allocation122_spill] sm:$0xff] }
 0x157   : > { %1365 = vmatpush.msrb.mxu2 %v6480_v8  ;;  %1385 = vmatpush.msrb.mxu3 %v6481_v9  ;;  %v6535_v8 = vld [vmem:[#allocation123_spill] sm:$0xff]  ;;  %v6536_v9 = vld [vmem:[#allocation124_spill] sm:$0xff] }
 0x158   : > { %1326 = vmatpush.msrb.mxu0 %v6482_v10  ;;  %1346 = vmatpush.msrb.mxu1 %v6483_v11  ;;  %v6537_v10 = vld [vmem:[#allocation125_spill] sm:$0xff]  ;;  %v6538_v11 = vld [vmem:[#allocation126_spill] sm:$0xff] }
 0x159   : > { %1366 = vmatpush.msrb.mxu2 %v6484_v12  ;;  %1386 = vmatpush.msrb.mxu3 %v6485_v13  ;;  %v6539_v12 = vld [vmem:[#allocation127_spill] sm:$0xff]  ;;  %v6540_v13 = vld [vmem:[#allocation128_spill] sm:$0xff] }
 0x15a   : > { %1327 = vmatpush.msrb.mxu0 %v6486_v14  ;;  %1347 = vmatpush.msrb.mxu1 %v6487_v15  ;;  %v6541_v14 = vld [vmem:[#allocation129_spill] sm:$0xff]  ;;  %v6542_v15 = vld [vmem:[#allocation130_spill] sm:$0xff] }
 0x15b   : > { %1367 = vmatpush.msrb.mxu2 %v6488_v16  ;;  %1387 = vmatpush.msrb.mxu3 %v6489_v18  ;;  %v6543_v16 = vld [vmem:[#allocation131_spill] sm:$0xff]  ;;  %v6544_v18 = vld [vmem:[#allocation132_spill] sm:$0xff] }
 0x15c   : > { %1328 = vmatpush.msrb.mxu0 %v6490_v19  ;;  %1348 = vmatpush.msrb.mxu1 %v6491_v20  ;;  %v6545_v19 = vld [vmem:[#allocation135_spill] sm:$0xff]  ;;  %v6546_v20 = vld [vmem:[#allocation136_spill] sm:$0xff] }
 0x15d   : > { %1368 = vmatpush.msrb.mxu2 %v6492_v21  ;;  %1388 = vmatpush.msrb.mxu3 %v6493_v23  ;;  %v6547_v21 = vld [vmem:[#allocation137_spill] sm:$0xff]  ;;  %v6548_v23 = vld [vmem:[#allocation138_spill] sm:$0xff] }
 0x15e   : > { %1329 = vmatpush.msrb.mxu0 %v6494_v24  ;;  %1349 = vmatpush.msrb.mxu1 %v6495_v25  ;;  %v6549_v24 = vld [vmem:[#allocation139_spill] sm:$0xff]  ;;  %v6550_v25 = vld [vmem:[#allocation142_spill] sm:$0xff] }
 0x15f   : > { %1369 = vmatpush.msrb.mxu2 %v6496_v26  ;;  %1389 = vmatpush.msrb.mxu3 %v6497_v27  ;;  %v6551_v26 = vld [vmem:[#allocation143_spill] sm:$0xff]  ;;  %v6552_v27 = vld [vmem:[#allocation144_spill] sm:$0xff] }
 0x160   : > { %1330 = vmatpush.msrb.mxu0 %v6498_v28  ;;  %1350 = vmatpush.msrb.mxu1 %v6499_v29  ;;  %v6553_v28 = vld [vmem:[#allocation145_spill] sm:$0xff]  ;;  %v6554_v29 = vld [vmem:[#allocation146_spill] sm:$0xff] }
 0x161   : > { %1370 = vmatpush.msrb.mxu2 %v6500_v31  ;;  %1390 = vmatpush.msrb.mxu3 %v6501_v30  ;;  %v6555_v31 = vld [vmem:[#allocation147_spill] sm:$0xff]  ;;  %v6556_v30 = vld [vmem:[#allocation148_spill] sm:$0xff] }
 0x162   : > { %1331 = vmatpush.msrb.mxu0 %v6502_v32  ;;  %1351 = vmatpush.msrb.mxu1 %v6503_v33  ;;  %v6557_v32 = vld [vmem:[#allocation149_spill] sm:$0xff]  ;;  %v6558_v33 = vld [vmem:[#allocation150_spill] sm:$0xff] }
 0x163   : > { %1371 = vmatpush.msrb.mxu2 %v6504_v34  ;;  %1391 = vmatpush.msrb.mxu3 %v6505_v35  ;;  %v6559_v34 = vld [vmem:[#allocation151_spill] sm:$0xff]  ;;  %v6560_v35 = vld [vmem:[#allocation152_spill] sm:$0xff] }
 0x164   : > { %1396 = vmatpush.msra.mxu0 %v6506_v36  ;;  %1416 = vmatpush.msra.mxu1 %v6507_v37  ;;  %v6561_v36 = vld [vmem:[#allocation153_spill] sm:$0xff]  ;;  %v6562_v37 = vld [vmem:[#allocation154_spill] sm:$0xff] }
 0x165   : > { %1436 = vmatpush.msra.mxu2 %v6508_v38  ;;  %1456 = vmatpush.msra.mxu3 %v6509_v40  ;;  %v6563_v38 = vld [vmem:[#allocation155_spill] sm:$0xff]  ;;  %v6564_v40 = vld [vmem:[#allocation156_spill] sm:$0xff] }
 0x166   : > { %1397 = vmatpush.msra.mxu0 %v6510_v41  ;;  %1417 = vmatpush.msra.mxu1 %v6511_v42  ;;  %v6565_v41 = vld [vmem:[#allocation159_spill] sm:$0xff] }
 0x167   : > { %1437 = vmatpush.msra.mxu2 %v6512_v43  ;;  %1457 = vmatpush.msra.mxu3 %v6513_v44  ;;  %v622_v44 = vld [vmem:[%s5954_s6] sm:$0xf] }
 0x168   : > { %1398 = vmatpush.msra.mxu0 %v6514_v45  ;;  %1418 = vmatpush.msra.mxu1 %v6515_v46  ;;  %v4563_v46 = vperm.slane %v622_v44, 0 }
 0x169   : > { %1438 = vmatpush.msra.mxu2 %v6516_v47  ;;  %1458 = vmatpush.msra.mxu3 %v6517_v48  ;;  %v4565_v47 = vperm.slane %v622_v44, 1 }
 0x16a   : > { %1399 = vmatpush.msra.mxu0 %v6518_v49  ;;  %1419 = vmatpush.msra.mxu1 %v6519_v50  ;;  %6566 = vst [vmem:[#allocation110_spill] sm:$0xff] %v4563_v46 }
 0x16b   : > { %1439 = vmatpush.msra.mxu2 %v6520_v51  ;;  %1459 = vmatpush.msra.mxu3 %v6521_v52  ;;  %6567 = vst [vmem:[#allocation11_spill] sm:$0xff] %v4565_v47 }
 0x16c   : > { %1400 = vmatpush.msra.mxu0 %v6522_v53  ;;  %1420 = vmatpush.msra.mxu1 %v6523_v54  ;;  %v4569_v53 = vperm.slane %v622_v44, 3 }
 0x16d   : > { %1440 = vmatpush.msra.mxu2 %v6524_v55  ;;  %1460 = vmatpush.msra.mxu3 %v6525_v62 }
 0x16e   : > { %1401 = vmatpush.msra.mxu0 %v6526_v63  ;;  %1421 = vmatpush.msra.mxu1 %v6527_v1  ;;  %6568 = vst [vmem:[#allocation12_spill] sm:$0xff] %v4569_v53  ;;  %v6569_v1 = vld [vmem:[#allocation119_spill] sm:$0xff] }
 0x16f   : > { %1441 = vmatpush.msra.mxu2 %v6528_v3  ;;  %1461 = vmatpush.msra.mxu3 %v6529_v4  ;;  %v6570_v4 = vld [vmem:[#allocation120_spill] sm:$0xff] }
 0x170   : > { %1402 = vmatpush.msra.mxu0 %v6530_v5  ;;  %1422 = vmatpush.msra.mxu1 %v6531_v0 }
 0x171   : > { %1442 = vmatpush.msra.mxu2 %v6532_v22  ;;  %1462 = vmatpush.msra.mxu3 %v6533_v61 }
 0x172   : > { %1403 = vmatpush.msra.mxu0 %v6534_v7  ;;  %1423 = vmatpush.msra.mxu1 %v6535_v8 }
 0x173   : > { %1443 = vmatpush.msra.mxu2 %v6536_v9  ;;  %1463 = vmatpush.msra.mxu3 %v6537_v10 }
 0x174   : > { %1404 = vmatpush.msra.mxu0 %v6538_v11  ;;  %1424 = vmatpush.msra.mxu1 %v6539_v12 }
 0x175   : > { %1444 = vmatpush.msra.mxu2 %v6540_v13  ;;  %1464 = vmatpush.msra.mxu3 %v6541_v14  ;;  %v4574_v14 = vperm.slane %v622_v44, 2 }
 0x176   : > { %1405 = vmatpush.msra.mxu0 %v6542_v15  ;;  %1425 = vmatpush.msra.mxu1 %v6543_v16  ;;  %v6572_v16 = vld [vmem:[#allocation134_spill] sm:$0xff] }
 0x177   : > { %1445 = vmatpush.msra.mxu2 %v6544_v18  ;;  %1465 = vmatpush.msra.mxu3 %v6545_v19  ;;  %6571 = vst [vmem:[#allocation13_spill] sm:$0xff] %v4574_v14 }
 0x178   : > { %1406 = vmatpush.msra.mxu0 %v6546_v20  ;;  %1426 = vmatpush.msra.mxu1 %v6547_v21 }
 0x179   : > { %1446 = vmatpush.msra.mxu2 %v6548_v23  ;;  %1466 = vmatpush.msra.mxu3 %v6549_v24 }
 0x17a   : > { %1407 = vmatpush.msra.mxu0 %v6550_v25  ;;  %1427 = vmatpush.msra.mxu1 %v6551_v26 }
 0x17b   : > { %1447 = vmatpush.msra.mxu2 %v6552_v27  ;;  %1467 = vmatpush.msra.mxu3 %v6553_v28 }
 0x17c   : > { %1408 = vmatpush.msra.mxu0 %v6554_v29  ;;  %1428 = vmatpush.msra.mxu1 %v6555_v31 }
 0x17d   : > { %1448 = vmatpush.msra.mxu2 %v6556_v30  ;;  %1468 = vmatpush.msra.mxu3 %v6557_v32 }
 0x17e   : > { %1409 = vmatpush.msra.mxu0 %v6558_v33  ;;  %1429 = vmatpush.msra.mxu1 %v6559_v34 }
 0x17f   : > { %1449 = vmatpush.msra.mxu2 %v6560_v35  ;;  %1469 = vmatpush.msra.mxu3 %v6561_v36 }
 0x180   : > { %1410 = vmatpush.msra.mxu0 %v6562_v37  ;;  %1430 = vmatpush.msra.mxu1 %v6563_v38  ;;  %v6573_v38 = vld [vmem:[#allocation133_spill] sm:$0xff] }
 0x181   : > { %1450 = vmatpush.msra.mxu2 %v6564_v40  ;;  %1470 = vmatpush.msra.mxu3 %v6565_v41 }
 0x182   : > { %1411 = vmatpush.msra.mxu0 %v4303_v59  ;;  %1431 = vmatpush.msra.mxu1 %v4308_v56 }
 0x183   : > { %1451 = vmatpush.msra.mxu2 %v4313_v57  ;;  %1471 = vmatpush.msra.mxu3 %v4320_v2 }
 0x187   : > { %v953_v42 = vpop.f32.mrf.mxu0  ;;  %v973_v43 = vpop.f32.mrf.mxu1 }
 0x18e   : > { %v1013_v45 = vpop.f32.mrf.mxu3 }
 0x18f   : > { %v993_v56 = vpop.f32.mrf.mxu2 }
 0x1bd   : > { %v1033_v48 = vpop.f32.mrf.mxu0  ;;  %v1053_v49 = vpop.f32.mrf.mxu1 }
 0x1be   : > { %v1034_v59 = vadd.f32 %v1033_v48, %v953_v42  ;;  %v1054_v50 = vadd.f32 %v1053_v49, %v973_v43 }
 0x1c0   : > { %v1096_v57 = vadd.f32 %v1034_v59, %v4563_v46  ;;  %v1097_v2 = vadd.f32 %v1054_v50, %v4565_v47  ;;  %v4647_v59 = vld [vmem:[%s5950_s2 + $0x1e0] sm:$0xff] }
 0x1c2   : > { %v2469_v51 = vmul.f32 -1.442695, %v1096_v57  ;;  %v2470_v52 = vmul.f32 -1.442695, %v1097_v2 }
 0x1c4   : > { %2587 = vpow2.f32 %v2469_v51  ;;  %v1093_v54 = vpop.f32.mrf.mxu3  ;;  %v1073_v7 = vpop.f32.mrf.mxu2 }
 0x1c5   : > { %2589 = vpow2.f32 %v2470_v52  ;;  %v1094_v55 = vadd.f32 %v1093_v54, %v1013_v45  ;;  %v1186_v62 = vpop.f32.mrf.mxu0  ;;  %v1206_v63 = vpop.f32.mrf.mxu1  ;;  %v1074_v15 = vadd.f32 %v1073_v7, %v993_v56 }
 0x1c6   : > { %v1249_v3 = vadd.f32 %v1186_v62, %v6569_v1  ;;  %v1250_v5 = vadd.f32 %v1206_v63, %v6570_v4  ;;  %v784_v62 = vld [vmem:[#allocation2 + $0x8] sm:$0xff] }
 0x1c7   : > { %v1099_v0 = vadd.f32 %v1094_v55, %v4569_v53  ;;  %v1098_v24 = vadd.f32 %v1074_v15, %v4574_v14 }
 0x1c8   : > { %v2472_v22 = vmul.f32 -1.442695, %v1249_v3  ;;  %v2473_v61 = vmul.f32 -1.442695, %v1250_v5 }
 0x1c9   : > { %v2471_v8 = vmul.f32 -1.442695, %v1099_v0 }
 0x1ca   : > { %v2588_v9 = vpop.eup %2587  ;;  %2591 = vpow2.f32 %v2472_v22 }
 0x1cb   : > { %v2590_v10 = vpop.eup %2589  ;;  %v1103_v11 = vadd.f32 1.0, %v2588_v9  ;;  %2593 = vpow2.f32 %v2471_v8 }
 0x1cc   : > { %v1122_v12 = vadd.f32 1.0, %v2590_v10  ;;  %2595 = vpow2.f32 %v2473_v61  ;;  %v1246_v13 = vpop.f32.mrf.mxu3  ;;  %v1226_v28 = vpop.f32.mrf.mxu2 }
 0x1cd   : > { %2597 = vrcp.f32 %v1103_v11  ;;  %v1252_v18 = vadd.f32 %v1246_v13, %v6572_v16  ;;  %v1113_v32 = vand.u32 2147483647, %v1103_v11  ;;  %v1115_v33 = vand.u32 2147483648, %v1103_v11 }
 0x1ce   : > { %2599 = vrcp.f32 %v1122_v12  ;;  %v1134_v35 = vand.u32 2147483648, %v1122_v12  ;;  %v1132_v36 = vand.u32 2147483647, %v1122_v12  ;;  %v1251_v40 = vadd.f32 %v1226_v28, %v6573_v38 }
 0x1cf   : > { %v2474_v29 = vmul.f32 -1.442695, %v1252_v18  ;;  %vm1128_vm12 = vweird.f32 %v1122_v12  ;;  %vm1109_vm13 = vweird.f32 %v1103_v11  ;;  %vm4588_vm15 = vcmp.eq.f32.partialorder %v1113_v32, 8.507059e+37 }
 0x1d0   : > { %v2592_v19 = vpop.eup %2591  ;;  %v1116_v44 = vor.u32 1.1754944e-38, %v1115_v33  ;;  %v1135_v49 = vor.u32 1.1754944e-38, %v1134_v35  ;;  %vm4592_vm1 = vcmp.eq.f32.partialorder %v1132_v36, 8.507059e+37 }
 0x1d1   : > { %v2594_v20 = vpop.eup %2593  ;;  %v4577_v21 = vadd.f32 1.0, %v2592_v19 }
 0x1d2   : > { %v2596_v23 = vpop.eup %2595  ;;  %v4580_v25 = vadd.f32 1.0, %v2594_v20 }
 0x1d3   : > { %v2598_v26 = vpop.eup %2597  ;;  %2601 = vrcp.f32 %v4577_v21  ;;  %v4583_v27 = vadd.f32 1.0, %v2596_v23  ;;  %vm1262_vm2 = vweird.f32 %v4577_v21  ;;  %v1266_v54 = vand.u32 2147483647, %v4577_v21 }
 0x1d4   : > { %v2600_v31 = vpop.eup %2599  ;;  %v1105_v30 = vmul.f32 %v2598_v26, %v1103_v11  ;;  %2603 = vrcp.f32 %v4580_v25  ;;  %vm1110_vm14 = vweird.f32 %v2598_v26  ;;  %vm1148_vm6 = vweird.f32 %v4580_v25 }
 0x1d5   : > { %v1124_v34 = vmul.f32 %v2600_v31, %v1122_v12  ;;  %2605 = vrcp.f32 %v4583_v27  ;;  %vm1129_vm0 = vweird.f32 %v2600_v31  ;;  %vm1111_vm3 = vmor %vm1109_vm13, %vm1110_vm14  ;;  %vm1281_vm4 = vweird.f32 %v4583_v27 }
 0x1d6   : > { %v1106_v37 = vsub.f32 1.0, %v1105_v30  ;;  %2607 = vtanh.f32 %v1098_v24  ;;  %vm1130_vm5 = vmor %vm1128_vm12, %vm1129_vm0  ;;  %v1268_v4 = vand.u32 2147483648, %v4577_v21  ;;  %v1287_v13 = vand.u32 2147483648, %v4583_v27 }
 0x1d7   : > { %v1125_v41 = vsub.f32 1.0, %v1124_v34  ;;  %2609 = vpow2.f32 %v2474_v29  ;;  %v1285_v20 = vand.u32 2147483647, %v4583_v27  ;;  %vm1267_vm10 = vcmp.eq.f32.partialorder %v1266_v54, 8.507059e+37  ;;  %v4683_v54 = vld [vmem:[%s5950_s2 + $0x1c8] sm:$0xff] }
 0x1d8   : > { %v1107_v42 = vmul.f32 %v2598_v26, %v1106_v37  ;;  %2611 = vtanh.f32 %v1251_v40  ;;  %v1269_v24 = vor.u32 1.1754944e-38, %v1268_v4  ;;  %v1288_v30 = vor.u32 1.1754944e-38, %v1287_v13  ;;  %v4707_v4 = vld [vmem:[%s5950_s2 + $0x1a8] sm:$0xff]  ;;  %v4767_v13 = vld [vmem:[%s5950_s2 + $0x170] sm:$0xff] }
 0x1d9   : > { %v2602_v45 = vpop.eup %2601  ;;  %v1126_v48 = vmul.f32 %v2600_v31, %v1125_v41  ;;  %vm1286_vm13 = vcmp.eq.f32.partialorder %v1285_v20, 8.507059e+37  ;;  %v1152_v34 = vand.u32 2147483647, %v4580_v25  ;;  %v4797_v20 = vld [vmem:[%s5950_s2 + $0x158] sm:$0xff] }
 0x1da   : > { %v4596_v50 = vpop.eup %2603  ;;  %v1108_v56 = vadd.f32 %v2598_v26, %v1107_v42  ;;  %v1258_v57 = vmul.f32 %v2602_v45, %v4577_v21  ;;  %vm1263_vm7 = vweird.f32 %v2602_v45 }
 0x1db   : > { %v2606_v2 = vpop.eup %2605  ;;  %v1127_v51 = vadd.f32 %v2600_v31, %v1126_v48  ;;  %v1144_v52 = vmul.f32 %v4596_v50, %v4580_v25  ;;  %vm1264_vm9 = vmor %vm1262_vm2, %vm1263_vm7  ;;  %vm1149_vm11 = vweird.f32 %v4596_v50 }
 0x1dc   : > { %v2608_v55 = vpop.eup %2607  ;;  %v1112_v63 = vsel %vm1111_vm3, %v2598_v26, %v1108_v56  ;;  %v1259_v1 = vsub.f32 1.0, %v1258_v57  ;;  %v1277_v3 = vmul.f32 %v2606_v2, %v4583_v27  ;;  %vm1282_vm8 = vweird.f32 %v2606_v2  ;;  %vm1150_vm14 = vmor %vm1148_vm6, %vm1149_vm11  ;;  %v4663_v57 = vld [vmem:[%s5950_s2 + $0x1f0] sm:$0xff]  ;;  %v4947_v56 = vld [vmem:[%s5950_s2 + $0x60] sm:$0xff] }
 0x1dd   : > { %v2610_v5 = vpop.eup %2609  ;;  %v1117_v0 = vsel %vm4588_vm15, %v1116_v44, %v1112_v63  ;;  %v1131_v22 = vsel %vm1130_vm5, %v2600_v31, %v1127_v51  ;;  %v1145_v61 = vsub.f32 1.0, %v1144_v52  ;;  %v1154_v31 = vand.u32 2147483648, %v4580_v25  ;;  %vm1283_vm12 = vmor %vm1281_vm4, %vm1282_vm8  ;;  %v4677_v52 = vld [vmem:[%s5950_s2 + $0x1c0] sm:$0xff]  ;;  %v4689_v63 = vld [vmem:[%s5950_s2 + $0x1d0] sm:$0xff]  ;;  %6594 = vst [vmem:[#allocation28_spill] sm:$0xff] %v4947_v56 }
 0x1de   : > { %v1136_v7 = vsel %vm4592_vm1, %v1135_v49, %v1131_v22  ;;  %v1159_v8 = vmul.f32 %v2608_v55, %v1117_v0  ;;  %v1278_v9 = vsub.f32 1.0, %v1277_v3  ;;  %v1260_v10 = vmul.f32 %v2602_v45, %v1259_v1  ;;  %v2612_v16 = vpop.eup %2611  ;;  %v4695_v1 = vld [vmem:[%s5950_s2 + $0x1d8] sm:$0xff]  ;;  %v4701_v3 = vld [vmem:[%s5950_s2 + $0x1a0] sm:$0xff]  ;;  %v4713_v0 = vld [vmem:[%s5950_s2 + $0x1b0] sm:$0xff] }
 0x1df   : > { %v1158_v11 = vmul.f32 %v1136_v7, %v784_v62  ;;  %v1146_v12 = vmul.f32 %v4596_v50, %v1145_v61  ;;  %v4616_v15 = vadd.f32 1.0, %v2610_v5  ;;  %v1155_v40 = vor.u32 1.1754944e-38, %v1154_v31  ;;  %v4719_v22 = vld [vmem:[%s5950_s2 + $0x1b8] sm:$0xff]  ;;  %v4727_v7 = vld [vmem:[%s5950_s2 + $0x180] sm:$0xff] }
 0x1e0   : > { %v1279_v18 = vmul.f32 %v2606_v2, %v1278_v9  ;;  %v1261_v19 = vadd.f32 %v2602_v45, %v1260_v10  ;;  %vm1153_vm15 = vcmp.eq.f32.partialorder %v1152_v34, 8.507059e+37  ;;  %v4739_v9 = vld [vmem:[%s5950_s2 + $0x190] sm:$0xff]  ;;  %v4745_v10 = vld [vmem:[%s5950_s2 + $0x198] sm:$0xff]  ;;  %v4827_v31 = vld [vmem:[%s5950_s2 + $0x100] sm:$0xff] }
 0x1e1   : > { %v4619_v23 = vadd.f32 %v1159_v8, %v1158_v11  ;;  %2613 = vrcp.f32 %v4616_v15  ;;  %v1147_v29 = vadd.f32 %v4596_v50, %v1146_v12  ;;  %vm1301_vm1 = vweird.f32 %v4616_v15  ;;  %v4733_v8 = vld [vmem:[%s5950_s2 + $0x188] sm:$0xff]  ;;  %v4755_v11 = vld [vmem:[%s5950_s2 + $0x160] sm:$0xff] }
 0x1e2   : > { %v1265_v26 = vsel %vm1264_vm9, %v2602_v45, %v1261_v19  ;;  %v1280_v28 = vadd.f32 %v2606_v2, %v1279_v18  ;;  %v1305_v49 = vand.u32 2147483647, %v4616_v15  ;;  %v4761_v12 = vld [vmem:[%s5950_s2 + $0x168] sm:$0xff]  ;;  %v4791_v19 = vld [vmem:[%s5950_s2 + $0x150] sm:$0xff] }
 0x1e3   : > { %2615 = vtanh.f32 %v4619_v23  ;;  %v1270_v21 = vsel %vm1267_vm10, %v1269_v24, %v1265_v26  ;;  %v1151_v37 = vsel %vm1150_vm14, %v4596_v50, %v1147_v29  ;;  %v4653_v50 = vld [vmem:[%s5950_s2 + $0x1e8] sm:$0xff]  ;;  %v4803_v24 = vld [vmem:[%s5950_s2 + $0x120] sm:$0xff]  ;;  %v4821_v29 = vld [vmem:[%s5950_s2 + $0x138] sm:$0xff] }
 0x1e4   : > { %v1284_v32 = vsel %vm1283_vm12, %v2606_v2, %v1280_v28  ;;  %v1312_v33 = vmul.f32 %v2612_v16, %v1270_v21  ;;  %v1156_v43 = vsel %vm1153_vm15, %v1155_v40, %v1151_v37  ;;  %v4669_v2 = vld [vmem:[%s5950_s2 + $0x1f8] sm:$0xff]  ;;  %vm1306_vm3 = vcmp.eq.f32.partialorder %v1305_v49, 8.507059e+37  ;;  %v4779_v16 = vld [vmem:[%s5950_s2 + $0x140] sm:$0xff]  ;;  %v4785_v18 = vld [vmem:[%s5950_s2 + $0x148] sm:$0xff] }
 0x1e5   : > { %v1289_v35 = vsel %vm1286_vm13, %v1288_v30, %v1284_v32  ;;  %v4809_v26 = vld [vmem:[%s5950_s2 + $0x128] sm:$0xff]  ;;  %v4815_v28 = vld [vmem:[%s5950_s2 + $0x130] sm:$0xff]  ;;  %v4845_v32 = vld [vmem:[%s5950_s2 + $0x118] sm:$0xff] }
 0x1e6   : > { %v1311_v36 = vmul.f32 %v1289_v35, %v4426_v17  ;;  %v1307_v17 = vand.u32 2147483648, %v4616_v15  ;;  %v4833_v30 = vld [vmem:[%s5950_s2 + $0x108] sm:$0xff]  ;;  %v4839_v21 = vld [vmem:[%s5950_s2 + $0x110] sm:$0xff]  ;;  %v4875_v37 = vld [vmem:[%s5950_s2 + $0xc0] sm:$0xff] }
 0x1e7   : > { %v2614_v38 = vpop.eup %2613  ;;  %v4857_v34 = vld [vmem:[%s5950_s2 + $0xe8] sm:$0xff]  ;;  %v4863_v35 = vld [vmem:[%s5950_s2 + $0xf0] sm:$0xff]  ;;  %6582 = vst [vmem:[#allocation16_spill] sm:$0xff] %v4875_v37  ;;  %v4941_v49 = vld [vmem:[%s5950_s2 + $0x98] sm:$0xff] }
 0x1e8   : > { %v4636_v27 = vadd.f32 %v1312_v33, %v1311_v36  ;;  %v1297_v41 = vmul.f32 %v2614_v38, %v4616_v15  ;;  %vm1302_vm0 = vweird.f32 %v2614_v38  ;;  %v1308_v62 = vor.u32 1.1754944e-38, %v1307_v17  ;;  %v4773_v15 = vld [vmem:[%s5950_s2 + $0x178] sm:$0xff]  ;;  %v4851_v33 = vld [vmem:[%s5950_s2 + $0xe0] sm:$0xff]  ;;  %6580 = vst [vmem:[#allocation14_spill] sm:$0xff] %v4863_v35  ;;  %v4887_v40 = vld [vmem:[%s5950_s2 + $0xd0] sm:$0xff] }
 0x1e9   : > { %v2616_v42 = vpop.eup %2615  ;;  %vm4656_vm2 = vmor %vm1301_vm1, %vm1302_vm0  ;;  %v4869_v36 = vld [vmem:[%s5950_s2 + $0xf8] sm:$0xff]  ;;  %6584 = vst [vmem:[#allocation18_spill] sm:$0xff] %v4887_v40  ;;  %v4929_v17 = vld [vmem:[%s5950_s2 + $0x88] sm:$0xff] }
 0x1ea   : > { %v1298_v44 = vsub.f32 1.0, %v1297_v41  ;;  %v1162_v45 = vmul.f32 %v2616_v42, %v1156_v43  ;;  %2617 = vtanh.f32 %v4636_v27  ;;  %6581 = vst [vmem:[#allocation15_spill] sm:$0xff] %v4869_v36  ;;  %v4893_v41 = vld [vmem:[%s5950_s2 + $0xd8] sm:$0xff]  ;;  %v4899_v42 = vld [vmem:[%s5950_s2 + $0xa0] sm:$0xff]  ;;  %v4905_v43 = vld [vmem:[%s5950_s2 + $0xa8] sm:$0xff] }
 0x1eb   : > { %6585 = vst [vmem:[#allocation19_spill] sm:$0xff] %v4893_v41 }
 0x1ec   : > { %v1299_v25 = vmul.f32 %v2614_v38, %v1298_v44  ;;  %1163 = vst [vmem:[%s3122_s9] sm:$0xff] %v1162_v45  ;;  %1332 = vmatmul.f32.vlgmr.msrb.gmra.mxu0 %v1162_v45  ;;  %1352 = vmatmul.f32.vlgmr.msrb.gmra.mxu1 %v1162_v45  ;;  %v4911_v44 = vld [vmem:[%s5950_s2 + $0xb0] sm:$0xff] }
 0x1ed   : > { %1372 = vmatmul.f32.vlgmr.msrb.gmra.mxu2 %v1162_v45  ;;  %1392 = vmatmul.f32.vlgmr.msrb.gmra.mxu3 %v1162_v45  ;;  %6586 = vst [vmem:[#allocation20_spill] sm:$0xff] %v4899_v42  ;;  %v4917_v45 = vld [vmem:[%s5950_s2 + $0xb8] sm:$0xff] }
 0x1ee   : > { %v1300_v48 = vadd.f32 %v2614_v38, %v1299_v25  ;;  %1550 = vmatpush.msrb.mxu0 %v4647_v59  ;;  %1570 = vmatpush.msrb.mxu1 %v4653_v50  ;;  %6587 = vst [vmem:[#allocation21_spill] sm:$0xff] %v4905_v43  ;;  %v4923_v25 = vld [vmem:[%s5950_s2 + $0x80] sm:$0xff] }
 0x1ef   : > { %1590 = vmatpush.msrb.mxu2 %v4663_v57  ;;  %1610 = vmatpush.msrb.mxu3 %v4669_v2  ;;  %6588 = vst [vmem:[#allocation22_spill] sm:$0xff] %v4911_v44 }
 0x1f0   : > { %v1304_v51 = vsel %vm4656_vm2, %v2614_v38, %v1300_v48  ;;  %1551 = vmatpush.msrb.mxu0 %v4677_v52  ;;  %1571 = vmatpush.msrb.mxu1 %v4683_v54  ;;  %v2618_v55 = vpop.eup %2617  ;;  %v4881_v38 = vld [vmem:[%s5950_s2 + $0xc8] sm:$0xff]  ;;  %6589 = vst [vmem:[#allocation23_spill] sm:$0xff] %v4917_v45  ;;  %v4935_v48 = vld [vmem:[%s5950_s2 + $0x90] sm:$0xff] }
 0x1f1   : > { %1591 = vmatpush.msrb.mxu2 %v4689_v63  ;;  %1611 = vmatpush.msrb.mxu3 %v4695_v1  ;;  %v1309_v5 = vsel %vm1306_vm3, %v1308_v62, %v1304_v51  ;;  %6583 = vst [vmem:[#allocation17_spill] sm:$0xff] %v4881_v38  ;;  %v4953_v51 = vld [vmem:[%s5950_s2 + $0x68] sm:$0xff]  ;;  %v4965_v62 = vld [vmem:[%s5950_s2 + $0x78] sm:$0xff] }
 0x1f2   : > { %1552 = vmatpush.msrb.mxu0 %v4701_v3  ;;  %1572 = vmatpush.msrb.mxu1 %v4707_v4  ;;  %v4722_v61 = vmul.f32 %v2618_v55, %v1309_v5  ;;  %6590 = vst [vmem:[#allocation24_spill] sm:$0xff] %v4923_v25  ;;  %v4959_v55 = vld [vmem:[%s5950_s2 + $0x70] sm:$0xff]  ;;  %v4971_v5 = vld [vmem:[%s5950_s2 + $0x40] sm:$0xff] }
 0x1f3   : > { %1592 = vmatpush.msrb.mxu2 %v4713_v0  ;;  %1612 = vmatpush.msrb.mxu3 %v4719_v22  ;;  %6591 = vst [vmem:[#allocation25_spill] sm:$0xff] %v4929_v17 }
 0x1f4   : > { %1553 = vmatpush.msrb.mxu0 %v4727_v7  ;;  %1573 = vmatpush.msrb.mxu1 %v4733_v8  ;;  %6592 = vst [vmem:[#allocation26_spill] sm:$0xff] %v4935_v48 }
 0x1f5   : > { %1593 = vmatpush.msrb.mxu2 %v4739_v9  ;;  %1613 = vmatpush.msrb.mxu3 %v4745_v10  ;;  %6593 = vst [vmem:[#allocation27_spill] sm:$0xff] %v4941_v49 }
 0x1f6   : > { %1412 = vmatmul.f32.vlgmr.msra.gmra.mxu0 %v4722_v61  ;;  %1432 = vmatmul.f32.vlgmr.msra.gmra.mxu1 %v4722_v61  ;;  %6595 = vst [vmem:[#allocation29_spill] sm:$0xff] %v4953_v51 }
 0x1f7   : > { %1452 = vmatmul.f32.vlgmr.msra.gmra.mxu2 %v4722_v61  ;;  %1472 = vmatmul.f32.vlgmr.msra.gmra.mxu3 %v4722_v61  ;;  %6596 = vst [vmem:[#allocation30_spill] sm:$0xff] %v4959_v55 }
 0x1f8   : > { %1554 = vmatpush.msrb.mxu0 %v4755_v11  ;;  %1574 = vmatpush.msrb.mxu1 %v4761_v12  ;;  %6597 = vst [vmem:[#allocation31_spill] sm:$0xff] %v4965_v62 }
 0x1f9   : > { %1594 = vmatpush.msrb.mxu2 %v4767_v13  ;;  %1614 = vmatpush.msrb.mxu3 %v4773_v15  ;;  %6598 = vst [vmem:[#allocation32_spill] sm:$0xff] %v4971_v5 }
 0x1fa   : > { %1555 = vmatpush.msrb.mxu0 %v4779_v16  ;;  %1575 = vmatpush.msrb.mxu1 %v4785_v18 }
 0x1fb   : > { %1595 = vmatpush.msrb.mxu2 %v4791_v19  ;;  %1615 = vmatpush.msrb.mxu3 %v4797_v20 }
 0x1fc   : > { %1556 = vmatpush.msrb.mxu0 %v4803_v24  ;;  %1576 = vmatpush.msrb.mxu1 %v4809_v26 }
 0x1fd   : > { %1596 = vmatpush.msrb.mxu2 %v4815_v28  ;;  %1616 = vmatpush.msrb.mxu3 %v4821_v29 }
 0x1fe   : > { %1557 = vmatpush.msrb.mxu0 %v4827_v31  ;;  %1577 = vmatpush.msrb.mxu1 %v4833_v30 }
 0x1ff   : > { %1597 = vmatpush.msrb.mxu2 %v4839_v21  ;;  %1617 = vmatpush.msrb.mxu3 %v4845_v32 }
 0x200   : > { %1558 = vmatpush.msrb.mxu0 %v4851_v33  ;;  %1578 = vmatpush.msrb.mxu1 %v4857_v34 }
 0x201   : > { %1598 = vmatpush.msrb.mxu2 %v4863_v35  ;;  %1618 = vmatpush.msrb.mxu3 %v4869_v36 }
 0x202   : > { %1559 = vmatpush.msrb.mxu0 %v4875_v37  ;;  %1579 = vmatpush.msrb.mxu1 %v4881_v38 }
 0x203   : > { %1599 = vmatpush.msrb.mxu2 %v4887_v40  ;;  %1619 = vmatpush.msrb.mxu3 %v4893_v41 }
 0x204   : > { %1560 = vmatpush.msrb.mxu0 %v4899_v42  ;;  %1580 = vmatpush.msrb.mxu1 %v4905_v43 }
 0x205   : > { %1600 = vmatpush.msrb.mxu2 %v4911_v44  ;;  %1620 = vmatpush.msrb.mxu3 %v4917_v45 }
 0x206   : > { %1561 = vmatpush.msrb.mxu0 %v4923_v25  ;;  %1581 = vmatpush.msrb.mxu1 %v4929_v17 }
 0x207   : > { %1601 = vmatpush.msrb.mxu2 %v4935_v48  ;;  %1621 = vmatpush.msrb.mxu3 %v4941_v49 }
 0x208   : > { %1562 = vmatpush.msrb.mxu0 %v4947_v56  ;;  %1582 = vmatpush.msrb.mxu1 %v4953_v51 }
 0x209   : > { %1602 = vmatpush.msrb.mxu2 %v4959_v55  ;;  %1622 = vmatpush.msrb.mxu3 %v4965_v62 }
 0x20a   : > { %1563 = vmatpush.msrb.mxu0 %v4971_v5  ;;  %1583 = vmatpush.msrb.mxu1 %v4977_v58  ;;  %v5001_v58 = vld [vmem:[%s5950_s2 + $0x28] sm:$0xff]  ;;  %v5056_v5 = vld [vmem:[#allocation5 + $0x1c0] sm:$0xff] }
 0x20b   : > { %1603 = vmatpush.msrb.mxu2 %v4983_v6  ;;  %1623 = vmatpush.msrb.mxu3 %v4989_v39  ;;  %6603 = vst [vmem:[#allocation37_spill] sm:$0xff] %v5001_v58  ;;  %v5007_v6 = vld [vmem:[%s5950_s2 + $0x30] sm:$0xff]  ;;  %v5013_v39 = vld [vmem:[%s5950_s2 + $0x38] sm:$0xff] }
 0x20c   : > { %1564 = vmatpush.msrb.mxu0 %v4995_v60  ;;  %1584 = vmatpush.msrb.mxu1 %v5001_v58  ;;  %6604 = vst [vmem:[#allocation38_spill] sm:$0xff] %v5007_v6  ;;  %v5019_v60 = vld [vmem:[%s5950_s2] sm:$0xff]  ;;  %v5025_v58 = vld [vmem:[%s5950_s2 + $0x8] sm:$0xff] }
 0x20d   : > { %1604 = vmatpush.msrb.mxu2 %v5007_v6  ;;  %6605 = vst [vmem:[#allocation39_spill] sm:$0xff] %v5013_v39  ;;  %1624 = vmatpush.msrb.mxu3 %v5013_v39  ;;  %v5031_v6 = vld [vmem:[%s5950_s2 + $0x10] sm:$0xff]  ;;  %v5037_v39 = vld [vmem:[%s5950_s2 + $0x18] sm:$0xff] }
 0x20e   : > { %6606 = vst [vmem:[#allocation40_spill] sm:$0xff] %v5019_v60  ;;  %1565 = vmatpush.msrb.mxu0 %v5019_v60  ;;  %1585 = vmatpush.msrb.mxu1 %v5025_v58  ;;  %v5050_v60 = vld [vmem:[#allocation5 + $0x1f0] sm:$0xff] }
 0x20f   : > { %6607 = vst [vmem:[#allocation41_spill] sm:$0xff] %v5025_v58  ;;  %1605 = vmatpush.msrb.mxu2 %v5031_v6  ;;  %1625 = vmatpush.msrb.mxu3 %v5037_v39  ;;  %v5044_v58 = vld [vmem:[#allocation5 + $0x1e0] sm:$0xff] }
 0x210   : > { %6608 = vst [vmem:[#allocation42_spill] sm:$0xff] %v5031_v6  ;;  %1566 = vmatmul.f32.vlgmr.msrb.gmra.mxu0 %v4722_v61  ;;  %1586 = vmatmul.f32.vlgmr.msrb.gmra.mxu1 %v4722_v61  ;;  %v5047_v6 = vld [vmem:[#allocation5 + $0x1e8] sm:$0xff] }
 0x211   : > { %6609 = vst [vmem:[#allocation43_spill] sm:$0xff] %v5037_v39  ;;  %1606 = vmatmul.f32.vlgmr.msrb.gmra.mxu2 %v4722_v61  ;;  %1626 = vmatmul.f32.vlgmr.msrb.gmra.mxu3 %v4722_v61  ;;  %v5053_v39 = vld [vmem:[#allocation5 + $0x1f8] sm:$0xff]  ;;  %v5059_v61 = vld [vmem:[#allocation5 + $0x1c8] sm:$0xff] }
 0x212   : > { %6610 = vst [vmem:[#allocation44_spill] sm:$0xff] %v5044_v58  ;;  %1697 = vmatpush.msra.mxu0 %v5044_v58  ;;  %1717 = vmatpush.msra.mxu1 %v5047_v6  ;;  %v5062_v58 = vld [vmem:[#allocation5 + $0x1d0] sm:$0xff] }
 0x213   : > { %6611 = vst [vmem:[#allocation45_spill] sm:$0xff] %v5047_v6  ;;  %1737 = vmatpush.msra.mxu2 %v5050_v60  ;;  %1757 = vmatpush.msra.mxu3 %v5053_v39  ;;  %v5065_v6 = vld [vmem:[#allocation5 + $0x1d8] sm:$0xff] }
 0x214   : > { %6612 = vst [vmem:[#allocation46_spill] sm:$0xff] %v5050_v60  ;;  %1698 = vmatpush.msra.mxu0 %v5056_v5  ;;  %1718 = vmatpush.msra.mxu1 %v5059_v61  ;;  %v5068_v60 = vld [vmem:[#allocation5 + $0x1a0] sm:$0xff] }
 0x215   : > { %6613 = vst [vmem:[#allocation47_spill] sm:$0xff] %v5053_v39  ;;  %1738 = vmatpush.msra.mxu2 %v5062_v58  ;;  %1758 = vmatpush.msra.mxu3 %v5065_v6  ;;  %v5071_v39 = vld [vmem:[#allocation5 + $0x1a8] sm:$0xff] }
 0x216   : > { %6614 = vst [vmem:[#allocation48_spill] sm:$0xff] %v5056_v5  ;;  %1699 = vmatpush.msra.mxu0 %v5068_v60  ;;  %1719 = vmatpush.msra.mxu1 %v5071_v39  ;;  %v5074_v5 = vld [vmem:[#allocation5 + $0x1b0] sm:$0xff] }
 0x217   : > { %6615 = vst [vmem:[#allocation49_spill] sm:$0xff] %v5059_v61  ;;  %1739 = vmatpush.msra.mxu2 %v5074_v5  ;;  %v5077_v61 = vld [vmem:[#allocation5 + $0x1b8] sm:$0xff] }
 0x218   : > { %6616 = vst [vmem:[#allocation50_spill] sm:$0xff] %v5062_v58  ;;  %1759 = vmatpush.msra.mxu3 %v5077_v61  ;;  %v5080_v58 = vld [vmem:[#allocation5 + $0x180] sm:$0xff] }
 0x219   : > { %6617 = vst [vmem:[#allocation51_spill] sm:$0xff] %v5065_v6  ;;  %1700 = vmatpush.msra.mxu0 %v5080_v58  ;;  %v5083_v6 = vld [vmem:[#allocation5 + $0x188] sm:$0xff] }
 0x21a   : > { %6618 = vst [vmem:[#allocation52_spill] sm:$0xff] %v5068_v60  ;;  %1720 = vmatpush.msra.mxu1 %v5083_v6  ;;  %v5086_v60 = vld [vmem:[#allocation5 + $0x190] sm:$0xff] }
 0x21b   : > { %6619 = vst [vmem:[#allocation53_spill] sm:$0xff] %v5071_v39  ;;  %1740 = vmatpush.msra.mxu2 %v5086_v60  ;;  %v5089_v39 = vld [vmem:[#allocation5 + $0x198] sm:$0xff] }
 0x21c   : > { %6620 = vst [vmem:[#allocation54_spill] sm:$0xff] %v5074_v5  ;;  %1760 = vmatpush.msra.mxu3 %v5089_v39  ;;  %v5092_v5 = vld [vmem:[#allocation5 + $0x160] sm:$0xff] }
 0x21d   : > { %6621 = vst [vmem:[#allocation55_spill] sm:$0xff] %v5077_v61  ;;  %1701 = vmatpush.msra.mxu0 %v5092_v5  ;;  %v5095_v61 = vld [vmem:[#allocation5 + $0x168] sm:$0xff] }
 0x21e   : > { %6622 = vst [vmem:[#allocation56_spill] sm:$0xff] %v5080_v58  ;;  %1721 = vmatpush.msra.mxu1 %v5095_v61  ;;  %v5098_v58 = vld [vmem:[#allocation5 + $0x170] sm:$0xff] }
 0x21f   : > { %6623 = vst [vmem:[#allocation57_spill] sm:$0xff] %v5083_v6  ;;  %1741 = vmatpush.msra.mxu2 %v5098_v58  ;;  %v5101_v6 = vld [vmem:[#allocation5 + $0x178] sm:$0xff] }
 0x220   : > { %6624 = vst [vmem:[#allocation58_spill] sm:$0xff] %v5086_v60  ;;  %1761 = vmatpush.msra.mxu3 %v5101_v6  ;;  %v5104_v60 = vld [vmem:[#allocation5 + $0x140] sm:$0xff] }
 0x221   : > { %6625 = vst [vmem:[#allocation59_spill] sm:$0xff] %v5089_v39  ;;  %1702 = vmatpush.msra.mxu0 %v5104_v60  ;;  %v5107_v39 = vld [vmem:[#allocation5 + $0x148] sm:$0xff] }
 0x222   : > { %6626 = vst [vmem:[#allocation60_spill] sm:$0xff] %v5092_v5  ;;  %1722 = vmatpush.msra.mxu1 %v5107_v39  ;;  %v5110_v5 = vld [vmem:[#allocation5 + $0x150] sm:$0xff] }
 0x223   : > { %6627 = vst [vmem:[#allocation61_spill] sm:$0xff] %v5095_v61  ;;  %1742 = vmatpush.msra.mxu2 %v5110_v5  ;;  %v5113_v61 = vld [vmem:[#allocation5 + $0x158] sm:$0xff] }
 0x224   : > { %6628 = vst [vmem:[#allocation62_spill] sm:$0xff] %v5098_v58  ;;  %1762 = vmatpush.msra.mxu3 %v5113_v61  ;;  %v5116_v58 = vld [vmem:[#allocation5 + $0x120] sm:$0xff] }
 0x225   : > { %6629 = vst [vmem:[#allocation63_spill] sm:$0xff] %v5101_v6  ;;  %1703 = vmatpush.msra.mxu0 %v5116_v58  ;;  %v5119_v6 = vld [vmem:[#allocation5 + $0x128] sm:$0xff] }
 0x226   : > { %6630 = vst [vmem:[#allocation64_spill] sm:$0xff] %v5104_v60  ;;  %1723 = vmatpush.msra.mxu1 %v5119_v6  ;;  %v5122_v60 = vld [vmem:[#allocation5 + $0x130] sm:$0xff] }
 0x227   : > { %6631 = vst [vmem:[#allocation65_spill] sm:$0xff] %v5107_v39  ;;  %1743 = vmatpush.msra.mxu2 %v5122_v60  ;;  %v5125_v39 = vld [vmem:[#allocation5 + $0x138] sm:$0xff] }
 0x228   : > { %6632 = vst [vmem:[#allocation66_spill] sm:$0xff] %v5110_v5  ;;  %1763 = vmatpush.msra.mxu3 %v5125_v39  ;;  %v5128_v5 = vld [vmem:[#allocation5 + $0x100] sm:$0xff] }
 0x229   : > { %6633 = vst [vmem:[#allocation67_spill] sm:$0xff] %v5113_v61  ;;  %1704 = vmatpush.msra.mxu0 %v5128_v5  ;;  %v5131_v61 = vld [vmem:[#allocation5 + $0x108] sm:$0xff] }
 0x22a   : > { %6634 = vst [vmem:[#allocation68_spill] sm:$0xff] %v5116_v58  ;;  %1724 = vmatpush.msra.mxu1 %v5131_v61  ;;  %v5134_v58 = vld [vmem:[#allocation5 + $0x110] sm:$0xff] }
 0x22b   : > { %6635 = vst [vmem:[#allocation69_spill] sm:$0xff] %v5119_v6  ;;  %1744 = vmatpush.msra.mxu2 %v5134_v58  ;;  %v5137_v6 = vld [vmem:[#allocation5 + $0x118] sm:$0xff] }
 0x22c   : > { %6636 = vst [vmem:[#allocation70_spill] sm:$0xff] %v5122_v60  ;;  %1764 = vmatpush.msra.mxu3 %v5137_v6  ;;  %v5140_v60 = vld [vmem:[#allocation5 + $0xe0] sm:$0xff] }
 0x22d   : > { %6637 = vst [vmem:[#allocation71_spill] sm:$0xff] %v5125_v39  ;;  %1705 = vmatpush.msra.mxu0 %v5140_v60  ;;  %v5143_v39 = vld [vmem:[#allocation5 + $0xe8] sm:$0xff] }
 0x22e   : > { %6638 = vst [vmem:[#allocation72_spill] sm:$0xff] %v5128_v5  ;;  %1725 = vmatpush.msra.mxu1 %v5143_v39  ;;  %v5146_v5 = vld [vmem:[#allocation5 + $0xf0] sm:$0xff] }
 0x22f   : > { %6639 = vst [vmem:[#allocation73_spill] sm:$0xff] %v5131_v61  ;;  %1745 = vmatpush.msra.mxu2 %v5146_v5  ;;  %v5149_v61 = vld [vmem:[#allocation5 + $0xf8] sm:$0xff] }
 0x230   : > { %6640 = vst [vmem:[#allocation74_spill] sm:$0xff] %v5134_v58  ;;  %1765 = vmatpush.msra.mxu3 %v5149_v61  ;;  %v5152_v58 = vld [vmem:[#allocation5 + $0xc0] sm:$0xff] }
 0x231   : > { %6641 = vst [vmem:[#allocation75_spill] sm:$0xff] %v5137_v6  ;;  %1706 = vmatpush.msra.mxu0 %v5152_v58  ;;  %v5155_v6 = vld [vmem:[#allocation5 + $0xc8] sm:$0xff] }
 0x232   : > { %6642 = vst [vmem:[#allocation76_spill] sm:$0xff] %v5140_v60  ;;  %1726 = vmatpush.msra.mxu1 %v5155_v6  ;;  %v5158_v60 = vld [vmem:[#allocation5 + $0xd0] sm:$0xff] }
 0x233   : > { %6643 = vst [vmem:[#allocation77_spill] sm:$0xff] %v5143_v39  ;;  %1746 = vmatpush.msra.mxu2 %v5158_v60  ;;  %v5161_v39 = vld [vmem:[#allocation5 + $0xd8] sm:$0xff] }
 0x234   : > { %6644 = vst [vmem:[#allocation78_spill] sm:$0xff] %v5146_v5  ;;  %1766 = vmatpush.msra.mxu3 %v5161_v39  ;;  %v5164_v5 = vld [vmem:[#allocation5 + $0xa0] sm:$0xff] }
 0x235   : > { %6645 = vst [vmem:[#allocation79_spill] sm:$0xff] %v5149_v61  ;;  %1707 = vmatpush.msra.mxu0 %v5164_v5  ;;  %v5167_v61 = vld [vmem:[#allocation5 + $0xa8] sm:$0xff] }
 0x236   : > { %6646 = vst [vmem:[#allocation80_spill] sm:$0xff] %v5152_v58  ;;  %1727 = vmatpush.msra.mxu1 %v5167_v61  ;;  %v5170_v58 = vld [vmem:[#allocation5 + $0xb0] sm:$0xff] }
 0x237   : > { %6647 = vst [vmem:[#allocation81_spill] sm:$0xff] %v5155_v6  ;;  %1747 = vmatpush.msra.mxu2 %v5170_v58  ;;  %v5173_v6 = vld [vmem:[#allocation5 + $0xb8] sm:$0xff] }
 0x238   : > { %6648 = vst [vmem:[#allocation82_spill] sm:$0xff] %v5158_v60  ;;  %1767 = vmatpush.msra.mxu3 %v5173_v6  ;;  %v5176_v60 = vld [vmem:[#allocation5 + $0x80] sm:$0xff] }
 0x239   : > { %6649 = vst [vmem:[#allocation83_spill] sm:$0xff] %v5161_v39  ;;  %1708 = vmatpush.msra.mxu0 %v5176_v60  ;;  %v5179_v39 = vld [vmem:[#allocation5 + $0x88] sm:$0xff] }
 0x23a   : > { %6650 = vst [vmem:[#allocation84_spill] sm:$0xff] %v5164_v5  ;;  %1728 = vmatpush.msra.mxu1 %v5179_v39  ;;  %v5182_v5 = vld [vmem:[#allocation5 + $0x90] sm:$0xff] }
 0x23b   : > { %6651 = vst [vmem:[#allocation85_spill] sm:$0xff] %v5167_v61  ;;  %1748 = vmatpush.msra.mxu2 %v5182_v5  ;;  %v5185_v61 = vld [vmem:[#allocation5 + $0x98] sm:$0xff] }
 0x23c   : > { %6652 = vst [vmem:[#allocation86_spill] sm:$0xff] %v5170_v58  ;;  %1768 = vmatpush.msra.mxu3 %v5185_v61  ;;  %v5188_v58 = vld [vmem:[#allocation5 + $0x60] sm:$0xff] }
 0x23d   : > { %6653 = vst [vmem:[#allocation87_spill] sm:$0xff] %v5173_v6  ;;  %1709 = vmatpush.msra.mxu0 %v5188_v58  ;;  %v5191_v6 = vld [vmem:[#allocation5 + $0x68] sm:$0xff] }
 0x23e   : > { %6654 = vst [vmem:[#allocation88_spill] sm:$0xff] %v5176_v60  ;;  %1729 = vmatpush.msra.mxu1 %v5191_v6  ;;  %v5194_v60 = vld [vmem:[#allocation5 + $0x70] sm:$0xff] }
 0x23f   : > { %6655 = vst [vmem:[#allocation89_spill] sm:$0xff] %v5179_v39  ;;  %1749 = vmatpush.msra.mxu2 %v5194_v60  ;;  %v5197_v39 = vld [vmem:[#allocation5 + $0x78] sm:$0xff] }
 0x240   : > { %6656 = vst [vmem:[#allocation90_spill] sm:$0xff] %v5182_v5  ;;  %1769 = vmatpush.msra.mxu3 %v5197_v39  ;;  %v5200_v5 = vld [vmem:[#allocation5 + $0x40] sm:$0xff] }
 0x241   : > { %6657 = vst [vmem:[#allocation91_spill] sm:$0xff] %v5185_v61  ;;  %1710 = vmatpush.msra.mxu0 %v5200_v5  ;;  %v5203_v61 = vld [vmem:[#allocation5 + $0x48] sm:$0xff] }
 0x242   : > { %6658 = vst [vmem:[#allocation92_spill] sm:$0xff] %v5188_v58  ;;  %1730 = vmatpush.msra.mxu1 %v5203_v61  ;;  %v5206_v58 = vld [vmem:[#allocation5 + $0x50] sm:$0xff] }
 0x243   : > { %6659 = vst [vmem:[#allocation93_spill] sm:$0xff] %v5191_v6  ;;  %1750 = vmatpush.msra.mxu2 %v5206_v58  ;;  %v5209_v6 = vld [vmem:[#allocation5 + $0x58] sm:$0xff] }
 0x244   : > { %6660 = vst [vmem:[#allocation94_spill] sm:$0xff] %v5194_v60  ;;  %1770 = vmatpush.msra.mxu3 %v5209_v6  ;;  %v5212_v60 = vld [vmem:[#allocation5 + $0x20] sm:$0xff] }
 0x245   : > { %6661 = vst [vmem:[#allocation95_spill] sm:$0xff] %v5197_v39  ;;  %1711 = vmatpush.msra.mxu0 %v5212_v60  ;;  %v5215_v39 = vld [vmem:[#allocation5 + $0x28] sm:$0xff] }
 0x246   : > { %6662 = vst [vmem:[#allocation96_spill] sm:$0xff] %v5200_v5  ;;  %1731 = vmatpush.msra.mxu1 %v5215_v39  ;;  %v5218_v5 = vld [vmem:[#allocation5 + $0x30] sm:$0xff] }
 0x247   : > { %6663 = vst [vmem:[#allocation97_spill] sm:$0xff] %v5203_v61  ;;  %1751 = vmatpush.msra.mxu2 %v5218_v5  ;;  %v5221_v61 = vld [vmem:[#allocation5 + $0x38] sm:$0xff] }
 0x248   : > { %6664 = vst [vmem:[#allocation98_spill] sm:$0xff] %v5206_v58  ;;  %1771 = vmatpush.msra.mxu3 %v5221_v61  ;;  %v5224_v58 = vld [vmem:[#allocation5] sm:$0xff] }
 0x249   : > { %6665 = vst [vmem:[#allocation99_spill] sm:$0xff] %v5209_v6  ;;  %1712 = vmatpush.msra.mxu0 %v5224_v58  ;;  %v5227_v6 = vld [vmem:[#allocation5 + $0x8] sm:$0xff] }
 0x24a   : > { %6666 = vst [vmem:[#allocation100_spill] sm:$0xff] %v5212_v60  ;;  %1732 = vmatpush.msra.mxu1 %v5227_v6  ;;  %v5230_v60 = vld [vmem:[#allocation5 + $0x10] sm:$0xff] }
 0x24b   : > { %6667 = vst [vmem:[#allocation101_spill] sm:$0xff] %v5215_v39  ;;  %1752 = vmatpush.msra.mxu2 %v5230_v60  ;;  %v5233_v39 = vld [vmem:[#allocation5 + $0x18] sm:$0xff] }
 0x24c   : > { %6668 = vst [vmem:[#allocation102_spill] sm:$0xff] %v5218_v5  ;;  %1772 = vmatpush.msra.mxu3 %v5233_v39 }
 0x24d   : > { %6669 = vst [vmem:[#allocation103_spill] sm:$0xff] %v5221_v61  ;;  %v5239_v61 = vld [vmem:[%s5952_s4 + $0x1e0] sm:$0xff] }
 0x24e   : > { %6670 = vst [vmem:[#allocation104_spill] sm:$0xff] %v5224_v58  ;;  %1777 = vmatpush.msrb.mxu0 %v5239_v61  ;;  %v5245_v58 = vld [vmem:[%s5952_s4 + $0x1e8] sm:$0xff] }
 0x24f   : > { %6671 = vst [vmem:[#allocation105_spill] sm:$0xff] %v5227_v6  ;;  %1797 = vmatpush.msrb.mxu1 %v5245_v58 }
 0x250   : > { %6672 = vst [vmem:[#allocation106_spill] sm:$0xff] %v5230_v60  ;;  %v5251_v60 = vld [vmem:[%s5952_s4 + $0x1f0] sm:$0xff] }
 0x251   : > { %6673 = vst [vmem:[#allocation107_spill] sm:$0xff] %v5233_v39  ;;  %1817 = vmatpush.msrb.mxu2 %v5251_v60  ;;  %v5257_v39 = vld [vmem:[%s5952_s4 + $0x1f8] sm:$0xff] }
 0x252   : > { %6674 = vst [vmem:[#allocation108_spill] sm:$0xff] %v5239_v61  ;;  %1837 = vmatpush.msrb.mxu3 %v5257_v39  ;;  %v5263_v61 = vld [vmem:[%s5952_s4 + $0x1c0] sm:$0xff] }
 0x253   : > { %6675 = vst [vmem:[#allocation109_spill] sm:$0xff] %v5245_v58  ;;  %1778 = vmatpush.msrb.mxu0 %v5263_v61  ;;  %v5269_v58 = vld [vmem:[%s5952_s4 + $0x1c8] sm:$0xff] }
 0x254   : > { %6676 = vst [vmem:[#allocation111_spill] sm:$0xff] %v5251_v60  ;;  %1798 = vmatpush.msrb.mxu1 %v5269_v58  ;;  %v5275_v60 = vld [vmem:[%s5952_s4 + $0x1d0] sm:$0xff] }
 0x255   : > { %6677 = vst [vmem:[#allocation112_spill] sm:$0xff] %v5257_v39  ;;  %1818 = vmatpush.msrb.mxu2 %v5275_v60  ;;  %v5281_v39 = vld [vmem:[%s5952_s4 + $0x1d8] sm:$0xff] }
 0x256   : > { %6678 = vst [vmem:[#allocation113_spill] sm:$0xff] %v5263_v61  ;;  %1838 = vmatpush.msrb.mxu3 %v5281_v39  ;;  %v5287_v61 = vld [vmem:[%s5952_s4 + $0x1a0] sm:$0xff] }
 0x257   : > { %6679 = vst [vmem:[#allocation114_spill] sm:$0xff] %v5269_v58  ;;  %1779 = vmatpush.msrb.mxu0 %v5287_v61  ;;  %v5293_v58 = vld [vmem:[%s5952_s4 + $0x1a8] sm:$0xff] }
 0x258   : > { %6680 = vst [vmem:[#allocation115_spill] sm:$0xff] %v5275_v60  ;;  %1799 = vmatpush.msrb.mxu1 %v5293_v58  ;;  %v5299_v60 = vld [vmem:[%s5952_s4 + $0x1b0] sm:$0xff] }
 0x259   : > { %6681 = vst [vmem:[#allocation116_spill] sm:$0xff] %v5281_v39  ;;  %1819 = vmatpush.msrb.mxu2 %v5299_v60  ;;  %v5305_v39 = vld [vmem:[%s5952_s4 + $0x1b8] sm:$0xff] }
 0x25a   : > { %6682 = vst [vmem:[#allocation117_spill] sm:$0xff] %v5287_v61  ;;  %1839 = vmatpush.msrb.mxu3 %v5305_v39  ;;  %v5311_v61 = vld [vmem:[%s5952_s4 + $0x180] sm:$0xff] }
 0x25b   : > { %6683 = vst [vmem:[#allocation118_spill] sm:$0xff] %v5293_v58  ;;  %1780 = vmatpush.msrb.mxu0 %v5311_v61  ;;  %v5317_v58 = vld [vmem:[%s5952_s4 + $0x188] sm:$0xff] }
 0x25c   : > { %6684 = vst [vmem:[#allocation121_spill] sm:$0xff] %v5299_v60  ;;  %1800 = vmatpush.msrb.mxu1 %v5317_v58  ;;  %v5323_v60 = vld [vmem:[%s5952_s4 + $0x190] sm:$0xff] }
 0x25d   : > { %6685 = vst [vmem:[#allocation122_spill] sm:$0xff] %v5305_v39  ;;  %1820 = vmatpush.msrb.mxu2 %v5323_v60  ;;  %v5329_v39 = vld [vmem:[%s5952_s4 + $0x198] sm:$0xff] }
 0x25e   : > { %6686 = vst [vmem:[#allocation123_spill] sm:$0xff] %v5311_v61  ;;  %1840 = vmatpush.msrb.mxu3 %v5329_v39  ;;  %v5335_v61 = vld [vmem:[%s5952_s4 + $0x160] sm:$0xff] }
 0x25f   : > { %6687 = vst [vmem:[#allocation124_spill] sm:$0xff] %v5317_v58  ;;  %1781 = vmatpush.msrb.mxu0 %v5335_v61  ;;  %v5341_v58 = vld [vmem:[%s5952_s4 + $0x168] sm:$0xff] }
 0x260   : > { %6688 = vst [vmem:[#allocation125_spill] sm:$0xff] %v5323_v60  ;;  %1801 = vmatpush.msrb.mxu1 %v5341_v58  ;;  %v5347_v60 = vld [vmem:[%s5952_s4 + $0x170] sm:$0xff] }
 0x261   : > { %6689 = vst [vmem:[#allocation126_spill] sm:$0xff] %v5329_v39  ;;  %1821 = vmatpush.msrb.mxu2 %v5347_v60  ;;  %v5353_v39 = vld [vmem:[%s5952_s4 + $0x178] sm:$0xff] }
 0x262   : > { %6690 = vst [vmem:[#allocation127_spill] sm:$0xff] %v5335_v61  ;;  %1841 = vmatpush.msrb.mxu3 %v5353_v39  ;;  %v5359_v61 = vld [vmem:[%s5952_s4 + $0x140] sm:$0xff] }
 0x263   : > { %6691 = vst [vmem:[#allocation128_spill] sm:$0xff] %v5341_v58  ;;  %1782 = vmatpush.msrb.mxu0 %v5359_v61  ;;  %v5365_v58 = vld [vmem:[%s5952_s4 + $0x148] sm:$0xff] }
 0x264   : > { %6692 = vst [vmem:[#allocation129_spill] sm:$0xff] %v5347_v60  ;;  %1802 = vmatpush.msrb.mxu1 %v5365_v58  ;;  %v5371_v60 = vld [vmem:[%s5952_s4 + $0x150] sm:$0xff] }
 0x265   : > { %6693 = vst [vmem:[#allocation130_spill] sm:$0xff] %v5353_v39  ;;  %1822 = vmatpush.msrb.mxu2 %v5371_v60  ;;  %v5377_v39 = vld [vmem:[%s5952_s4 + $0x158] sm:$0xff] }
 0x266   : > { %6694 = vst [vmem:[#allocation131_spill] sm:$0xff] %v5359_v61  ;;  %1842 = vmatpush.msrb.mxu3 %v5377_v39  ;;  %v5383_v61 = vld [vmem:[%s5952_s4 + $0x120] sm:$0xff] }
 0x267   : > { %6695 = vst [vmem:[#allocation132_spill] sm:$0xff] %v5365_v58  ;;  %1783 = vmatpush.msrb.mxu0 %v5383_v61  ;;  %v5389_v58 = vld [vmem:[%s5952_s4 + $0x128] sm:$0xff] }
 0x268   : > { %6696 = vst [vmem:[#allocation135_spill] sm:$0xff] %v5371_v60  ;;  %1803 = vmatpush.msrb.mxu1 %v5389_v58  ;;  %v5395_v60 = vld [vmem:[%s5952_s4 + $0x130] sm:$0xff] }
 0x269   : > { %6697 = vst [vmem:[#allocation136_spill] sm:$0xff] %v5377_v39  ;;  %1823 = vmatpush.msrb.mxu2 %v5395_v60  ;;  %v5401_v39 = vld [vmem:[%s5952_s4 + $0x138] sm:$0xff]  ;;  %v1353_v6 = vpop.f32.mrf.mxu1 }
 0x26a   : > { %6698 = vst [vmem:[#allocation137_spill] sm:$0xff] %v5383_v61  ;;  %1843 = vmatpush.msrb.mxu3 %v5401_v39  ;;  %v5407_v61 = vld [vmem:[%s5952_s4 + $0x100] sm:$0xff] }
 0x26b   : > { %6699 = vst [vmem:[#allocation138_spill] sm:$0xff] %v5389_v58  ;;  %1784 = vmatpush.msrb.mxu0 %v5407_v61  ;;  %v5413_v58 = vld [vmem:[%s5952_s4 + $0x108] sm:$0xff] }
 0x26c   : > { %6700 = vst [vmem:[#allocation139_spill] sm:$0xff] %v5395_v60  ;;  %1804 = vmatpush.msrb.mxu1 %v5413_v58  ;;  %v5419_v60 = vld [vmem:[%s5952_s4 + $0x110] sm:$0xff] }
 0x26d   : > { %6701 = vst [vmem:[#allocation142_spill] sm:$0xff] %v5401_v39  ;;  %1824 = vmatpush.msrb.mxu2 %v5419_v60  ;;  %v5425_v39 = vld [vmem:[%s5952_s4 + $0x118] sm:$0xff] }
 0x26e   : > { %6702 = vst [vmem:[#allocation143_spill] sm:$0xff] %v5407_v61  ;;  %1844 = vmatpush.msrb.mxu3 %v5425_v39  ;;  %v5431_v61 = vld [vmem:[%s5952_s4 + $0xe0] sm:$0xff] }
 0x26f   : > { %6703 = vst [vmem:[#allocation144_spill] sm:$0xff] %v5413_v58  ;;  %1785 = vmatpush.msrb.mxu0 %v5431_v61  ;;  %v5437_v58 = vld [vmem:[%s5952_s4 + $0xe8] sm:$0xff] }
 0x270   : > { %6704 = vst [vmem:[#allocation145_spill] sm:$0xff] %v5419_v60  ;;  %1805 = vmatpush.msrb.mxu1 %v5437_v58  ;;  %v5443_v60 = vld [vmem:[%s5952_s4 + $0xf0] sm:$0xff]  ;;  %v1393_v5 = vpop.f32.mrf.mxu3  ;;  %v1373_v48 = vpop.f32.mrf.mxu2 }
 0x271   : > { %6705 = vst [vmem:[#allocation146_spill] sm:$0xff] %v5425_v39  ;;  %1825 = vmatpush.msrb.mxu2 %v5443_v60  ;;  %v5449_v39 = vld [vmem:[%s5952_s4 + $0xf8] sm:$0xff] }
 0x272   : > { %6706 = vst [vmem:[#allocation147_spill] sm:$0xff] %v5431_v61  ;;  %1845 = vmatpush.msrb.mxu3 %v5449_v39  ;;  %v5455_v61 = vld [vmem:[%s5952_s4 + $0xc0] sm:$0xff] }
 0x273   : > { %6707 = vst [vmem:[#allocation148_spill] sm:$0xff] %v5437_v58  ;;  %1786 = vmatpush.msrb.mxu0 %v5455_v61  ;;  %v5461_v58 = vld [vmem:[%s5952_s4 + $0xc8] sm:$0xff]  ;;  %v1433_v55 = vpop.f32.mrf.mxu1 }
 0x274   : > { %6708 = vst [vmem:[#allocation149_spill] sm:$0xff] %v5443_v60  ;;  %1806 = vmatpush.msrb.mxu1 %v5461_v58  ;;  %v5467_v60 = vld [vmem:[%s5952_s4 + $0xd0] sm:$0xff]  ;;  %v1434_v51 = vadd.f32 %v1433_v55, %v1353_v6 }
 0x275   : > { %6709 = vst [vmem:[#allocation150_spill] sm:$0xff] %v5449_v39  ;;  %1826 = vmatpush.msrb.mxu2 %v5467_v60  ;;  %v5473_v39 = vld [vmem:[%s5952_s4 + $0xd8] sm:$0xff] }
 0x276   : > { %6710 = vst [vmem:[#allocation151_spill] sm:$0xff] %v5455_v61  ;;  %1846 = vmatpush.msrb.mxu3 %v5473_v39  ;;  %v5479_v61 = vld [vmem:[%s5952_s4 + $0xa0] sm:$0xff]  ;;  %v1477_v49 = vadd.f32 %v1434_v51, %v4565_v47 }
 0x277   : > { %6711 = vst [vmem:[#allocation152_spill] sm:$0xff] %v5461_v58  ;;  %1787 = vmatpush.msrb.mxu0 %v5479_v61  ;;  %v5485_v58 = vld [vmem:[%s5952_s4 + $0xa8] sm:$0xff] }
 0x278   : > { %6712 = vst [vmem:[#allocation153_spill] sm:$0xff] %v5467_v60  ;;  %1807 = vmatpush.msrb.mxu1 %v5485_v58  ;;  %v5491_v60 = vld [vmem:[%s5952_s4 + $0xb0] sm:$0xff]  ;;  %v2476_v17 = vmul.f32 -1.442695, %v1477_v49 }
 0x279   : > { %6713 = vst [vmem:[#allocation154_spill] sm:$0xff] %v5473_v39  ;;  %1827 = vmatpush.msrb.mxu2 %v5491_v60  ;;  %v5497_v39 = vld [vmem:[%s5952_s4 + $0xb8] sm:$0xff] }
 0x27a   : > { %6714 = vst [vmem:[#allocation155_spill] sm:$0xff] %v5479_v61  ;;  %1847 = vmatpush.msrb.mxu3 %v5497_v39  ;;  %v5503_v61 = vld [vmem:[%s5952_s4 + $0x80] sm:$0xff]  ;;  %v1473_v25 = vpop.f32.mrf.mxu3  ;;  %v1453_v40 = vpop.f32.mrf.mxu2 }
 0x27b   : > { %6715 = vst [vmem:[#allocation156_spill] sm:$0xff] %v5485_v58  ;;  %1788 = vmatpush.msrb.mxu0 %v5503_v61  ;;  %v5509_v58 = vld [vmem:[%s5952_s4 + $0x88] sm:$0xff]  ;;  %v1474_v45 = vadd.f32 %v1473_v25, %v1393_v5 }
 0x27c   : > { %6716 = vst [vmem:[#allocation159_spill] sm:$0xff] %v5491_v60  ;;  %1808 = vmatpush.msrb.mxu1 %v5509_v58  ;;  %v5515_v60 = vld [vmem:[%s5952_s4 + $0x90] sm:$0xff] }
 0x27d   : > { %6717 = vst [vmem:[#allocation119_spill] sm:$0xff] %v5497_v39  ;;  %1828 = vmatpush.msrb.mxu2 %v5515_v60  ;;  %v5521_v39 = vld [vmem:[%s5952_s4 + $0x98] sm:$0xff] }
 0x27e   : > { %6718 = vst [vmem:[#allocation120_spill] sm:$0xff] %v5503_v61  ;;  %1848 = vmatpush.msrb.mxu3 %v5521_v39  ;;  %v5527_v61 = vld [vmem:[%s5952_s4 + $0x60] sm:$0xff] }
 0x27f   : > { %6719 = vst [vmem:[#allocation134_spill] sm:$0xff] %v5509_v58  ;;  %1789 = vmatpush.msrb.mxu0 %v5527_v61  ;;  %v5533_v58 = vld [vmem:[%s5952_s4 + $0x68] sm:$0xff] }
 0x280   : > { %6720 = vst [vmem:[#allocation133_spill] sm:$0xff] %v5515_v60  ;;  %1809 = vmatpush.msrb.mxu1 %v5533_v58  ;;  %v5539_v60 = vld [vmem:[%s5952_s4 + $0x70] sm:$0xff] }
 0x281   : > { %6721 = vst [vmem:[#allocation164_spill] sm:$0xff] %v5521_v39  ;;  %1829 = vmatpush.msrb.mxu2 %v5539_v60  ;;  %v5545_v39 = vld [vmem:[%s5952_s4 + $0x78] sm:$0xff] }
 0x282   : > { %6722 = vst [vmem:[#allocation165_spill] sm:$0xff] %v5527_v61  ;;  %1849 = vmatpush.msrb.mxu3 %v5545_v39  ;;  %v5551_v61 = vld [vmem:[%s5952_s4 + $0x40] sm:$0xff] }
 0x283   : > { %6723 = vst [vmem:[#allocation166_spill] sm:$0xff] %v5533_v58  ;;  %1790 = vmatpush.msrb.mxu0 %v5551_v61  ;;  %v5557_v58 = vld [vmem:[%s5952_s4 + $0x48] sm:$0xff] }
 0x284   : > { %6724 = vst [vmem:[#allocation167_spill] sm:$0xff] %v5539_v60  ;;  %1810 = vmatpush.msrb.mxu1 %v5557_v58  ;;  %v5563_v60 = vld [vmem:[%s5952_s4 + $0x50] sm:$0xff] }
 0x285   : > { %6725 = vst [vmem:[#allocation168_spill] sm:$0xff] %v5545_v39  ;;  %1830 = vmatpush.msrb.mxu2 %v5563_v60  ;;  %v5569_v39 = vld [vmem:[%s5952_s4 + $0x58] sm:$0xff] }
 0x286   : > { %6726 = vst [vmem:[#allocation169_spill] sm:$0xff] %v5551_v61  ;;  %1850 = vmatpush.msrb.mxu3 %v5569_v39  ;;  %v5575_v61 = vld [vmem:[%s5952_s4 + $0x20] sm:$0xff] }
 0x287   : > { %6727 = vst [vmem:[#allocation170_spill] sm:$0xff] %v5557_v58  ;;  %1791 = vmatpush.msrb.mxu0 %v5575_v61  ;;  %v5581_v58 = vld [vmem:[%s5952_s4 + $0x28] sm:$0xff] }
 0x288   : > { %6728 = vst [vmem:[#allocation171_spill] sm:$0xff] %v5563_v60  ;;  %1811 = vmatpush.msrb.mxu1 %v5581_v58  ;;  %v5587_v60 = vld [vmem:[%s5952_s4 + $0x30] sm:$0xff] }
 0x289   : > { %6729 = vst [vmem:[#allocation172_spill] sm:$0xff] %v5569_v39  ;;  %1831 = vmatpush.msrb.mxu2 %v5587_v60  ;;  %v5593_v39 = vld [vmem:[%s5952_s4 + $0x38] sm:$0xff] }
 0x28a   : > { %6730 = vst [vmem:[#allocation173_spill] sm:$0xff] %v5575_v61  ;;  %1851 = vmatpush.msrb.mxu3 %v5593_v39  ;;  %v5599_v61 = vld [vmem:[%s5952_s4] sm:$0xff] }
 0x28b   : > { %6731 = vst [vmem:[#allocation174_spill] sm:$0xff] %v5581_v58  ;;  %1792 = vmatpush.msrb.mxu0 %v5599_v61  ;;  %v5605_v58 = vld [vmem:[%s5952_s4 + $0x8] sm:$0xff] }
 0x28c   : > { %6732 = vst [vmem:[#allocation175_spill] sm:$0xff] %v5587_v60  ;;  %1812 = vmatpush.msrb.mxu1 %v5605_v58  ;;  %v5611_v60 = vld [vmem:[%s5952_s4 + $0x10] sm:$0xff] }
 0x28d   : > { %6733 = vst [vmem:[#allocation176_spill] sm:$0xff] %v5593_v39  ;;  %1832 = vmatpush.msrb.mxu2 %v5611_v60  ;;  %v5617_v39 = vld [vmem:[%s5952_s4 + $0x18] sm:$0xff] }
 0x28e   : > { %6734 = vst [vmem:[#allocation177_spill] sm:$0xff] %v5599_v61  ;;  %1852 = vmatpush.msrb.mxu3 %v5617_v39  ;;  %v1333_v61 = vpop.f32.mrf.mxu0 }
 0x28f   : > { %6735 = vst [vmem:[#allocation178_spill] sm:$0xff] %v5605_v58 }
 0x290   : > { %6736 = vst [vmem:[#allocation179_spill] sm:$0xff] %v5611_v60 }
 0x291   : > { %6737 = vst [vmem:[#allocation180_spill] sm:$0xff] %v5617_v39  ;;  %v1479_v39 = vadd.f32 %v1474_v45, %v4569_v53 }
 0x293   : > { %v2477_v44 = vmul.f32 -1.442695, %v1479_v39 }
 0x296   : > { %v1413_v62 = vpop.f32.mrf.mxu0 }
 0x297   : > { %v1414_v58 = vadd.f32 %v1413_v62, %v1333_v61  ;;  %v6738_v61 = vld [vmem:[#allocation140_spill] sm:$0xff] }
 0x299   : > { %v1476_v56 = vadd.f32 %v1414_v58, %v4563_v46  ;;  %v1454_v58 = vadd.f32 %v1453_v40, %v1373_v48  ;;  %v1587_v40 = vpop.f32.mrf.mxu1 }
 0x29b   : > { %v2475_v60 = vmul.f32 -1.442695, %v1476_v56  ;;  %v1478_v56 = vadd.f32 %v1454_v58, %v4574_v14 }
 0x29d   : > { %2619 = vpow2.f32 %v2475_v60 }
 0x29e   : > { %2621 = vpow2.f32 %v2476_v17  ;;  %v1567_v5 = vpop.f32.mrf.mxu0 }
 0x29f   : > { %2623 = vpow2.f32 %v2477_v44  ;;  %v1630_v58 = vadd.f32 %v1567_v5, %v6738_v61  ;;  %v1627_v61 = vpop.f32.mrf.mxu3 }
 0x2a1   : > { %v2479_v46 = vmul.f32 -1.442695, %v1630_v58 }
 0x2a3   : > { %v2620_v43 = vpop.eup %2619 }
 0x2a4   : > { %v2622_v42 = vpop.eup %2621  ;;  %v1483_v41 = vadd.f32 1.0, %v2620_v43 }
 0x2a5   : > { %v1502_v6 = vadd.f32 1.0, %v2622_v42  ;;  %v2624_v51 = vpop.eup %2623 }
 0x2a6   : > { %2625 = vrcp.f32 %v1483_v41  ;;  %v5624_v49 = vadd.f32 1.0, %v2624_v51  ;;  %v1493_v55 = vand.u32 2147483647, %v1483_v41  ;;  %v1495_v42 = vand.u32 2147483648, %v1483_v41  ;;  %v6739_v51 = vld [vmem:[#allocation141_spill] sm:$0xff] }
 0x2a7   : > { %2627 = vrcp.f32 %v1502_v6  ;;  %v1514_v44 = vand.u32 2147483648, %v1502_v6  ;;  %v1512_v62 = vand.u32 2147483647, %v1502_v6  ;;  %v1631_v14 = vadd.f32 %v1587_v40, %v6739_v51 }
 0x2a8   : > { %2629 = vrcp.f32 %v5624_v49  ;;  %vm1489_vm6 = vweird.f32 %v1483_v41  ;;  %vm1508_vm7 = vweird.f32 %v1502_v6  ;;  %vm1494_vm9 = vcmp.eq.f32.partialorder %v1493_v55, 8.507059e+37 }
 0x2a9   : > { %2631 = vtanh.f32 %v1478_v56  ;;  %v2480_v56 = vmul.f32 -1.442695, %v1631_v14  ;;  %v1515_v36 = vor.u32 1.1754944e-38, %v1514_v44  ;;  %vm1513_vm11 = vcmp.eq.f32.partialorder %v1512_v62, 8.507059e+37  ;;  %v1607_v62 = vpop.f32.mrf.mxu2 }
 0x2aa   : > { %2633 = vpow2.f32 %v2479_v46  ;;  %v1534_v46 = vand.u32 2147483648, %v5624_v49  ;;  %vm1528_vm13 = vweird.f32 %v5624_v49 }
 0x2ab   : > { %2635 = vpow2.f32 %v2480_v56 }
 0x2ac   : > { %v2626_v60 = vpop.eup %2625 }
 0x2ad   : > { %v2628_v17 = vpop.eup %2627  ;;  %v1485_v25 = vmul.f32 %v2626_v60, %v1483_v41  ;;  %vm1490_vm4 = vweird.f32 %v2626_v60 }
 0x2ae   : > { %v1504_v39 = vmul.f32 %v2628_v17, %v1502_v6  ;;  %vm1509_vm5 = vweird.f32 %v2628_v17  ;;  %v2630_v47 = vpop.eup %2629  ;;  %vm1491_vm8 = vmor %vm1489_vm6, %vm1490_vm4 }
 0x2af   : > { %v1486_v45 = vsub.f32 1.0, %v1485_v25  ;;  %v1524_v37 = vmul.f32 %v2630_v47, %v5624_v49  ;;  %vm1510_vm10 = vmor %vm1508_vm7, %vm1509_vm5  ;;  %vm1529_vm12 = vweird.f32 %v2630_v47 }
 0x2b0   : > { %v1505_v43 = vsub.f32 1.0, %v1504_v39  ;;  %v1496_v39 = vor.u32 1.1754944e-38, %v1495_v42  ;;  %v6740_v42 = vld [vmem:[#allocation158_spill] sm:$0xff]  ;;  %vm1530_vm14 = vmor %vm1528_vm13, %vm1529_vm12 }
 0x2b1   : > { %v1487_v48 = vmul.f32 %v2626_v60, %v1486_v45  ;;  %v2632_v45 = vpop.eup %2631  ;;  %v1525_v41 = vsub.f32 1.0, %v1524_v37 }
 0x2b2   : > { %v1506_v53 = vmul.f32 %v2628_v17, %v1505_v43  ;;  %v2634_v35 = vpop.eup %2633 }
 0x2b3   : > { %v1488_v25 = vadd.f32 %v2626_v60, %v1487_v48  ;;  %v1526_v55 = vmul.f32 %v2630_v47, %v1525_v41  ;;  %v1637_v37 = vadd.f32 1.0, %v2634_v35 }
 0x2b4   : > { %v1507_v38 = vadd.f32 %v2628_v17, %v1506_v53  ;;  %v1633_v53 = vadd.f32 %v1627_v61, %v6740_v42 }
 0x2b5   : > { %v1492_v5 = vsel %vm1491_vm8, %v2626_v60, %v1488_v25  ;;  %v1527_v44 = vadd.f32 %v2630_v47, %v1526_v55  ;;  %v2636_v60 = vpop.eup %2635  ;;  %v1649_v61 = vand.u32 2147483648, %v1637_v37  ;;  %v1647_v42 = vand.u32 2147483647, %v1637_v37 }
 0x2b6   : > { %v1497_v43 = vsel %vm1494_vm9, %v1496_v39, %v1492_v5  ;;  %v1511_v40 = vsel %vm1510_vm10, %v2628_v17, %v1507_v38  ;;  %v2481_v51 = vmul.f32 -1.442695, %v1633_v53  ;;  %v1535_v17 = vor.u32 1.1754944e-38, %v1534_v46  ;;  %v6741_v5 = vld [vmem:[#allocation157_spill] sm:$0xff]  ;;  %v6755_v46 = vld [vmem:[#allocation27_spill] sm:$0xff] }
 0x2b7   : > { %v1516_v6 = vsel %vm1513_vm11, %v1515_v36, %v1511_v40  ;;  %v1539_v48 = vmul.f32 %v2632_v45, %v1497_v43  ;;  %v5637_v36 = vadd.f32 1.0, %v2636_v60  ;;  %v1531_v38 = vsel %vm1530_vm14, %v2630_v47, %v1527_v44 }
 0x2b8   : > { %v1538_v14 = vmul.f32 %v1516_v6, %v4619_v23  ;;  %v1532_v23 = vand.u32 2147483647, %v5624_v49  ;;  %v1632_v43 = vadd.f32 %v1607_v62, %v6741_v5  ;;  %vm1643_vm2 = vweird.f32 %v1637_v37  ;;  %v6761_v62 = vld [vmem:[#allocation33_spill] sm:$0xff]  ;;  %v6767_v5 = vld [vmem:[#allocation39_spill] sm:$0xff] }
 0x2b9   : > { %vm1662_vm3 = vweird.f32 %v5637_v36  ;;  %vm1648_vm6 = vcmp.eq.f32.partialorder %v1647_v42, 8.507059e+37  ;;  %v6778_v42 = vld [vmem:[#allocation50_spill] sm:$0xff] }
 0x2ba   : > { %v5632_v58 = vadd.f32 %v1539_v48, %v1538_v14  ;;  %vm1533_vm15 = vcmp.eq.f32.partialorder %v1532_v23, 8.507059e+37  ;;  %v1668_v14 = vand.u32 2147483648, %v5637_v36  ;;  %v6758_v23 = vld [vmem:[#allocation30_spill] sm:$0xff] }
 0x2bb   : > { %v1536_v56 = vsel %vm1533_vm15, %v1535_v17, %v1531_v38  ;;  %v6759_v38 = vld [vmem:[#allocation31_spill] sm:$0xff]  ;;  %v6760_v17 = vld [vmem:[#allocation32_spill] sm:$0xff] }
 0x2bc   : > { %2637 = vtanh.f32 %v5632_v58 }
 0x2bd   : > { %2639 = vpow2.f32 %v2481_v51 }
 0x2be   : > { %2641 = vrcp.f32 %v1637_v37 }
 0x2bf   : > { %2643 = vrcp.f32 %v5637_v36 }
 0x2c2   : > { %v2638_v25 = vpop.eup %2637 }
 0x2c3   : > { %v2640_v39 = vpop.eup %2639  ;;  %v1542_v35 = vmul.f32 %v2638_v25, %v1536_v56  ;;  %v6762_v25 = vld [vmem:[#allocation34_spill] sm:$0xff]  ;;  %v6763_v56 = vld [vmem:[#allocation35_spill] sm:$0xff] }
 0x2c4   : > { %v2642_v45 = vpop.eup %2641  ;;  %v5642_v40 = vadd.f32 1.0, %v2640_v39  ;;  %v6764_v39 = vld [vmem:[#allocation36_spill] sm:$0xff] }
 0x2c5   : > { %v2644_v41 = vpop.eup %2643  ;;  %v1639_v49 = vmul.f32 %v2642_v45, %v1637_v37  ;;  %2478 = vst [vmem:[%s3122_s9 + $0x8] sm:$0xff] %v1542_v35  ;;  %1713 = vmatmul.f32.vlgmr.msra.gmra.mxu0 %v1542_v35  ;;  %1733 = vmatmul.f32.vlgmr.msra.gmra.mxu1 %v1542_v35  ;;  %vm1644_vm0 = vweird.f32 %v2642_v45  ;;  %v6756_v37 = vld [vmem:[#allocation28_spill] sm:$0xff] }
 0x2c6   : > { %v1658_v6 = vmul.f32 %v2644_v41, %v5637_v36  ;;  %2645 = vrcp.f32 %v5642_v40  ;;  %1753 = vmatmul.f32.vlgmr.msra.gmra.mxu2 %v1542_v35  ;;  %1773 = vmatmul.f32.vlgmr.msra.gmra.mxu3 %v1542_v35  ;;  %vm1663_vm1 = vweird.f32 %v2644_v41  ;;  %vm1645_vm4 = vmor %vm1643_vm2, %vm1644_vm0  ;;  %vm1682_vm9 = vweird.f32 %v5642_v40  ;;  %v6765_v35 = vld [vmem:[#allocation37_spill] sm:$0xff] }
 0x2c7   : > { %v1640_v47 = vsub.f32 1.0, %v1639_v49  ;;  %1931 = vmatpush.msra.mxu0 %v4647_v59  ;;  %1951 = vmatpush.msra.mxu1 %v4653_v50  ;;  %2647 = vtanh.f32 %v1632_v43  ;;  %v1666_v59 = vand.u32 2147483647, %v5637_v36  ;;  %vm1664_vm5 = vmor %vm1662_vm3, %vm1663_vm1  ;;  %v6757_v36 = vld [vmem:[#allocation29_spill] sm:$0xff]  ;;  %v6768_v43 = vld [vmem:[#allocation40_spill] sm:$0xff] }
 0x2c8   : > { %v1659_v48 = vsub.f32 1.0, %v1658_v6  ;;  %1971 = vmatpush.msra.mxu2 %v4663_v57  ;;  %1991 = vmatpush.msra.mxu3 %v4669_v2  ;;  %v1650_v2 = vor.u32 1.1754944e-38, %v1649_v61  ;;  %v6771_v49 = vld [vmem:[#allocation43_spill] sm:$0xff]  ;;  %v6772_v6 = vld [vmem:[#allocation44_spill] sm:$0xff] }
 0x2c9   : > { %v1641_v55 = vmul.f32 %v2642_v45, %v1640_v47  ;;  %1932 = vmatpush.msra.mxu0 %v4677_v52  ;;  %1952 = vmatpush.msra.mxu1 %v4683_v54  ;;  %v1669_v54 = vor.u32 1.1754944e-38, %v1668_v14  ;;  %vm1667_vm7 = vcmp.eq.f32.partialorder %v1666_v59, 8.507059e+37  ;;  %v6773_v47 = vld [vmem:[#allocation45_spill] sm:$0xff]  ;;  %v6775_v61 = vld [vmem:[#allocation47_spill] sm:$0xff]  ;;  %v6776_v14 = vld [vmem:[#allocation48_spill] sm:$0xff] }
 0x2ca   : > { %v1660_v53 = vmul.f32 %v2644_v41, %v1659_v48  ;;  %1972 = vmatpush.msra.mxu2 %v4689_v63  ;;  %1992 = vmatpush.msra.mxu3 %v4695_v1  ;;  %v6774_v48 = vld [vmem:[#allocation46_spill] sm:$0xff]  ;;  %v6780_v59 = vld [vmem:[#allocation52_spill] sm:$0xff] }
 0x2cb   : > { %v1642_v50 = vadd.f32 %v2642_v45, %v1641_v55  ;;  %1933 = vmatpush.msra.mxu0 %v4701_v3  ;;  %1953 = vmatpush.msra.mxu1 %v4707_v4  ;;  %v6777_v55 = vld [vmem:[#allocation49_spill] sm:$0xff] }
 0x2cc   : > { %v2646_v57 = vpop.eup %2645  ;;  %v1661_v52 = vadd.f32 %v2644_v41, %v1660_v53  ;;  %1973 = vmatpush.msra.mxu2 %v4713_v0  ;;  %1993 = vmatpush.msra.mxu3 %v4719_v22  ;;  %v6779_v53 = vld [vmem:[#allocation51_spill] sm:$0xff] }
 0x2cd   : > { %v1646_v63 = vsel %vm1645_vm4, %v2642_v45, %v1642_v50  ;;  %v1678_v1 = vmul.f32 %v2646_v57, %v5642_v40  ;;  %1934 = vmatpush.msra.mxu0 %v4727_v7  ;;  %1954 = vmatpush.msra.mxu1 %v4733_v8  ;;  %v2648_v3 = vpop.eup %2647  ;;  %vm1683_vm8 = vweird.f32 %v2646_v57  ;;  %v6766_v45 = vld [vmem:[#allocation38_spill] sm:$0xff]  ;;  %v6781_v50 = vld [vmem:[#allocation53_spill] sm:$0xff] }
 0x2ce   : > { %v1651_v4 = vsel %vm1648_vm6, %v1650_v2, %v1646_v63  ;;  %v1665_v51 = vsel %vm1664_vm5, %v2644_v41, %v1661_v52  ;;  %1974 = vmatpush.msra.mxu2 %v4739_v9  ;;  %1994 = vmatpush.msra.mxu3 %v4745_v10  ;;  %v1686_v10 = vand.u32 2147483647, %v5642_v40  ;;  %vm1684_vm10 = vmor %vm1682_vm9, %vm1683_vm8  ;;  %v6770_v41 = vld [vmem:[#allocation42_spill] sm:$0xff]  ;;  %v6783_v2 = vld [vmem:[#allocation55_spill] sm:$0xff] }
 0x2cf   : > { %v1670_v0 = vsel %vm1667_vm7, %v1669_v54, %v1665_v51  ;;  %v1693_v22 = vmul.f32 %v2648_v3, %v1651_v4  ;;  %v1679_v44 = vsub.f32 1.0, %v1678_v1  ;;  %1935 = vmatpush.msra.mxu0 %v4755_v11  ;;  %1955 = vmatpush.msra.mxu1 %v4761_v12  ;;  %v6784_v52 = vld [vmem:[#allocation56_spill] sm:$0xff]  ;;  %v6785_v54 = vld [vmem:[#allocation57_spill] sm:$0xff]  ;;  %v6786_v63 = vld [vmem:[#allocation58_spill] sm:$0xff] }
 0x2d0   : > { %v1692_v60 = vmul.f32 %v1670_v0, %v4636_v27  ;;  %1975 = vmatpush.msra.mxu2 %v4767_v13  ;;  %1995 = vmatpush.msra.mxu3 %v4773_v15  ;;  %v1688_v27 = vand.u32 2147483648, %v5642_v40  ;;  %v6742_v13 = vld [vmem:[#allocation14_spill] sm:$0xff]  ;;  %v6743_v15 = vld [vmem:[#allocation15_spill] sm:$0xff]  ;;  %vm1687_vm11 = vcmp.eq.f32.partialorder %v1686_v10, 8.507059e+37  ;;  %v6769_v40 = vld [vmem:[#allocation41_spill] sm:$0xff] }
 0x2d1   : > { %v1680_v7 = vmul.f32 %v2646_v57, %v1679_v44  ;;  %1936 = vmatpush.msra.mxu0 %v4779_v16  ;;  %1956 = vmatpush.msra.mxu1 %v4785_v18  ;;  %v6744_v16 = vld [vmem:[#allocation16_spill] sm:$0xff]  ;;  %v6745_v18 = vld [vmem:[#allocation17_spill] sm:$0xff]  ;;  %v6787_v1 = vld [vmem:[#allocation59_spill] sm:$0xff] }
 0x2d2   : > { %v5676_v8 = vadd.f32 %v1693_v22, %v1692_v60  ;;  %1976 = vmatpush.msra.mxu2 %v4791_v19  ;;  %1996 = vmatpush.msra.mxu3 %v4797_v20  ;;  %v1689_v12 = vor.u32 1.1754944e-38, %v1688_v27  ;;  %v6788_v3 = vld [vmem:[#allocation60_spill] sm:$0xff]  ;;  %v6789_v4 = vld [vmem:[#allocation61_spill] sm:$0xff]  ;;  %v6790_v51 = vld [vmem:[#allocation62_spill] sm:$0xff] }
 0x2d3   : > { %v1681_v9 = vadd.f32 %v2646_v57, %v1680_v7  ;;  %1937 = vmatpush.msra.mxu0 %v4803_v24  ;;  %1957 = vmatpush.msra.mxu1 %v4809_v26  ;;  %v6746_v24 = vld [vmem:[#allocation18_spill] sm:$0xff]  ;;  %v6747_v26 = vld [vmem:[#allocation19_spill] sm:$0xff]  ;;  %v6792_v22 = vld [vmem:[#allocation64_spill] sm:$0xff] }
 0x2d4   : > { %2649 = vtanh.f32 %v5676_v8  ;;  %1977 = vmatpush.msra.mxu2 %v4815_v28  ;;  %1997 = vmatpush.msra.mxu3 %v4821_v29  ;;  %v6748_v29 = vld [vmem:[#allocation20_spill] sm:$0xff]  ;;  %v6791_v0 = vld [vmem:[#allocation63_spill] sm:$0xff]  ;;  %v6793_v44 = vld [vmem:[#allocation65_spill] sm:$0xff] }
 0x2d5   : > { %1938 = vmatpush.msra.mxu0 %v4827_v31  ;;  %1958 = vmatpush.msra.mxu1 %v4833_v30  ;;  %v1685_v11 = vsel %vm1684_vm10, %v2646_v57, %v1681_v9  ;;  %v6749_v31 = vld [vmem:[#allocation21_spill] sm:$0xff]  ;;  %v6750_v30 = vld [vmem:[#allocation22_spill] sm:$0xff]  ;;  %v6795_v7 = vld [vmem:[#allocation67_spill] sm:$0xff] }
 0x2d6   : > { %1978 = vmatpush.msra.mxu2 %v4839_v21  ;;  %1998 = vmatpush.msra.mxu3 %v4845_v32  ;;  %v1690_v20 = vsel %vm1687_vm11, %v1689_v12, %v1685_v11  ;;  %v6751_v21 = vld [vmem:[#allocation23_spill] sm:$0xff]  ;;  %v6752_v32 = vld [vmem:[#allocation24_spill] sm:$0xff]  ;;  %v6782_v57 = vld [vmem:[#allocation54_spill] sm:$0xff] }
 0x2d7   : > { %1939 = vmatpush.msra.mxu0 %v4851_v33  ;;  %1959 = vmatpush.msra.mxu1 %v4857_v34  ;;  %v6753_v33 = vld [vmem:[#allocation25_spill] sm:$0xff]  ;;  %v6754_v34 = vld [vmem:[#allocation26_spill] sm:$0xff]  ;;  %v6796_v9 = vld [vmem:[#allocation68_spill] sm:$0xff] }
 0x2d8   : > { %1979 = vmatpush.msra.mxu2 %v6742_v13  ;;  %1999 = vmatpush.msra.mxu3 %v6743_v15  ;;  %v6794_v60 = vld [vmem:[#allocation66_spill] sm:$0xff]  ;;  %v6797_v27 = vld [vmem:[#allocation69_spill] sm:$0xff]  ;;  %v6799_v11 = vld [vmem:[#allocation71_spill] sm:$0xff] }
 0x2d9   : > { %1940 = vmatpush.msra.mxu0 %v6744_v16  ;;  %1960 = vmatpush.msra.mxu1 %v6745_v18  ;;  %v6798_v10 = vld [vmem:[#allocation70_spill] sm:$0xff]  ;;  %v6800_v12 = vld [vmem:[#allocation72_spill] sm:$0xff]  ;;  %v6801_v13 = vld [vmem:[#allocation73_spill] sm:$0xff] }
 0x2da   : > { %v2650_v19 = vpop.eup %2649  ;;  %1980 = vmatpush.msra.mxu2 %v6746_v24  ;;  %2000 = vmatpush.msra.mxu3 %v6747_v26  ;;  %v6802_v15 = vld [vmem:[#allocation74_spill] sm:$0xff]  ;;  %v6803_v16 = vld [vmem:[#allocation75_spill] sm:$0xff]  ;;  %v6804_v18 = vld [vmem:[#allocation76_spill] sm:$0xff] }
 0x2db   : > { %v1696_v28 = vmul.f32 %v2650_v19, %v1690_v20  ;;  %1941 = vmatpush.msra.mxu0 %v6748_v29  ;;  %1961 = vmatpush.msra.mxu1 %v6749_v31  ;;  %v6805_v19 = vld [vmem:[#allocation77_spill] sm:$0xff]  ;;  %v6806_v20 = vld [vmem:[#allocation78_spill] sm:$0xff]  ;;  %v6807_v24 = vld [vmem:[#allocation79_spill] sm:$0xff] }
 0x2dc   : > { %1981 = vmatpush.msra.mxu2 %v6750_v30  ;;  %2001 = vmatpush.msra.mxu3 %v6751_v21  ;;  %v6808_v26 = vld [vmem:[#allocation80_spill] sm:$0xff]  ;;  %v6810_v29 = vld [vmem:[#allocation82_spill] sm:$0xff]  ;;  %v6811_v31 = vld [vmem:[#allocation83_spill] sm:$0xff] }
 0x2dd   : > { %1793 = vmatmul.f32.vlgmr.msrb.gmra.mxu0 %v1696_v28  ;;  %1813 = vmatmul.f32.vlgmr.msrb.gmra.mxu1 %v1696_v28  ;;  %v6812_v30 = vld [vmem:[#allocation84_spill] sm:$0xff]  ;;  %v6813_v21 = vld [vmem:[#allocation85_spill] sm:$0xff] }
 0x2de   : > { %1833 = vmatmul.f32.vlgmr.msrb.gmra.mxu2 %v1696_v28  ;;  %1853 = vmatmul.f32.vlgmr.msrb.gmra.mxu3 %v1696_v28 }
 0x2df   : > { %1942 = vmatpush.msra.mxu0 %v6752_v32  ;;  %1962 = vmatpush.msra.mxu1 %v6753_v33  ;;  %v6814_v32 = vld [vmem:[#allocation86_spill] sm:$0xff]  ;;  %v6815_v33 = vld [vmem:[#allocation87_spill] sm:$0xff] }
 0x2e0   : > { %1982 = vmatpush.msra.mxu2 %v6754_v34  ;;  %2002 = vmatpush.msra.mxu3 %v6755_v46  ;;  %v6816_v34 = vld [vmem:[#allocation88_spill] sm:$0xff]  ;;  %v6817_v46 = vld [vmem:[#allocation89_spill] sm:$0xff] }
 0x2e1   : > { %1943 = vmatpush.msra.mxu0 %v6756_v37  ;;  %1963 = vmatpush.msra.mxu1 %v6757_v36  ;;  %v6818_v37 = vld [vmem:[#allocation90_spill] sm:$0xff]  ;;  %v6819_v36 = vld [vmem:[#allocation91_spill] sm:$0xff] }
 0x2e2   : > { %1983 = vmatpush.msra.mxu2 %v6758_v23  ;;  %2003 = vmatpush.msra.mxu3 %v6759_v38  ;;  %v6820_v23 = vld [vmem:[#allocation92_spill] sm:$0xff]  ;;  %v6821_v38 = vld [vmem:[#allocation93_spill] sm:$0xff] }
 0x2e3   : > { %1944 = vmatpush.msra.mxu0 %v6760_v17  ;;  %1964 = vmatpush.msra.mxu1 %v6761_v62  ;;  %v6822_v17 = vld [vmem:[#allocation94_spill] sm:$0xff]  ;;  %v6823_v62 = vld [vmem:[#allocation95_spill] sm:$0xff] }
 0x2e4   : > { %1984 = vmatpush.msra.mxu2 %v6762_v25  ;;  %2004 = vmatpush.msra.mxu3 %v6763_v56  ;;  %v6824_v25 = vld [vmem:[#allocation96_spill] sm:$0xff]  ;;  %v6825_v56 = vld [vmem:[#allocation97_spill] sm:$0xff] }
 0x2e5   : > { %1945 = vmatpush.msra.mxu0 %v6764_v39  ;;  %1965 = vmatpush.msra.mxu1 %v6765_v35  ;;  %v6826_v39 = vld [vmem:[#allocation98_spill] sm:$0xff]  ;;  %v6827_v35 = vld [vmem:[#allocation99_spill] sm:$0xff] }
 0x2e6   : > { %1985 = vmatpush.msra.mxu2 %v6766_v45  ;;  %2005 = vmatpush.msra.mxu3 %v6767_v5  ;;  %v6828_v45 = vld [vmem:[#allocation100_spill] sm:$0xff]  ;;  %v6829_v5 = vld [vmem:[#allocation101_spill] sm:$0xff] }
 0x2e7   : > { %1946 = vmatpush.msra.mxu0 %v6768_v43  ;;  %1966 = vmatpush.msra.mxu1 %v6769_v40  ;;  %v6830_v43 = vld [vmem:[#allocation102_spill] sm:$0xff]  ;;  %v6831_v40 = vld [vmem:[#allocation103_spill] sm:$0xff] }
 0x2e8   : > { %1986 = vmatpush.msra.mxu2 %v6770_v41  ;;  %2006 = vmatpush.msra.mxu3 %v6771_v49  ;;  %v6832_v41 = vld [vmem:[#allocation104_spill] sm:$0xff]  ;;  %v6833_v49 = vld [vmem:[#allocation105_spill] sm:$0xff] }
 0x2e9   : > { %1947 = vmatmul.f32.vlgmr.msra.gmra.mxu0 %v1696_v28  ;;  %1967 = vmatmul.f32.vlgmr.msra.gmra.mxu1 %v1696_v28 }
 0x2ea   : > { %1987 = vmatmul.f32.vlgmr.msra.gmra.mxu2 %v1696_v28  ;;  %2007 = vmatmul.f32.vlgmr.msra.gmra.mxu3 %v1696_v28  ;;  %v6809_v28 = vld [vmem:[#allocation81_spill] sm:$0xff] }
 0x2eb   : > { %2078 = vmatpush.msrb.mxu0 %v6772_v6  ;;  %2098 = vmatpush.msrb.mxu1 %v6773_v47  ;;  %v6834_v6 = vld [vmem:[#allocation106_spill] sm:$0xff]  ;;  %v6835_v47 = vld [vmem:[#allocation107_spill] sm:$0xff] }
 0x2ec   : > { %2118 = vmatpush.msrb.mxu2 %v6774_v48  ;;  %2138 = vmatpush.msrb.mxu3 %v6775_v61  ;;  %v6836_v48 = vld [vmem:[#allocation108_spill] sm:$0xff]  ;;  %v6837_v61 = vld [vmem:[#allocation109_spill] sm:$0xff] }
 0x2ed   : > { %2079 = vmatpush.msrb.mxu0 %v6776_v14  ;;  %2099 = vmatpush.msrb.mxu1 %v6777_v55  ;;  %v6838_v14 = vld [vmem:[#allocation111_spill] sm:$0xff]  ;;  %v6839_v55 = vld [vmem:[#allocation112_spill] sm:$0xff] }
 0x2ee   : > { %2119 = vmatpush.msrb.mxu2 %v6778_v42  ;;  %2139 = vmatpush.msrb.mxu3 %v6779_v53  ;;  %v6840_v42 = vld [vmem:[#allocation113_spill] sm:$0xff]  ;;  %v6841_v53 = vld [vmem:[#allocation114_spill] sm:$0xff] }
 0x2ef   : > { %2080 = vmatpush.msrb.mxu0 %v6780_v59  ;;  %2100 = vmatpush.msrb.mxu1 %v6781_v50  ;;  %v6842_v59 = vld [vmem:[#allocation115_spill] sm:$0xff]  ;;  %v6843_v50 = vld [vmem:[#allocation116_spill] sm:$0xff] }
 0x2f0   : > { %2120 = vmatpush.msrb.mxu2 %v6782_v57  ;;  %2140 = vmatpush.msrb.mxu3 %v6783_v2  ;;  %v6844_v57 = vld [vmem:[#allocation117_spill] sm:$0xff]  ;;  %v6845_v2 = vld [vmem:[#allocation118_spill] sm:$0xff] }
 0x2f1   : > { %2081 = vmatpush.msrb.mxu0 %v6784_v52  ;;  %2101 = vmatpush.msrb.mxu1 %v6785_v54  ;;  %v6846_v52 = vld [vmem:[#allocation121_spill] sm:$0xff]  ;;  %v6847_v54 = vld [vmem:[#allocation122_spill] sm:$0xff] }
 0x2f2   : > { %2121 = vmatpush.msrb.mxu2 %v6786_v63  ;;  %2141 = vmatpush.msrb.mxu3 %v6787_v1  ;;  %v6848_v63 = vld [vmem:[#allocation123_spill] sm:$0xff]  ;;  %v6849_v1 = vld [vmem:[#allocation124_spill] sm:$0xff] }
 0x2f3   : > { %2082 = vmatpush.msrb.mxu0 %v6788_v3  ;;  %2102 = vmatpush.msrb.mxu1 %v6789_v4  ;;  %v6850_v3 = vld [vmem:[#allocation125_spill] sm:$0xff]  ;;  %v6851_v4 = vld [vmem:[#allocation126_spill] sm:$0xff] }
 0x2f4   : > { %2122 = vmatpush.msrb.mxu2 %v6790_v51  ;;  %2142 = vmatpush.msrb.mxu3 %v6791_v0  ;;  %v6852_v51 = vld [vmem:[#allocation127_spill] sm:$0xff]  ;;  %v6853_v0 = vld [vmem:[#allocation128_spill] sm:$0xff] }
 0x2f5   : > { %2083 = vmatpush.msrb.mxu0 %v6792_v22  ;;  %2103 = vmatpush.msrb.mxu1 %v6793_v44  ;;  %v6854_v22 = vld [vmem:[#allocation129_spill] sm:$0xff]  ;;  %v6855_v44 = vld [vmem:[#allocation130_spill] sm:$0xff] }
 0x2f6   : > { %2123 = vmatpush.msrb.mxu2 %v6794_v60  ;;  %2143 = vmatpush.msrb.mxu3 %v6795_v7  ;;  %v6856_v60 = vld [vmem:[#allocation131_spill] sm:$0xff]  ;;  %v6857_v7 = vld [vmem:[#allocation132_spill] sm:$0xff] }
 0x2f7   : > { %2084 = vmatpush.msrb.mxu0 %v6796_v9  ;;  %2104 = vmatpush.msrb.mxu1 %v6797_v27  ;;  %v6858_v9 = vld [vmem:[#allocation135_spill] sm:$0xff]  ;;  %v6859_v27 = vld [vmem:[#allocation136_spill] sm:$0xff] }
 0x2f8   : > { %2124 = vmatpush.msrb.mxu2 %v6798_v10  ;;  %2144 = vmatpush.msrb.mxu3 %v6799_v11  ;;  %v6860_v10 = vld [vmem:[#allocation137_spill] sm:$0xff]  ;;  %v6861_v11 = vld [vmem:[#allocation138_spill] sm:$0xff] }
 0x2f9   : > { %2085 = vmatpush.msrb.mxu0 %v6800_v12  ;;  %2105 = vmatpush.msrb.mxu1 %v6801_v13  ;;  %v6862_v12 = vld [vmem:[#allocation139_spill] sm:$0xff]  ;;  %v6863_v13 = vld [vmem:[#allocation142_spill] sm:$0xff] }
 0x2fa   : > { %2125 = vmatpush.msrb.mxu2 %v6802_v15  ;;  %2145 = vmatpush.msrb.mxu3 %v6803_v16  ;;  %v6864_v15 = vld [vmem:[#allocation143_spill] sm:$0xff]  ;;  %v6865_v16 = vld [vmem:[#allocation144_spill] sm:$0xff] }
 0x2fb   : > { %2086 = vmatpush.msrb.mxu0 %v6804_v18  ;;  %2106 = vmatpush.msrb.mxu1 %v6805_v19  ;;  %v6866_v18 = vld [vmem:[#allocation145_spill] sm:$0xff]  ;;  %v6867_v19 = vld [vmem:[#allocation146_spill] sm:$0xff] }
 0x2fc   : > { %2126 = vmatpush.msrb.mxu2 %v6806_v20  ;;  %2146 = vmatpush.msrb.mxu3 %v6807_v24  ;;  %v6868_v20 = vld [vmem:[#allocation147_spill] sm:$0xff]  ;;  %v6869_v24 = vld [vmem:[#allocation148_spill] sm:$0xff] }
 0x2fd   : > { %2087 = vmatpush.msrb.mxu0 %v6808_v26  ;;  %2107 = vmatpush.msrb.mxu1 %v6809_v28  ;;  %v6870_v26 = vld [vmem:[#allocation149_spill] sm:$0xff]  ;;  %v6871_v28 = vld [vmem:[#allocation150_spill] sm:$0xff] }
 0x2fe   : > { %2127 = vmatpush.msrb.mxu2 %v6810_v29  ;;  %2147 = vmatpush.msrb.mxu3 %v6811_v31  ;;  %v6872_v29 = vld [vmem:[#allocation151_spill] sm:$0xff]  ;;  %v6873_v31 = vld [vmem:[#allocation152_spill] sm:$0xff] }
 0x2ff   : > { %2088 = vmatpush.msrb.mxu0 %v6812_v30  ;;  %2108 = vmatpush.msrb.mxu1 %v6813_v21  ;;  %v6874_v30 = vld [vmem:[#allocation153_spill] sm:$0xff]  ;;  %v6875_v21 = vld [vmem:[#allocation154_spill] sm:$0xff] }
 0x300   : > { %2128 = vmatpush.msrb.mxu2 %v6814_v32  ;;  %2148 = vmatpush.msrb.mxu3 %v6815_v33  ;;  %v6876_v32 = vld [vmem:[#allocation155_spill] sm:$0xff]  ;;  %v6877_v33 = vld [vmem:[#allocation156_spill] sm:$0xff] }
 0x301   : > { %2089 = vmatpush.msrb.mxu0 %v6816_v34  ;;  %2109 = vmatpush.msrb.mxu1 %v6817_v46  ;;  %v6878_v34 = vld [vmem:[#allocation159_spill] sm:$0xff] }
 0x302   : > { %2129 = vmatpush.msrb.mxu2 %v6818_v37  ;;  %2149 = vmatpush.msrb.mxu3 %v6819_v36  ;;  %v6879_v46 = vld [vmem:[#allocation119_spill] sm:$0xff]  ;;  %v6880_v37 = vld [vmem:[#allocation120_spill] sm:$0xff]  ;;  %v6881_v36 = vld [vmem:[#allocation134_spill] sm:$0xff] }
 0x303   : > { %2090 = vmatpush.msrb.mxu0 %v6820_v23  ;;  %2110 = vmatpush.msrb.mxu1 %v6821_v38  ;;  %v6882_v23 = vld [vmem:[#allocation133_spill] sm:$0xff]  ;;  %v6883_v38 = vld [vmem:[#allocation164_spill] sm:$0xff] }
 0x304   : > { %2130 = vmatpush.msrb.mxu2 %v6822_v17  ;;  %2150 = vmatpush.msrb.mxu3 %v6823_v62  ;;  %v6884_v17 = vld [vmem:[#allocation165_spill] sm:$0xff]  ;;  %v6885_v62 = vld [vmem:[#allocation166_spill] sm:$0xff] }
 0x305   : > { %2091 = vmatpush.msrb.mxu0 %v6824_v25  ;;  %2111 = vmatpush.msrb.mxu1 %v6825_v56  ;;  %v6886_v25 = vld [vmem:[#allocation167_spill] sm:$0xff]  ;;  %v6887_v56 = vld [vmem:[#allocation168_spill] sm:$0xff] }
 0x306   : > { %2131 = vmatpush.msrb.mxu2 %v6826_v39  ;;  %2151 = vmatpush.msrb.mxu3 %v6827_v35  ;;  %v6888_v39 = vld [vmem:[#allocation169_spill] sm:$0xff]  ;;  %v6889_v35 = vld [vmem:[#allocation170_spill] sm:$0xff] }
 0x307   : > { %2092 = vmatpush.msrb.mxu0 %v6828_v45  ;;  %2112 = vmatpush.msrb.mxu1 %v6829_v5  ;;  %v6890_v45 = vld [vmem:[#allocation171_spill] sm:$0xff]  ;;  %v6891_v5 = vld [vmem:[#allocation172_spill] sm:$0xff] }
 0x308   : > { %2132 = vmatpush.msrb.mxu2 %v6830_v43  ;;  %2152 = vmatpush.msrb.mxu3 %v6831_v40  ;;  %v6892_v43 = vld [vmem:[#allocation173_spill] sm:$0xff]  ;;  %v6893_v40 = vld [vmem:[#allocation174_spill] sm:$0xff] }
 0x309   : > { %2093 = vmatpush.msrb.mxu0 %v6832_v41  ;;  %2113 = vmatpush.msrb.mxu1 %v6833_v49  ;;  %v6894_v41 = vld [vmem:[#allocation175_spill] sm:$0xff]  ;;  %v6895_v49 = vld [vmem:[#allocation176_spill] sm:$0xff] }
 0x30a   : > { %2133 = vmatpush.msrb.mxu2 %v6834_v6  ;;  %2153 = vmatpush.msrb.mxu3 %v6835_v47  ;;  %v6896_v6 = vld [vmem:[#allocation177_spill] sm:$0xff]  ;;  %v6897_v47 = vld [vmem:[#allocation178_spill] sm:$0xff] }
 0x30b   : > { %2158 = vmatpush.msra.mxu0 %v6836_v48  ;;  %2178 = vmatpush.msra.mxu1 %v6837_v61  ;;  %v6898_v48 = vld [vmem:[#allocation179_spill] sm:$0xff]  ;;  %v6899_v61 = vld [vmem:[#allocation180_spill] sm:$0xff] }
 0x30c   : > { %2198 = vmatpush.msra.mxu2 %v6838_v14  ;;  %2218 = vmatpush.msra.mxu3 %v6839_v55 }
 0x30d   : > { %2159 = vmatpush.msra.mxu0 %v6840_v42  ;;  %2179 = vmatpush.msra.mxu1 %v6841_v53 }
 0x30e   : > { %2199 = vmatpush.msra.mxu2 %v6842_v59  ;;  %2219 = vmatpush.msra.mxu3 %v6843_v50 }
 0x30f   : > { %2160 = vmatpush.msra.mxu0 %v6844_v57  ;;  %2180 = vmatpush.msra.mxu1 %v6845_v2  ;;  %v6900_v2 = vld [vmem:[#allocation110_spill] sm:$0xff] }
 0x310   : > { %2200 = vmatpush.msra.mxu2 %v6846_v52  ;;  %2220 = vmatpush.msra.mxu3 %v6847_v54  ;;  %v6901_v54 = vld [vmem:[#allocation11_spill] sm:$0xff] }
 0x311   : > { %2161 = vmatpush.msra.mxu0 %v6848_v63  ;;  %2181 = vmatpush.msra.mxu1 %v6849_v1 }
 0x312   : > { %2201 = vmatpush.msra.mxu2 %v6850_v3  ;;  %2221 = vmatpush.msra.mxu3 %v6851_v4 }
 0x313   : > { %2162 = vmatpush.msra.mxu0 %v6852_v51  ;;  %2182 = vmatpush.msra.mxu1 %v6853_v0 }
 0x314   : > { %2202 = vmatpush.msra.mxu2 %v6854_v22  ;;  %2222 = vmatpush.msra.mxu3 %v6855_v44  ;;  %v6902_v22 = vld [vmem:[#allocation12_spill] sm:$0xff] }
 0x315   : > { %2163 = vmatpush.msra.mxu0 %v6856_v60  ;;  %2183 = vmatpush.msra.mxu1 %v6857_v7 }
 0x316   : > { %2203 = vmatpush.msra.mxu2 %v6858_v9  ;;  %2223 = vmatpush.msra.mxu3 %v6859_v27 }
 0x317   : > { %2164 = vmatpush.msra.mxu0 %v6860_v10  ;;  %2184 = vmatpush.msra.mxu1 %v6861_v11  ;;  %v6903_v10 = vld [vmem:[#allocation160_spill] sm:$0xff] }
 0x318   : > { %2204 = vmatpush.msra.mxu2 %v6862_v12  ;;  %2224 = vmatpush.msra.mxu3 %v6863_v13  ;;  %v6904_v12 = vld [vmem:[#allocation161_spill] sm:$0xff] }
 0x319   : > { %2165 = vmatpush.msra.mxu0 %v6864_v15  ;;  %2185 = vmatpush.msra.mxu1 %v6865_v16 }
 0x31a   : > { %2205 = vmatpush.msra.mxu2 %v6866_v18  ;;  %2225 = vmatpush.msra.mxu3 %v6867_v19 }
 0x31b   : > { %2166 = vmatpush.msra.mxu0 %v6868_v20  ;;  %2186 = vmatpush.msra.mxu1 %v6869_v24 }
 0x31c   : > { %2206 = vmatpush.msra.mxu2 %v6870_v26  ;;  %2226 = vmatpush.msra.mxu3 %v6871_v28 }
 0x31d   : > { %2167 = vmatpush.msra.mxu0 %v6872_v29  ;;  %2187 = vmatpush.msra.mxu1 %v6873_v31  ;;  %v6905_v31 = vld [vmem:[#allocation163_spill] sm:$0xff] }
 0x31e   : > { %2207 = vmatpush.msra.mxu2 %v6874_v30  ;;  %2227 = vmatpush.msra.mxu3 %v6875_v21  ;;  %v6906_v21 = vld [vmem:[#allocation13_spill] sm:$0xff] }
 0x31f   : > { %2168 = vmatpush.msra.mxu0 %v6876_v32  ;;  %2188 = vmatpush.msra.mxu1 %v6877_v33 }
 0x320   : > { %2208 = vmatpush.msra.mxu2 %v6878_v34  ;;  %2228 = vmatpush.msra.mxu3 %v6879_v46 }
 0x321   : > { %2169 = vmatpush.msra.mxu0 %v6880_v37  ;;  %2189 = vmatpush.msra.mxu1 %v6881_v36 }
 0x322   : > { %2209 = vmatpush.msra.mxu2 %v6882_v23  ;;  %2229 = vmatpush.msra.mxu3 %v6883_v38 }
 0x323   : > { %2170 = vmatpush.msra.mxu0 %v6884_v17  ;;  %2190 = vmatpush.msra.mxu1 %v6885_v62 }
 0x324   : > { %2210 = vmatpush.msra.mxu2 %v6886_v25  ;;  %2230 = vmatpush.msra.mxu3 %v6887_v56 }
 0x325   : > { %2171 = vmatpush.msra.mxu0 %v6888_v39  ;;  %2191 = vmatpush.msra.mxu1 %v6889_v35 }
 0x326   : > { %2211 = vmatpush.msra.mxu2 %v6890_v45  ;;  %2231 = vmatpush.msra.mxu3 %v6891_v5 }
 0x327   : > { %2172 = vmatpush.msra.mxu0 %v6892_v43  ;;  %2192 = vmatpush.msra.mxu1 %v6893_v40 }
 0x328   : > { %2212 = vmatpush.msra.mxu2 %v6894_v41  ;;  %2232 = vmatpush.msra.mxu3 %v6895_v49 }
 0x329   : > { %2173 = vmatpush.msra.mxu0 %v6896_v6  ;;  %2193 = vmatpush.msra.mxu1 %v6897_v47 }
 0x32a   : > { %2213 = vmatpush.msra.mxu2 %v6898_v48  ;;  %2233 = vmatpush.msra.mxu3 %v6899_v61 }
 0x342   : > { %v1714_v14 = vpop.f32.mrf.mxu0  ;;  %v1734_v55 = vpop.f32.mrf.mxu1 }
 0x349   : > { %v1774_v42 = vpop.f32.mrf.mxu3  ;;  %v1754_v4 = vpop.f32.mrf.mxu2 }
 0x35a   : > { %v1794_v53 = vpop.f32.mrf.mxu0  ;;  %v1814_v59 = vpop.f32.mrf.mxu1 }
 0x35b   : > { %v1795_v50 = vadd.f32 %v1794_v53, %v1714_v14  ;;  %v1815_v57 = vadd.f32 %v1814_v59, %v1734_v55 }
 0x35d   : > { %v1857_v52 = vadd.f32 %v1795_v50, %v6900_v2  ;;  %v1858_v63 = vadd.f32 %v1815_v57, %v6901_v54  ;;  %v6907_v50 = vld [vmem:[#allocation162_spill] sm:$0xff] }
 0x35f   : > { %v2482_v1 = vmul.f32 -1.442695, %v1857_v52  ;;  %v2483_v3 = vmul.f32 -1.442695, %v1858_v63 }
 0x361   : > { %2651 = vpow2.f32 %v2482_v1  ;;  %v1854_v51 = vpop.f32.mrf.mxu3  ;;  %v1834_v18 = vpop.f32.mrf.mxu2 }
 0x362   : > { %2653 = vpow2.f32 %v2483_v3  ;;  %v1855_v0 = vadd.f32 %v1854_v51, %v1774_v42  ;;  %v1835_v26 = vadd.f32 %v1834_v18, %v1754_v4 }
 0x364   : > { %v1860_v44 = vadd.f32 %v1855_v0, %v6902_v22  ;;  %v1859_v32 = vadd.f32 %v1835_v26, %v6906_v21 }
 0x366   : > { %v2484_v60 = vmul.f32 -1.442695, %v1860_v44  ;;  %v1948_v7 = vpop.f32.mrf.mxu0  ;;  %v1968_v9 = vpop.f32.mrf.mxu1 }
 0x367   : > { %v2652_v27 = vpop.eup %2651  ;;  %v2011_v11 = vadd.f32 %v1948_v7, %v6903_v10  ;;  %v2012_v13 = vadd.f32 %v1968_v9, %v6904_v12 }
 0x368   : > { %v2654_v15 = vpop.eup %2653  ;;  %v1864_v16 = vadd.f32 1.0, %v2652_v27  ;;  %2655 = vpow2.f32 %v2484_v60 }
 0x369   : > { %v1883_v19 = vadd.f32 1.0, %v2654_v15  ;;  %v2486_v20 = vmul.f32 -1.442695, %v2011_v11  ;;  %v2487_v24 = vmul.f32 -1.442695, %v2012_v13 }
 0x36a   : > { %2657 = vrcp.f32 %v1864_v16  ;;  %v1874_v39 = vand.u32 2147483647, %v1864_v16  ;;  %v1876_v35 = vand.u32 2147483648, %v1864_v16  ;;  %vm1870_vm15 = vweird.f32 %v1864_v16 }
 0x36b   : > { %2659 = vrcp.f32 %v1883_v19  ;;  %v1895_v5 = vand.u32 2147483648, %v1883_v19  ;;  %v1893_v41 = vand.u32 2147483647, %v1883_v19  ;;  %vm1889_vm14 = vweird.f32 %v1883_v19 }
 0x36c   : > { %2661 = vpow2.f32 %v2486_v20  ;;  %vm1875_vm1 = vcmp.eq.f32.partialorder %v1874_v39, 8.507059e+37  ;;  %v1877_v61 = vor.u32 1.1754944e-38, %v1876_v35 }
 0x36d   : > { %2663 = vpow2.f32 %v2487_v24  ;;  %v2008_v28 = vpop.f32.mrf.mxu3  ;;  %v1988_v49 = vpop.f32.mrf.mxu2  ;;  %v1896_v53 = vor.u32 1.1754944e-38, %v1895_v5  ;;  %vm1894_vm3 = vcmp.eq.f32.partialorder %v1893_v41, 8.507059e+37 }
 0x36e   : > { %v2656_v29 = vpop.eup %2655  ;;  %v2014_v30 = vadd.f32 %v2008_v28, %v6905_v31  ;;  %v2013_v57 = vadd.f32 %v1988_v49, %v6907_v50 }
 0x36f   : > { %v5859_v33 = vadd.f32 1.0, %v2656_v29 }
 0x370   : > { %v2658_v34 = vpop.eup %2657  ;;  %v2488_v46 = vmul.f32 -1.442695, %v2014_v30 }
 0x371   : > { %v2660_v37 = vpop.eup %2659  ;;  %v1866_v36 = vmul.f32 %v2658_v34, %v1864_v16  ;;  %2665 = vrcp.f32 %v5859_v33  ;;  %vm1871_vm12 = vweird.f32 %v2658_v34  ;;  %vm1909_vm4 = vweird.f32 %v5859_v33 }
 0x372   : > { %v2662_v23 = vpop.eup %2661  ;;  %v1885_v38 = vmul.f32 %v2660_v37, %v1883_v19  ;;  %2667 = vpow2.f32 %v2488_v46  ;;  %vm1890_vm13 = vweird.f32 %v2660_v37  ;;  %vm1872_vm0 = vmor %vm1870_vm15, %vm1871_vm12  ;;  %v1915_v11 = vand.u32 2147483648, %v5859_v33 }
 0x373   : > { %v2664_v17 = vpop.eup %2663  ;;  %v1867_v62 = vsub.f32 1.0, %v1866_v36  ;;  %2669 = vtanh.f32 %v1859_v32  ;;  %v5862_v25 = vadd.f32 1.0, %v2662_v23  ;;  %vm1891_vm2 = vmor %vm1889_vm14, %vm1890_vm13  ;;  %v1913_v28 = vand.u32 2147483647, %v5859_v33 }
 0x374   : > { %v1886_v56 = vsub.f32 1.0, %v1885_v38  ;;  %v5864_v45 = vadd.f32 1.0, %v2664_v17  ;;  %v1916_v32 = vor.u32 1.1754944e-38, %v1915_v11 }
 0x375   : > { %v1868_v43 = vmul.f32 %v2658_v34, %v1867_v62  ;;  %2671 = vrcp.f32 %v5862_v25  ;;  %v2028_v13 = vand.u32 2147483647, %v5862_v25  ;;  %v2030_v16 = vand.u32 2147483648, %v5862_v25 }
 0x376   : > { %v1887_v40 = vmul.f32 %v2660_v37, %v1886_v56  ;;  %2673 = vrcp.f32 %v5864_v45  ;;  %v2049_v18 = vand.u32 2147483648, %v5864_v45  ;;  %v2047_v26 = vand.u32 2147483647, %v5864_v45 }
 0x377   : > { %v5868_v6 = vpop.eup %2665  ;;  %v1869_v47 = vadd.f32 %v2658_v34, %v1868_v43  ;;  %vm2024_vm8 = vweird.f32 %v5862_v25  ;;  %vm2043_vm10 = vweird.f32 %v5864_v45  ;;  %v2031_v46 = vor.u32 1.1754944e-38, %v2030_v16 }
 0x378   : > { %v2668_v48 = vpop.eup %2667  ;;  %v1888_v14 = vadd.f32 %v2660_v37, %v1887_v40  ;;  %v1905_v55 = vmul.f32 %v5868_v6, %v5859_v33  ;;  %vm1910_vm5 = vweird.f32 %v5868_v6  ;;  %v2050_v23 = vor.u32 1.1754944e-38, %v2049_v18 }
 0x379   : > { %v2670_v42 = vpop.eup %2669  ;;  %v1873_v59 = vsel %vm1872_vm0, %v2658_v34, %v1869_v47  ;;  %v5874_v52 = vadd.f32 1.0, %v2668_v48  ;;  %vm5897_vm9 = vmor %vm1909_vm4, %vm1910_vm5  ;;  %vm2029_vm13 = vcmp.eq.f32.partialorder %v2028_v13, 8.507059e+37  ;;  %vm2048_vm14 = vcmp.eq.f32.partialorder %v2047_v26, 8.507059e+37 }
 0x37a   : > { %v1878_v63 = vsel %vm1875_vm1, %v1877_v61, %v1873_v59  ;;  %v1892_v1 = vsel %vm1891_vm2, %v2660_v37, %v1888_v14  ;;  %v1906_v3 = vsub.f32 1.0, %v1905_v55  ;;  %vm1914_vm15 = vcmp.eq.f32.partialorder %v1913_v28, 8.507059e+37 }
 0x37b   : > { %v2672_v4 = vpop.eup %2671  ;;  %v1897_v51 = vsel %vm1894_vm3, %v1896_v53, %v1892_v1  ;;  %v1920_v0 = vmul.f32 %v2670_v42, %v1878_v63  ;;  %2675 = vrcp.f32 %v5874_v52  ;;  %v2069_v49 = vand.u32 2147483648, %v5874_v52 }
 0x37c   : > { %v2674_v44 = vpop.eup %2673  ;;  %v1919_v60 = vmul.f32 %v1897_v51, %v5632_v58  ;;  %v1907_v7 = vmul.f32 %v5868_v6, %v1906_v3  ;;  %v2020_v9 = vmul.f32 %v2672_v4, %v5862_v25  ;;  %2677 = vtanh.f32 %v2013_v57 }
 0x37d   : > { %v2039_v27 = vmul.f32 %v2674_v44, %v5864_v45  ;;  %vm2025_vm6 = vweird.f32 %v2672_v4  ;;  %vm2044_vm7 = vweird.f32 %v2674_v44  ;;  %vm2063_vm1 = vweird.f32 %v5874_v52 }
 0x37e   : > { %v5882_v10 = vadd.f32 %v1920_v0, %v1919_v60  ;;  %v2021_v12 = vsub.f32 1.0, %v2020_v9  ;;  %v1908_v58 = vadd.f32 %v5868_v6, %v1907_v7  ;;  %vm2026_vm11 = vmor %vm2024_vm8, %vm2025_vm6 }
 0x37f   : > { %v2040_v15 = vsub.f32 1.0, %v2039_v27  ;;  %vm2045_vm12 = vmor %vm2043_vm10, %vm2044_vm7 }
 0x380   : > { %2679 = vtanh.f32 %v5882_v10  ;;  %v2022_v19 = vmul.f32 %v2672_v4, %v2021_v12  ;;  %v1912_v36 = vsel %vm5897_vm9, %v5868_v6, %v1908_v58  ;;  %v2067_v6 = vand.u32 2147483647, %v5874_v52 }
 0x381   : > { %v2676_v20 = vpop.eup %2675  ;;  %v2041_v24 = vmul.f32 %v2674_v44, %v2040_v15  ;;  %v1917_v45 = vsel %vm1914_vm15, %v1916_v32, %v1912_v36 }
 0x382   : > { %v2023_v29 = vadd.f32 %v2672_v4, %v2022_v19  ;;  %v2059_v31 = vmul.f32 %v2676_v20, %v5874_v52  ;;  %v2678_v34 = vpop.eup %2677  ;;  %vm2064_vm0 = vweird.f32 %v2676_v20  ;;  %vm2068_vm3 = vcmp.eq.f32.partialorder %v2067_v6, 8.507059e+37 }
 0x383   : > { %v2042_v37 = vadd.f32 %v2674_v44, %v2041_v24  ;;  %vm2065_vm2 = vmor %vm2063_vm1, %vm2064_vm0 }
 0x384   : > { %v2027_v38 = vsel %vm2026_vm11, %v2672_v4, %v2023_v29  ;;  %v2060_v33 = vsub.f32 1.0, %v2059_v31 }
 0x385   : > { %v2032_v17 = vsel %vm2029_vm13, %v2031_v46, %v2027_v38  ;;  %v2046_v62 = vsel %vm2045_vm12, %v2674_v44, %v2042_v37 }
 0x386   : > { %v2680_v25 = vpop.eup %2679  ;;  %v2051_v56 = vsel %vm2048_vm14, %v2050_v23, %v2046_v62  ;;  %v2074_v39 = vmul.f32 %v2678_v34, %v2032_v17  ;;  %v2061_v35 = vmul.f32 %v2676_v20, %v2060_v33 }
 0x387   : > { %v2073_v5 = vmul.f32 %v2051_v56, %v5676_v8  ;;  %v1923_v43 = vmul.f32 %v2680_v25, %v1917_v45  ;;  %v2070_v8 = vor.u32 1.1754944e-38, %v2069_v49 }
 0x388   : > { %v2062_v41 = vadd.f32 %v2676_v20, %v2061_v35 }
 0x389   : > { %v2075_v40 = vadd.f32 %v2074_v39, %v2073_v5  ;;  %2485 = vst [vmem:[%s3122_s9 + $0x10] sm:$0xff] %v1923_v43  ;;  %2094 = vmatmul.f32.vlgmr.msrb.gmra.mxu0 %v1923_v43  ;;  %2114 = vmatmul.f32.vlgmr.msrb.gmra.mxu1 %v1923_v43 }
 0x38a   : > { %2134 = vmatmul.f32.vlgmr.msrb.gmra.mxu2 %v1923_v43  ;;  %2154 = vmatmul.f32.vlgmr.msrb.gmra.mxu3 %v1923_v43  ;;  %v2066_v47 = vsel %vm2065_vm2, %v2676_v20, %v2062_v41 }
 0x38b   : > { %2681 = vtanh.f32 %v2075_v40  ;;  %2308 = vst [vmem:[#allocation2] sm:$0xff] %v2075_v40  ;;  %v2071_v61 = vsel %vm2068_vm3, %v2070_v8, %v2066_v47 }
 0x391   : > { %v2682_v48 = vpop.eup %2681 }
 0x392   : > { %v2077_v14 = vmul.f32 %v2682_v48, %v2071_v61  ;;  %v2359_v61 = vld [vmem:[%s3122_s9 + $0x8] sm:$0xff] (%p3079_p7) }
 0x393   : > { %2360 = vst [vmem:[%s2322_s18 + $0x10] sm:$0xff] (%p3079_p7), %v2359_v61 }
 0x394   : > { %2174 = vmatmul.f32.vlgmr.msra.gmra.mxu0 %v2077_v14  ;;  %2307 = vst [vmem:[#allocation2 + $0x10] sm:$0xff] %v2077_v14  ;;  %2194 = vmatmul.f32.vlgmr.msra.gmra.mxu1 %v2077_v14 }
 0x395   : > { %2214 = vmatmul.f32.vlgmr.msra.gmra.mxu2 %v2077_v14  ;;  %2234 = vmatmul.f32.vlgmr.msra.gmra.mxu3 %v2077_v14  ;;  %v2361_v14 = vld [vmem:[%s3122_s9 + $0x10] sm:$0xff] (%p3079_p7) }
 0x396   : > { %2362 = vst [vmem:[%s2322_s18 + $0x20] sm:$0xff] (%p3079_p7), %v2361_v14 }
 0x406   : > { %v2095_v55 = vpop.f32.mrf.mxu0  ;;  %v2115_v42 = vpop.f32.mrf.mxu1 }
 0x40d   : > { %v2155_v53 = vpop.f32.mrf.mxu3  ;;  %v2135_v3 = vpop.f32.mrf.mxu2 }
 0x411   : > { %v2175_v59 = vpop.f32.mrf.mxu0  ;;  %v2195_v50 = vpop.f32.mrf.mxu1 }
 0x412   : > { %v2176_v57 = vadd.f32 %v2175_v59, %v2095_v55  ;;  %v2196_v63 = vadd.f32 %v2195_v50, %v2115_v42 }
 0x414   : > { %v2238_v52 = vadd.f32 %v2176_v57, %v6900_v2  ;;  %v2239_v1 = vadd.f32 %v2196_v63, %v6901_v54 }
 0x416   : > { %v2489_v4 = vmul.f32 -1.442695, %v2238_v52  ;;  %v2490_v51 = vmul.f32 -1.442695, %v2239_v1 }
 0x418   : > { %2683 = vpow2.f32 %v2489_v4  ;;  %v2235_v0 = vpop.f32.mrf.mxu3  ;;  %v2215_v13 = vpop.f32.mrf.mxu2 }
 0x419   : > { %2685 = vpow2.f32 %v2490_v51  ;;  %v2236_v44 = vadd.f32 %v2235_v0, %v2155_v53  ;;  %v2216_v2 = vadd.f32 %v2215_v13, %v2135_v3 }
 0x41b   : > { %v2241_v60 = vadd.f32 %v2236_v44, %v6902_v22  ;;  %v2240_v58 = vadd.f32 %v2216_v2, %v6906_v21 }
 0x41d   : > { %v2491_v7 = vmul.f32 -1.442695, %v2241_v60 }
 0x41e   : > { %v2684_v9 = vpop.eup %2683 }
 0x41f   : > { %v2686_v27 = vpop.eup %2685  ;;  %v2245_v11 = vadd.f32 1.0, %v2684_v9  ;;  %2687 = vpow2.f32 %v2491_v7 }
 0x420   : > { %v2264_v12 = vadd.f32 1.0, %v2686_v27 }
 0x421   : > { %2689 = vrcp.f32 %v2245_v11  ;;  %v2257_v26 = vand.u32 2147483648, %v2245_v11  ;;  %v2255_v31 = vand.u32 2147483647, %v2245_v11  ;;  %vm2251_vm6 = vweird.f32 %v2245_v11 }
 0x422   : > { %2691 = vrcp.f32 %v2264_v12  ;;  %v2276_v28 = vand.u32 2147483648, %v2264_v12  ;;  %v2274_v32 = vand.u32 2147483647, %v2264_v12  ;;  %vm2270_vm7 = vweird.f32 %v2264_v12 }
 0x423   : > { %v2258_v21 = vor.u32 1.1754944e-38, %v2257_v26  ;;  %vm2256_vm10 = vcmp.eq.f32.partialorder %v2255_v31, 8.507059e+37 }
 0x424   : > { %v2277_v23 = vor.u32 1.1754944e-38, %v2276_v28  ;;  %vm2275_vm11 = vcmp.eq.f32.partialorder %v2274_v32, 8.507059e+37 }
 0x425   : > { %v2688_v54 = vpop.eup %2687 }
 0x426   : > { %v2284_v15 = vadd.f32 1.0, %v2688_v54 }
 0x427   : > { %v2690_v16 = vpop.eup %2689 }
 0x428   : > { %v2692_v18 = vpop.eup %2691  ;;  %v2247_v19 = vmul.f32 %v2690_v16, %v2245_v11  ;;  %2693 = vrcp.f32 %v2284_v15  ;;  %vm2252_vm4 = vweird.f32 %v2690_v16  ;;  %v2296_v40 = vand.u32 2147483648, %v2284_v15 }
 0x429   : > { %v2266_v20 = vmul.f32 %v2692_v18, %v2264_v12  ;;  %2695 = vtanh.f32 %v2240_v58  ;;  %vm2271_vm5 = vweird.f32 %v2692_v18  ;;  %vm2253_vm8 = vmor %vm2251_vm6, %vm2252_vm4  ;;  %vm2290_vm13 = vweird.f32 %v2284_v15 }
 0x42a   : > { %v2248_v22 = vsub.f32 1.0, %v2247_v19  ;;  %vm2272_vm9 = vmor %vm2270_vm7, %vm2271_vm5  ;;  %v2294_v41 = vand.u32 2147483647, %v2284_v15  ;;  %v2297_v6 = vor.u32 1.1754944e-38, %v2296_v40 }
 0x42b   : > { %v2267_v24 = vsub.f32 1.0, %v2266_v20 }
 0x42c   : > { %v2249_v29 = vmul.f32 %v2690_v16, %v2248_v22  ;;  %vm2295_vm15 = vcmp.eq.f32.partialorder %v2294_v41, 8.507059e+37 }
 0x42d   : > { %v2268_v30 = vmul.f32 %v2692_v18, %v2267_v24 }
 0x42e   : > { %v2694_v34 = vpop.eup %2693  ;;  %v2250_v46 = vadd.f32 %v2690_v16, %v2249_v29 }
 0x42f   : > { %v2269_v37 = vadd.f32 %v2692_v18, %v2268_v30  ;;  %v2286_v36 = vmul.f32 %v2694_v34, %v2284_v15  ;;  %v2696_v33 = vpop.eup %2695  ;;  %vm2291_vm12 = vweird.f32 %v2694_v34 }
 0x430   : > { %v2254_v38 = vsel %vm2253_vm8, %v2690_v16, %v2250_v46  ;;  %vm2292_vm14 = vmor %vm2290_vm13, %vm2291_vm12 }
 0x431   : > { %v2259_v17 = vsel %vm2256_vm10, %v2258_v21, %v2254_v38  ;;  %v2273_v62 = vsel %vm2272_vm9, %v2692_v18, %v2269_v37  ;;  %v2287_v25 = vsub.f32 1.0, %v2286_v36 }
 0x432   : > { %v2278_v56 = vsel %vm2275_vm11, %v2277_v23, %v2273_v62  ;;  %v2301_v39 = vmul.f32 %v2696_v33, %v2259_v17 }
 0x433   : > { %v2300_v35 = vmul.f32 %v2278_v56, %v5882_v10  ;;  %v2288_v45 = vmul.f32 %v2694_v34, %v2287_v25  ;;  %v2357_v10 = vld [vmem:[%s3122_s9] sm:$0xff] (%p3079_p7) }
 0x434   : > { %2358 = vst [vmem:[%s2322_s18] sm:$0xff] (%p3079_p7), %v2357_v10 }
 0x435   : > { %v2302_v5 = vadd.f32 %v2301_v39, %v2300_v35  ;;  %v2289_v43 = vadd.f32 %v2694_v34, %v2288_v45 }
 0x437   : > { %2697 = vtanh.f32 %v2302_v5  ;;  %2310 = vst [vmem:[#allocation2 + $0x8] sm:$0xff] %v2302_v5  ;;  %v2293_v49 = vsel %vm2292_vm14, %v2694_v34, %v2289_v43 }
 0x438   : > { %v2298_v8 = vsel %vm2295_vm15, %v2297_v6, %v2293_v49 }
 0x43d   : > { %v2698_v47 = vpop.eup %2697  ;;  %2317 = sbr.rel (!%p3079_p7) target bundleno = 1097 (0x449), region = 98 }
 0x43e   : > { %v2304_v48 = vmul.f32 %v2698_v47, %v2298_v8 }
 0x440   : > { %2492 = vst [vmem:[%s3122_s9 + $0x18] sm:$0xff] %v2304_v48 }
 0x441   : > { %2309 = vst [vmem:[#allocation2 + $0x18] sm:$0xff] %v2304_v48 }
 0x447   : > { %v2363_v55 = vld [vmem:[%s3122_s9 + $0x18] sm:$0xff] }
 0x448   : > { %2364 = vst [vmem:[%s2322_s18 + $0x30] sm:$0xff] %v2363_v55 }
 0x449 PF: > { %s18_s30 = sadd.s32 1, %s2979_s30   ;;  %s6910_s14 = sld [smem:[#allocation9_spill]] }
 0x44a   : > { %p15_p2 = scmp.ge.s32.totalorder %s18_s30, 6   ;;  %s6911_s8 = sld [smem:[#allocation10_spill]] }
 0x44b   : > { %s6912_s24 = smov %s2959_s25  ;;  %s6913_s25 = smov %s3100_s22 }
 0x44c   : > { %s6914_s26 = smov %s2971_s28  ;;  %s6915_s27 = smov %s2975_s29 }
 0x44d   :  { %17 = sbr.rel (!%p15_p2) target bundleno = 6 (0x6), region = 177 }
 0x44f   : > { %s6916_s28 = smov %s6910_s14 }
 0x450   : > { %s6917_s29 = smov %s6911_s8 }
 0x452   :  { %2380 = vsyncpa [#allocation6], 1 }
 0x453   :  { %2382 = vsyncpa [#allocation6 + $0x1], 1 }

</bundles_post_ra>
